<compile_context>
chip_gen: v7x
topology: tpu7x:2x2x1
jax: 0.10.0
libtpu: 0.0.40
codegen_flags: <defaults>
</compile_context>

<pallas_src>
import functools

import jax
import jax.numpy as jnp
from jax.experimental import pallas as pl
from jax.experimental.pallas import tpu as pltpu


def _largest_divisor(n, cap):
    """Largest divisor of n that is <= cap (>=1)."""
    cap = max(1, min(n, cap))
    for t in range(cap, 0, -1):
        if n % t == 0:
            return t
    return 1


def _vmem_capacity_bytes():
    try:
        return int(pltpu.get_tpu_info().vmem_capacity_bytes)
    except Exception:
        return 64 * 1024 * 1024   # conservative fallback (v7x per-TC VMEM)


# ----------------------------------------------------------------------------
# Fused conv kernel: (row-tap-stacked activation) x (weights) + BN + ReLU
# All kh row-taps (and, for folded layers, kw column-taps in the K dim) are
# reduced inside a single invocation; only the cin-chunk axis is a grid
# reduction, so the f32 accumulator sees minimal read-modify-write traffic.
# ----------------------------------------------------------------------------
def _conv_kernel(x_ref, w_ref, scale_ref, bias_ref, o_ref, *scratch,
                 kh, kw, dil, w_out, apply_relu, single_k):
    th = o_ref.shape[1]
    tk = x_ref.shape[-1]

    if not single_k:
        acc_ref = scratch[0]

        @pl.when(pl.program_id(3) == 0)
        def _():
            acc_ref[...] = jnp.zeros_like(acc_ref)

    partial = None
    for di in range(kh):                       # static row-tap loop
        for dj in range(kw):                   # static col-tap loop (1 if folded)
            xs = x_ref[0, di, :, dj * dil:dj * dil + w_out, :]     # (TH, W, TK)
            xs = xs.reshape(th * w_out, tk)
            c = jnp.dot(xs, w_ref[di, dj], preferred_element_type=jnp.float32)
            partial = c if partial is None else partial + c

    def _epilogue(r):
        r = r * scale_ref[...] + bias_ref[...]
        if apply_relu:
            r = jnp.maximum(r, 0.0)
        o_ref[...] = r.reshape(o_ref.shape).astype(o_ref.dtype)

    if single_k:
        _epilogue(partial)
    else:
        acc_ref[...] += partial

        @pl.when(pl.program_id(3) == pl.num_programs(3) - 1)
        def _():
            _epilogue(acc_ref[...])


def conv2d(x, layer):
    """'same' NHWC conv (stride 1) with folded BN + ReLU, bf16 MXU, f32 acc."""
    w = layer['w']                                   # (kh, kw, cin, cout) bf16
    kh, kw, cin, cout = w.shape
    p, dil = layer['padding'], layer['dilation']
    n, h, wd, _ = x.shape

    x = x.astype(jnp.bfloat16)
    xp = jnp.pad(x, ((0, 0), (p, p), (p, p), (0, 0))) if p > 0 else x
    wp = wd + 2 * p

    # For deep layers the kw taps are folded into the contraction dim so the
    # kernel needs no sublane-offset slices and the MXU K dim gets 3x deeper.
    fold_kw = (cin >= 512) and (kw > 1)
    if fold_kw:
        taps = []
        for di in range(kh):
            row = xp[:, di * dil:di * dil + h]
            cols = [row[:, :, dj * dil:dj * dil + wd, :] for dj in range(kw)]
            taps.append(jnp.concatenate(cols, axis=-1))
        x_h = jnp.stack(taps, axis=1)                 # (n, kh, h, wd, kw*cin)
        w_k = w.reshape(kh, 1, kw * cin, cout)
        kw_eff, ck, w_x = 1, kw * cin, wd
    else:
        if kh == 1:
            x_h = xp[:, None]
        else:
            x_h = jnp.stack([xp[:, di * dil:di * dil + h] for di in range(kh)],
                            axis=1)                   # (n, kh, h, wp, cin)
        w_k = w
        kw_eff, ck, w_x = kw, cin, wp

    # cin-chunk size: full if small, else a multiple-of-128 divisor (<=1536).
    if ck <= 1536:
        tk = ck
    else:
        tk = 1536
        while ck % tk != 0 or tk % 128 != 0:
            tk -= 128
        tk = max(tk, 128)
    tn = min(512, cout)                              # divides every cout used

    # Generation-aware tile sizing + explicit scoped-VMEM limit.
    cap = _vmem_capacity_bytes()
    budget = int(cap * 0.35)
    limit = int(min(int(cap * 0.75), 112 * (1 << 20)))

    def _tile_bytes(th_):
        xb = kh * th_ * w_x * tk * 2
        wb = kh * kw_eff * tk * tn * 2
        ob = th_ * wd * tn * 2
        ab = th_ * wd * tn * 4
        return 2 * (xb + wb + ob) + ab

    if wd % 8 == 0:
        th = 1
        for cand in sorted({d for d in range(1, h + 1) if h % d == 0}):
            if _tile_bytes(cand) <= budget:
                th = cand
    else:
        th = 1               # keep in-kernel reshapes layout-trivial

    grid = (n, h // th, cout // tn, ck // tk)
    single_k = (ck // tk == 1)

    scale = layer['scale'].reshape(1, cout).astype(jnp.float32)
    bias = layer['bias'].reshape(1, cout).astype(jnp.float32)

    flops = int(2 * n * h * wd * cout * kh * kw * cin)
    bytes_accessed = int(x_h.size * 2 * (cout // tn)
                         + w_k.size * 2 * n * (h // th)
                         + n * h * wd * cout * 2)

    scratch = [] if single_k else [pltpu.VMEM((th * wd, tn), jnp.float32)]

    out = pl.pallas_call(
        functools.partial(_conv_kernel, kh=kh, kw=kw_eff, dil=dil, w_out=wd,
                          apply_relu=layer['relu'], single_k=single_k),
        out_shape=jax.ShapeDtypeStruct((n, h, wd, cout), jnp.bfloat16),
        grid_spec=pltpu.PrefetchScalarGridSpec(
            num_scalar_prefetch=0,
            grid=grid,
            in_specs=[
                pl.BlockSpec((1, kh, th, w_x, tk),
                             lambda b, hb, co, ci: (b, 0, hb, 0, ci)),
                pl.BlockSpec((kh, kw_eff, tk, tn),
                             lambda b, hb, co, ci: (0, 0, ci, co)),
                pl.BlockSpec((1, tn), lambda b, hb, co, ci: (0, co)),
                pl.BlockSpec((1, tn), lambda b, hb, co, ci: (0, co)),
            ],
            out_specs=pl.BlockSpec((1, th, wd, tn),
                                   lambda b, hb, co, ci: (b, hb, 0, co)),
            scratch_shapes=scratch,
        ),
        compiler_params=pltpu.CompilerParams(
            dimension_semantics=("parallel", "parallel", "parallel", "arbitrary"),
            vmem_limit_bytes=limit),
        cost_estimate=pl.CostEstimate(flops=flops, transcendentals=0,
                                      bytes_accessed=bytes_accessed),
    )(x_h, w_k, scale, bias)
    return out


# ----------------------------------------------------------------------------
# Tiled 2x2 max pool directly on NHWC (no HBM transpose): input is the free
# row-major reshape (n, h2, 2, w2, 2c); H-pair via the size-2 leading dim,
# W-pair via the two lane-halves of the 2c lane dim.
# ----------------------------------------------------------------------------
def _maxpool_kernel(x_ref, o_ref, *, c):
    x = x_ref[...]                                   # (1, TH2, 2, W2, 2C)
    r = jnp.maximum(x[:, :, 0], x[:, :, 1])          # (1, TH2, W2, 2C)
    o_ref[...] = jnp.maximum(r[..., :c], r[..., c:])


def maxpool2x2(x):
    n, h, w, c = x.shape
    h2, w2 = h // 2, w // 2
    xr = x.reshape(n, h2, 2, w2, 2 * c)              # free row-major reshape

    row_bytes = 2 * w2 * 2 * c * x.dtype.itemsize
    th2 = _largest_divisor(h2, max(1, (3 << 20) // max(1, row_bytes)))
    grid = (n, h2 // th2)

    out = pl.pallas_call(
        functools.partial(_maxpool_kernel, c=c),
        out_shape=jax.ShapeDtypeStruct((n, h2, w2, c), x.dtype),
        grid=grid,
        in_specs=[pl.BlockSpec((1, th2, 2, w2, 2 * c),
                               lambda b, i: (b, i, 0, 0, 0))],
        out_specs=pl.BlockSpec((1, th2, w2, c), lambda b, i: (b, i, 0, 0)),
        compiler_params=pltpu.CompilerParams(
            dimension_semantics=("parallel", "parallel")),
    )(xr)
    return out


# ----------------------------------------------------------------------------
# Fused 8x bilinear upsample (align_corners=True) + embedding/binary heads.
# The first 1x1 conv + BN of each head is applied at LOW resolution in the
# wrapper (it commutes with the linear upsample); the kernel upsamples both
# heads' 8-channel hidden with MXU matmuls, applies ReLU, and finishes each
# head with its tiny 8->n_out 1x1 conv, storing NCHW outputs lane-dense in W.
# ----------------------------------------------------------------------------
def _interp_matrix(n_in, n_out):
    if n_in == 1:
        return jnp.ones((n_out, 1), jnp.float32)
    src = jnp.arange(n_out, dtype=jnp.float32) * (n_in - 1) / (n_out - 1)
    lo = jnp.clip(jnp.floor(src).astype(jnp.int32), 0, n_in - 2)
    frac = src - lo.astype(jnp.float32)
    return ((1.0 - frac)[:, None] * jax.nn.one_hot(lo, n_in, dtype=jnp.float32)
            + frac[:, None] * jax.nn.one_hot(lo + 1, n_in, dtype=jnp.float32))


def _heads_kernel(y_ref, uh_ref, uw_ref, w2e_ref, b2e_ref, w2s_ref, b2s_ref,
                  emb_ref, seg_ref, *, c_in, n_emb, n_seg):
    ct = y_ref.shape[1]                  # 2 * c_in (both heads stacked)
    toh = uh_ref.shape[0]
    uh = uh_ref[...]                     # (TOH, h)

    # Row-upsample each low-res hidden channel (tiny matmuls), stacked along
    # sublanes (TOH is a multiple of 8, so slices below are layout-trivial).
    t = jnp.concatenate(
        [jnp.dot(uh, y_ref[0, cc], preferred_element_type=jnp.float32)
         for cc in range(ct)], axis=0)                        # (ct*TOH, w)

    # Column upsample (the expensive, lane-dense MXU matmul) + ReLU.
    hidden = jnp.maximum(
        jnp.dot(t, uw_ref[...], preferred_element_type=jnp.float32), 0.0)

    def run_head(base, w2_ref, b2_ref, n_out, out_ref):
        for o in range(n_out):
            acc = None
            for ci in range(c_in):
                term = hidden[(base + ci) * toh:(base + ci + 1) * toh, :] \
                    * w2_ref[ci, o]
                acc = term if acc is None else acc + term
            out_ref[0, o] = (acc + b2_ref[o]).astype(out_ref.dtype)

    run_head(0, w2e_ref, b2e_ref, n_emb, emb_ref)
    run_head(c_in, w2s_ref, b2s_ref, n_seg, seg_ref)


def upsample_and_heads(x, emb_layers, seg_layers):
    """x: (N, h, w, 8) -> (N, embed_dim, 8h, 8w), (N, 2, 8h, 8w) in NCHW."""
    n, h, w, c = x.shape
    ho, wo = 8 * h, 8 * w
    n_emb = emb_layers[1]['w'].shape[-1]
    n_seg = seg_layers[1]['w'].shape[-1]

    def fold(layer, cin, cout):
        wm = layer['w'].reshape(cin, cout).astype(jnp.float32) \
            * layer['scale'][None, :]
        return wm, layer['bias'].astype(jnp.float32)

    we1, be1 = fold(emb_layers[0], c, c)
    we2, be2 = fold(emb_layers[1], c, n_emb)
    ws1, bs1 = fold(seg_layers[0], c, c)
    ws2, bs2 = fold(seg_layers[1], c, n_seg)

    # First 1x1 conv + BN of each head commuted to LOW resolution (bilinear
    # interpolation weights sum to 1, so the affine map commutes exactly).
    xf = x.astype(jnp.float32)
    y_emb = xf @ we1 + be1                              # (n, h, w, c)
    y_seg = xf @ ws1 + bs1
    y = jnp.concatenate([y_emb, y_seg], axis=-1)        # (n, h, w, 2c)
    y = jnp.transpose(y, (0, 3, 1, 2))                  # (n, 2c, h, w) - tiny

    uh = _interp_matrix(h, ho)                          # (ho, h)
    uw_t = _interp_matrix(w, wo).T                      # (w, wo)

    # Tile output rows against the generation-aware VMEM budget.
    cap = _vmem_capacity_bytes()
    budget = int(cap * 0.30)
    limit = int(min(int(cap * 0.75), 112 * (1 << 20)))
    toh_max = max(8, budget // max(1, 112 * wo))        # ~hidden + 2x outputs
    d = _largest_divisor(h, max(1, toh_max // 8))
    toh = 8 * d                                         # multiple of 8, | ho
    grid = (n, ho // toh)

    smem = pl.BlockSpec(memory_space=pltpu.MemorySpace.SMEM)

    emb, seg = pl.pallas_call(
        functools.partial(_heads_kernel, c_in=c, n_emb=n_emb, n_seg=n_seg),
        out_shape=(jax.ShapeDtypeStruct((n, n_emb, ho, wo), jnp.float32),
                   jax.ShapeDtypeStruct((n, n_seg, ho, wo), jnp.float32)),
        grid_spec=pltpu.PrefetchScalarGridSpec(
            num_scalar_prefetch=0,
            grid=grid,
            in_specs=[
                pl.BlockSpec((1, 2 * c, h, w), lambda b, r: (b, 0, 0, 0)),
                pl.BlockSpec((toh, h), lambda b, r: (r, 0)),
                pl.BlockSpec((w, wo), lambda b, r: (0, 0)),
                smem, smem, smem, smem,
            ],
            out_specs=[
                pl.BlockSpec((1, n_emb, toh, wo), lambda b, r: (b, 0, r, 0)),
                pl.BlockSpec((1, n_seg, toh, wo), lambda b, r: (b, 0, r, 0)),
            ],
        ),
        compiler_params=pltpu.CompilerParams(
            dimension_semantics=("parallel", "parallel"),
            vmem_limit_bytes=limit),
    )(y, uh, uw_t, we2, be2, ws2, bs2)
    return emb, seg


# ----------------------------------------------------------------------------
# Deterministic parameter construction (VGG16-BN backbone variant of LaneNet)
# ----------------------------------------------------------------------------
class _Keys:
    def __init__(self, seed):
        self._key = jax.random.PRNGKey(seed)

    def __call__(self):
        self._key, sub = jax.random.split(self._key)
        return sub


def _make_conv_layer(keys, cin, cout, ksize, padding, dilation, conv_bias, bn,
                     relu, w_dtype=jnp.bfloat16):
    w = 0.05 * jax.random.normal(keys(), (ksize, ksize, cin, cout), jnp.float32)
    b = (0.01 * jax.random.normal(keys(), (cout,), jnp.float32)
         if conv_bias else jnp.zeros((cout,), jnp.float32))
    if bn:
        gamma = jax.random.uniform(keys(), (cout,), jnp.float32, 0.8, 1.2)
        beta = 0.01 * jax.random.normal(keys(), (cout,), jnp.float32)
        eps = 1e-5
        running_mean = jnp.zeros((cout,), jnp.float32)
        running_var = jnp.ones((cout,), jnp.float32)
        scale = gamma / jnp.sqrt(running_var + eps)
        bias = beta + scale * (b - running_mean)
    else:
        scale = jnp.ones((cout,), jnp.float32)
        bias = b
    return {'w': w.astype(w_dtype), 'scale': scale, 'bias': bias,
            'padding': padding, 'dilation': dilation, 'relu': relu}


def init_params(seed=0, embed_dim=4):
    keys = _Keys(seed)
    backbone = []
    # VGG16-BN features with pools 33/43 removed and convs 34/37/40 dilated.
    cfg = [(3, 64), (64, 64), 'M', (64, 128), (128, 128), 'M',
           (128, 256), (256, 256), (256, 256), 'M',
           (256, 512), (512, 512), (512, 512),
           ('D', 512, 512), ('D', 512, 512), ('D', 512, 512)]
    for item in cfg:
        if item == 'M':
            backbone.append({'type': 'pool'})
        elif item[0] == 'D':
            _, cin, cout = item
            layer = _make_conv_layer(keys, cin, cout, 3, 2, 2, True, True, True)
            layer['type'] = 'conv'
            backbone.append(layer)
        else:
            cin, cout = item
            layer = _make_conv_layer(keys, cin, cout, 3, 1, 1, True, True, True)
            layer['type'] = 'conv'
            backbone.append(layer)

    layer1 = [
        _make_conv_layer(keys, 512, 1024, 3, 4, 4, False, True, True),
        _make_conv_layer(keys, 1024, 128, 3, 1, 1, False, True, True),
        _make_conv_layer(keys, 128, 32, 3, 1, 1, False, True, True),
        _make_conv_layer(keys, 32, 8, 3, 1, 1, False, True, True),
    ]
    # Heads stay f32 (first layer is folded into the wrapper, second layer's
    # tiny weights feed the fused upsample+head kernel via SMEM scalars).
    embedding = [
        _make_conv_layer(keys, 8, 8, 1, 0, 1, True, True, True,
                         w_dtype=jnp.float32),
        _make_conv_layer(keys, 8, embed_dim, 1, 0, 1, True, False, False,
                         w_dtype=jnp.float32),
    ]
    binary_seg = [
        _make_conv_layer(keys, 8, 8, 1, 0, 1, True, True, True,
                         w_dtype=jnp.float32),
        _make_conv_layer(keys, 8, 2, 1, 0, 1, True, False, False,
                         w_dtype=jnp.float32),
    ]
    return {'backbone': backbone, 'layer1': layer1,
            'embedding': embedding, 'binary_seg': binary_seg}


# ----------------------------------------------------------------------------
# Forward (segLabel=None path of LaneNet.forward)
# ----------------------------------------------------------------------------
def lanenet_forward(img_nchw, params):
    x = jnp.transpose(img_nchw, (0, 2, 3, 1)).astype(jnp.bfloat16)  # -> NHWC
    for layer in params['backbone']:
        if layer['type'] == 'pool':
            x = maxpool2x2(x)
        else:
            x = conv2d(x, layer)
    for layer in params['layer1']:
        x = conv2d(x, layer)

    embedding, binary_seg = upsample_and_heads(
        x, params['embedding'], params['binary_seg'])   # NCHW, f32

    zero = jnp.zeros((), img_nchw.dtype)
    # segLabel is None => all losses are zero tensors, loss = 0
    return {'embedding': embedding, 'binary_seg': binary_seg,
            'seg_loss': zero, 'var_loss': zero, 'dist_loss': zero,
            'loss': zero, 'reg_loss': zero}


if __name__ == "__main__":
    params = init_params(seed=0, embed_dim=4)
    key = jax.random.PRNGKey(0)
    # NCHW, 3 channels, spatial divisible by 8 (three 2x2 pools + 8x upsample)
    img = jax.random.normal(key, (2, 3, 16, 16), jnp.float32)
    out = lanenet_forward(img, params)
    jax.block_until_ready(out)
    assert out['embedding'].shape == (2, 4, 16, 16)
    assert out['binary_seg'].shape == (2, 2, 16, 16)
    assert bool(jnp.isfinite(out['embedding']).all())
    assert bool(jnp.isfinite(out['binary_seg']).all())
    print("KERNEL_OK")
</pallas_src>

<mosaic_0001>
module attributes {stable_mosaic.version = 11 : i64} {
  func.func @_conv_kernel(%arg0: i32, %arg1: i32, %arg2: i32, %arg3: i32, %arg4: memref<1x3x16x18x3xbf16, #tpu.memory_space<vmem>>, %arg5: memref<3x3x3x64xbf16, #tpu.memory_space<vmem>>, %arg6: memref<1x64xf32, #tpu.memory_space<vmem>>, %arg7: memref<1x64xf32, #tpu.memory_space<vmem>>, %arg8: memref<1x16x16x64xbf16, #tpu.memory_space<vmem>>) attributes {dimension_semantics = [#tpu.dimension_semantics<parallel>, #tpu.dimension_semantics<parallel>, #tpu.dimension_semantics<parallel>, #tpu.dimension_semantics<arbitrary>], iteration_bounds = array<i64: 2, 1, 1, 1>, scalar_prefetch = 0 : i64, scratch_operands = 0 : i64, tpu.core_type = #tpu.core_type<tc>, window_params = [{transform_indices = @transform_0, window_bounds = array<i64: 1, 3, 16, 18, 3>}, {transform_indices = @transform_1, window_bounds = array<i64: 3, 3, 3, 64>}, {transform_indices = @transform_2, window_bounds = array<i64: 1, 64>}, {transform_indices = @transform_3, window_bounds = array<i64: 1, 64>}, {transform_indices = @transform_4, window_bounds = array<i64: 1, 16, 16, 64>}]} {
    %c0 = arith.constant 0 : index
    %c0_0 = arith.constant 0 : index
    %c0_1 = arith.constant 0 : index
    %c0_2 = arith.constant 0 : index
    %c0_3 = arith.constant 0 : index
    %0 = vector.load %arg4[%c0, %c0_0, %c0_1, %c0_2, %c0_3] : memref<1x3x16x18x3xbf16, #tpu.memory_space<vmem>>, vector<1x1x16x16x3xbf16>
    %1 = vector.shape_cast %0 : vector<1x1x16x16x3xbf16> to vector<16x16x3xbf16>
    %2 = vector.shape_cast %1 : vector<16x16x3xbf16> to vector<256x3xbf16>
    %c0_4 = arith.constant 0 : index
    %c0_5 = arith.constant 0 : index
    %c0_6 = arith.constant 0 : index
    %c0_7 = arith.constant 0 : index
    %3 = vector.load %arg5[%c0_4, %c0_5, %c0_6, %c0_7] : memref<3x3x3x64xbf16, #tpu.memory_space<vmem>>, vector<1x1x3x64xbf16>
    %4 = vector.shape_cast %3 : vector<1x1x3x64xbf16> to vector<3x64xbf16>
    %cst = arith.constant dense<0.000000e+00> : vector<256x64xf32>
    %5 = tpu.matmul %2, %4, %cst {dimension_numbers = #tpu.dot_dimension_numbers<[1], [0], [0], [1], [0, 0, 1, 1], [], []>} : vector<256x3xbf16>, vector<3x64xbf16>, vector<256x64xf32> -> vector<256x64xf32>
    %c0_8 = arith.constant 0 : index
    %c0_9 = arith.constant 0 : index
    %c0_10 = arith.constant 0 : index
    %c1 = arith.constant 1 : index
    %c0_11 = arith.constant 0 : index
    %6 = vector.load %arg4[%c0_8, %c0_9, %c0_10, %c1, %c0_11] : memref<1x3x16x18x3xbf16, #tpu.memory_space<vmem>>, vector<1x1x16x16x3xbf16>
    %7 = vector.shape_cast %6 : vector<1x1x16x16x3xbf16> to vector<16x16x3xbf16>
    %8 = vector.shape_cast %7 : vector<16x16x3xbf16> to vector<256x3xbf16>
    %c0_12 = arith.constant 0 : index
    %c1_13 = arith.constant 1 : index
    %c0_14 = arith.constant 0 : index
    %c0_15 = arith.constant 0 : index
    %9 = vector.load %arg5[%c0_12, %c1_13, %c0_14, %c0_15] : memref<3x3x3x64xbf16, #tpu.memory_space<vmem>>, vector<1x1x3x64xbf16>
    %10 = vector.shape_cast %9 : vector<1x1x3x64xbf16> to vector<3x64xbf16>
    %cst_16 = arith.constant dense<0.000000e+00> : vector<256x64xf32>
    %11 = tpu.matmul %8, %10, %cst_16 {dimension_numbers = #tpu.dot_dimension_numbers<[1], [0], [0], [1], [0, 0, 1, 1], [], []>} : vector<256x3xbf16>, vector<3x64xbf16>, vector<256x64xf32> -> vector<256x64xf32>
    %12 = arith.addf %5, %11 : vector<256x64xf32>
    %c0_17 = arith.constant 0 : index
    %c0_18 = arith.constant 0 : index
    %c0_19 = arith.constant 0 : index
    %c2 = arith.constant 2 : index
    %c0_20 = arith.constant 0 : index
    %13 = vector.load %arg4[%c0_17, %c0_18, %c0_19, %c2, %c0_20] : memref<1x3x16x18x3xbf16, #tpu.memory_space<vmem>>, vector<1x1x16x16x3xbf16>
    %14 = vector.shape_cast %13 : vector<1x1x16x16x3xbf16> to vector<16x16x3xbf16>
    %15 = vector.shape_cast %14 : vector<16x16x3xbf16> to vector<256x3xbf16>
    %c0_21 = arith.constant 0 : index
    %c2_22 = arith.constant 2 : index
    %c0_23 = arith.constant 0 : index
    %c0_24 = arith.constant 0 : index
    %16 = vector.load %arg5[%c0_21, %c2_22, %c0_23, %c0_24] : memref<3x3x3x64xbf16, #tpu.memory_space<vmem>>, vector<1x1x3x64xbf16>
    %17 = vector.shape_cast %16 : vector<1x1x3x64xbf16> to vector<3x64xbf16>
    %cst_25 = arith.constant dense<0.000000e+00> : vector<256x64xf32>
    %18 = tpu.matmul %15, %17, %cst_25 {dimension_numbers = #tpu.dot_dimension_numbers<[1], [0], [0], [1], [0, 0, 1, 1], [], []>} : vector<256x3xbf16>, vector<3x64xbf16>, vector<256x64xf32> -> vector<256x64xf32>
    %19 = arith.addf %12, %18 : vector<256x64xf32>
    %c0_26 = arith.constant 0 : index
    %c1_27 = arith.constant 1 : index
    %c0_28 = arith.constant 0 : index
    %c0_29 = arith.constant 0 : index
    %c0_30 = arith.constant 0 : index
    %20 = vector.load %arg4[%c0_26, %c1_27, %c0_28, %c0_29, %c0_30] : memref<1x3x16x18x3xbf16, #tpu.memory_space<vmem>>, vector<1x1x16x16x3xbf16>
    %21 = vector.shape_cast %20 : vector<1x1x16x16x3xbf16> to vector<16x16x3xbf16>
    %22 = vector.shape_cast %21 : vector<16x16x3xbf16> to vector<256x3xbf16>
    %c1_31 = arith.constant 1 : index
    %c0_32 = arith.constant 0 : index
    %c0_33 = arith.constant 0 : index
    %c0_34 = arith.constant 0 : index
    %23 = vector.load %arg5[%c1_31, %c0_32, %c0_33, %c0_34] : memref<3x3x3x64xbf16, #tpu.memory_space<vmem>>, vector<1x1x3x64xbf16>
    %24 = vector.shape_cast %23 : vector<1x1x3x64xbf16> to vector<3x64xbf16>
    %cst_35 = arith.constant dense<0.000000e+00> : vector<256x64xf32>
    %25 = tpu.matmul %22, %24, %cst_35 {dimension_numbers = #tpu.dot_dimension_numbers<[1], [0], [0], [1], [0, 0, 1, 1], [], []>} : vector<256x3xbf16>, vector<3x64xbf16>, vector<256x64xf32> -> vector<256x64xf32>
    %26 = arith.addf %19, %25 : vector<256x64xf32>
    %c0_36 = arith.constant 0 : index
    %c1_37 = arith.constant 1 : index
    %c0_38 = arith.constant 0 : index
    %c1_39 = arith.constant 1 : index
    %c0_40 = arith.constant 0 : index
    %27 = vector.load %arg4[%c0_36, %c1_37, %c0_38, %c1_39, %c0_40] : memref<1x3x16x18x3xbf16, #tpu.memory_space<vmem>>, vector<1x1x16x16x3xbf16>
    %28 = vector.shape_cast %27 : vector<1x1x16x16x3xbf16> to vector<16x16x3xbf16>
    %29 = vector.shape_cast %28 : vector<16x16x3xbf16> to vector<256x3xbf16>
    %c1_41 = arith.constant 1 : index
    %c1_42 = arith.constant 1 : index
    %c0_43 = arith.constant 0 : index
    %c0_44 = arith.constant 0 : index
    %30 = vector.load %arg5[%c1_41, %c1_42, %c0_43, %c0_44] : memref<3x3x3x64xbf16, #tpu.memory_space<vmem>>, vector<1x1x3x64xbf16>
    %31 = vector.shape_cast %30 : vector<1x1x3x64xbf16> to vector<3x64xbf16>
    %cst_45 = arith.constant dense<0.000000e+00> : vector<256x64xf32>
    %32 = tpu.matmul %29, %31, %cst_45 {dimension_numbers = #tpu.dot_dimension_numbers<[1], [0], [0], [1], [0, 0, 1, 1], [], []>} : vector<256x3xbf16>, vector<3x64xbf16>, vector<256x64xf32> -> vector<256x64xf32>
    %33 = arith.addf %26, %32 : vector<256x64xf32>
    %c0_46 = arith.constant 0 : index
    %c1_47 = arith.constant 1 : index
    %c0_48 = arith.constant 0 : index
    %c2_49 = arith.constant 2 : index
    %c0_50 = arith.constant 0 : index
    %34 = vector.load %arg4[%c0_46, %c1_47, %c0_48, %c2_49, %c0_50] : memref<1x3x16x18x3xbf16, #tpu.memory_space<vmem>>, vector<1x1x16x16x3xbf16>
    %35 = vector.shape_cast %34 : vector<1x1x16x16x3xbf16> to vector<16x16x3xbf16>
    %36 = vector.shape_cast %35 : vector<16x16x3xbf16> to vector<256x3xbf16>
    %c1_51 = arith.constant 1 : index
    %c2_52 = arith.constant 2 : index
    %c0_53 = arith.constant 0 : index
    %c0_54 = arith.constant 0 : index
    %37 = vector.load %arg5[%c1_51, %c2_52, %c0_53, %c0_54] : memref<3x3x3x64xbf16, #tpu.memory_space<vmem>>, vector<1x1x3x64xbf16>
    %38 = vector.shape_cast %37 : vector<1x1x3x64xbf16> to vector<3x64xbf16>
    %cst_55 = arith.constant dense<0.000000e+00> : vector<256x64xf32>
    %39 = tpu.matmul %36, %38, %cst_55 {dimension_numbers = #tpu.dot_dimension_numbers<[1], [0], [0], [1], [0, 0, 1, 1], [], []>} : vector<256x3xbf16>, vector<3x64xbf16>, vector<256x64xf32> -> vector<256x64xf32>
    %40 = arith.addf %33, %39 : vector<256x64xf32>
    %c0_56 = arith.constant 0 : index
    %c2_57 = arith.constant 2 : index
    %c0_58 = arith.constant 0 : index
    %c0_59 = arith.constant 0 : index
    %c0_60 = arith.constant 0 : index
    %41 = vector.load %arg4[%c0_56, %c2_57, %c0_58, %c0_59, %c0_60] : memref<1x3x16x18x3xbf16, #tpu.memory_space<vmem>>, vector<1x1x16x16x3xbf16>
    %42 = vector.shape_cast %41 : vector<1x1x16x16x3xbf16> to vector<16x16x3xbf16>
    %43 = vector.shape_cast %42 : vector<16x16x3xbf16> to vector<256x3xbf16>
    %c2_61 = arith.constant 2 : index
    %c0_62 = arith.constant 0 : index
    %c0_63 = arith.constant 0 : index
    %c0_64 = arith.constant 0 : index
    %44 = vector.load %arg5[%c2_61, %c0_62, %c0_63, %c0_64] : memref<3x3x3x64xbf16, #tpu.memory_space<vmem>>, vector<1x1x3x64xbf16>
    %45 = vector.shape_cast %44 : vector<1x1x3x64xbf16> to vector<3x64xbf16>
    %cst_65 = arith.constant dense<0.000000e+00> : vector<256x64xf32>
    %46 = tpu.matmul %43, %45, %cst_65 {dimension_numbers = #tpu.dot_dimension_numbers<[1], [0], [0], [1], [0, 0, 1, 1], [], []>} : vector<256x3xbf16>, vector<3x64xbf16>, vector<256x64xf32> -> vector<256x64xf32>
    %47 = arith.addf %40, %46 : vector<256x64xf32>
    %c0_66 = arith.constant 0 : index
    %c2_67 = arith.constant 2 : index
    %c0_68 = arith.constant 0 : index
    %c1_69 = arith.constant 1 : index
    %c0_70 = arith.constant 0 : index
    %48 = vector.load %arg4[%c0_66, %c2_67, %c0_68, %c1_69, %c0_70] : memref<1x3x16x18x3xbf16, #tpu.memory_space<vmem>>, vector<1x1x16x16x3xbf16>
    %49 = vector.shape_cast %48 : vector<1x1x16x16x3xbf16> to vector<16x16x3xbf16>
    %50 = vector.shape_cast %49 : vector<16x16x3xbf16> to vector<256x3xbf16>
    %c2_71 = arith.constant 2 : index
    %c1_72 = arith.constant 1 : index
    %c0_73 = arith.constant 0 : index
    %c0_74 = arith.constant 0 : index
    %51 = vector.load %arg5[%c2_71, %c1_72, %c0_73, %c0_74] : memref<3x3x3x64xbf16, #tpu.memory_space<vmem>>, vector<1x1x3x64xbf16>
    %52 = vector.shape_cast %51 : vector<1x1x3x64xbf16> to vector<3x64xbf16>
    %cst_75 = arith.constant dense<0.000000e+00> : vector<256x64xf32>
    %53 = tpu.matmul %50, %52, %cst_75 {dimension_numbers = #tpu.dot_dimension_numbers<[1], [0], [0], [1], [0, 0, 1, 1], [], []>} : vector<256x3xbf16>, vector<3x64xbf16>, vector<256x64xf32> -> vector<256x64xf32>
    %54 = arith.addf %47, %53 : vector<256x64xf32>
    %c0_76 = arith.constant 0 : index
    %c2_77 = arith.constant 2 : index
    %c0_78 = arith.constant 0 : index
    %c2_79 = arith.constant 2 : index
    %c0_80 = arith.constant 0 : index
    %55 = vector.load %arg4[%c0_76, %c2_77, %c0_78, %c2_79, %c0_80] : memref<1x3x16x18x3xbf16, #tpu.memory_space<vmem>>, vector<1x1x16x16x3xbf16>
    %56 = vector.shape_cast %55 : vector<1x1x16x16x3xbf16> to vector<16x16x3xbf16>
    %57 = vector.shape_cast %56 : vector<16x16x3xbf16> to vector<256x3xbf16>
    %c2_81 = arith.constant 2 : index
    %c2_82 = arith.constant 2 : index
    %c0_83 = arith.constant 0 : index
    %c0_84 = arith.constant 0 : index
    %58 = vector.load %arg5[%c2_81, %c2_82, %c0_83, %c0_84] : memref<3x3x3x64xbf16, #tpu.memory_space<vmem>>, vector<1x1x3x64xbf16>
    %59 = vector.shape_cast %58 : vector<1x1x3x64xbf16> to vector<3x64xbf16>
    %cst_85 = arith.constant dense<0.000000e+00> : vector<256x64xf32>
    %60 = tpu.matmul %57, %59, %cst_85 {dimension_numbers = #tpu.dot_dimension_numbers<[1], [0], [0], [1], [0, 0, 1, 1], [], []>} : vector<256x3xbf16>, vector<3x64xbf16>, vector<256x64xf32> -> vector<256x64xf32>
    %61 = arith.addf %54, %60 : vector<256x64xf32>
    %c0_86 = arith.constant 0 : index
    %c0_87 = arith.constant 0 : index
    %62 = vector.load %arg6[%c0_86, %c0_87] : memref<1x64xf32, #tpu.memory_space<vmem>>, vector<1x64xf32>
    %63 = vector.broadcast %62 : vector<1x64xf32> to vector<256x64xf32>
    %64 = arith.mulf %61, %63 : vector<256x64xf32>
    %c0_88 = arith.constant 0 : index
    %c0_89 = arith.constant 0 : index
    %65 = vector.load %arg7[%c0_88, %c0_89] : memref<1x64xf32, #tpu.memory_space<vmem>>, vector<1x64xf32>
    %66 = vector.broadcast %65 : vector<1x64xf32> to vector<256x64xf32>
    %67 = arith.addf %64, %66 : vector<256x64xf32>
    %cst_90 = arith.constant 0.000000e+00 : f32
    %68 = vector.broadcast %cst_90 : f32 to vector<256x64xf32>
    %69 = arith.maximumf %67, %68 : vector<256x64xf32>
    %70 = vector.shape_cast %69 : vector<256x64xf32> to vector<1x16x16x64xf32>
    %71 = arith.truncf %70 : vector<1x16x16x64xf32> to vector<1x16x16x64xbf16>
    %c0_91 = arith.constant 0 : index
    %c0_92 = arith.constant 0 : index
    %c0_93 = arith.constant 0 : index
    %c0_94 = arith.constant 0 : index
    %72 = vector.load %arg8[%c0_91, %c0_92, %c0_93, %c0_94] : memref<1x16x16x64xbf16, #tpu.memory_space<vmem>>, vector<1x16x16x64xbf16>
    tpu.vector_store %arg8[%c0_91, %c0_92, %c0_93, %c0_94], %71 {strides = array<i32>} : memref<1x16x16x64xbf16, #tpu.memory_space<vmem>>, vector<1x16x16x64xbf16>,
    return
  }
  func.func @transform_0(%arg0: i32, %arg1: i32, %arg2: i32, %arg3: i32) -> (i32, i32, i32, i32, i32) {
    %c0_i32 = arith.constant 0 : i32
    %c0_i32_0 = arith.constant 0 : i32
    %c0_i32_1 = arith.constant 0 : i32
    return %arg0, %c0_i32, %arg1, %c0_i32_0, %arg3 : i32, i32, i32, i32, i32
  }
  func.func @transform_1(%arg0: i32, %arg1: i32, %arg2: i32, %arg3: i32) -> (i32, i32, i32, i32) {
    %c0_i32 = arith.constant 0 : i32
    %c0_i32_0 = arith.constant 0 : i32
    %c0_i32_1 = arith.constant 0 : i32
    return %c0_i32, %c0_i32_0, %arg3, %arg2 : i32, i32, i32, i32
  }
  func.func @transform_2(%arg0: i32, %arg1: i32, %arg2: i32, %arg3: i32) -> (i32, i32) {
    %c0_i32 = arith.constant 0 : i32
    %c0_i32_0 = arith.constant 0 : i32
    return %c0_i32, %arg2 : i32, i32
  }
  func.func @transform_3(%arg0: i32, %arg1: i32, %arg2: i32, %arg3: i32) -> (i32, i32) {
    %c0_i32 = arith.constant 0 : i32
    %c0_i32_0 = arith.constant 0 : i32
    return %c0_i32, %arg2 : i32, i32
  }
  func.func @transform_4(%arg0: i32, %arg1: i32, %arg2: i32, %arg3: i32) -> (i32, i32, i32, i32) {
    %c0_i32 = arith.constant 0 : i32
    %c0_i32_0 = arith.constant 0 : i32
    return %arg0, %arg1, %c0_i32, %arg2 : i32, i32, i32, i32
  }
}

</mosaic_0001>

<bundles_post_ra>
// kernel: tpu_custom_call.1
= control target key start
LH: loop header
LB: loop body
LE: loop exit
PB: predicated region body
PF: predicated region fallthrough
CT: control target
= control target key end

     0   :  { %9 = vsyncpa [#allocation3], 0  ;;  %s8903_s0 = inlined_call_operand.vmem [shape: bf16[2,3,16,18,3], index: 0, kind: input, shape index: {}]   ;;  %s8904_s1 = inlined_call_operand.vmem [shape: bf16[3,3,3,64], index: 1, kind: input, shape index: {}]   ;;  %s8905_s2 = inlined_call_operand.vmem [shape: f32[1,64], index: 2, kind: input, shape index: {}]   ;;  %s8906_s3 = inlined_call_operand.vmem [shape: f32[1,64], index: 3, kind: input, shape index: {}]   ;;  %s8907_s4 = inlined_call_operand.hbm [shape: bf16[2,16,16,64], index: 4, kind: output, shape index: {}]  }
   0x1   :  { %11 = vsyncpa [#allocation3 + $0x1], 0  ;;  %s6904_s15 = smov 0   ;;  %s6906_s16 = smov 0  }
   0x2   :  { %s6908_s17 = smov 0   ;;  %s6910_s18 = smov 0  }
   0x3   :  { %s6912_s19 = smov 0   ;;  %s6914_s20 = smov 0  }
   0x4 LB: > { %s5299_s21 = sadd.s32 4294967295, %s6873_s20   ;;  %s5300_s22 = sadd.s32 4294967294, %s6873_s20   ;;  %s6873_s20 = sphi %s6914_s20, %s17_s20   ;;  %s6869_s19 = sphi %s6912_s19, %s8991_s19   ;;  %s6865_s18 = sphi %s6910_s18, %s8990_s18   ;;  %s6861_s17 = sphi %s6908_s17, %s8989_s17   ;;  %s6857_s16 = sphi %s6906_s16, %s8988_s16   ;;  %s6853_s15 = sphi %s6904_s15, %s8987_s15  }
   0x5   : > { %s43_s23 = sadd.s32 1, %s6869_s19  ;;  %s164_s24 = sadd.s32 1, %s6861_s17 }
   0x6   : > { %p45_p0 = scmp.ge.s32.totalorder %s43_s23, 2  ;;  %p174_p1 = scmp.ne.s32.totalorder %s6861_s17, %s6857_s16 }
   0x7   : > { %p175_p2 = scmp.eq.s32.totalorder %s5299_s21, 1  ;;  %p180_p3 = scmp.ne.s32.totalorder %s6857_s16, %s6853_s15 }
   0x8   : > { %s8993_s23 = smov (%p45_p0, %s43_s23), 0  ;;  %p181_p5 = scmp.eq.s32.totalorder %s5300_s22, 1 }
   0x9   : > { %p6944_p4 = por %p175_p2, %p174_p1  ;;  %s157_s26 = ssub.s32 %s6869_s19, %s8993_s23 }
   0xa   : > { %p5306_p6 = scmp.ge.s32.totalorder %s6873_s20, 1  ;;  %p162_p7 = scmp.eq.s32.totalorder %s157_s26, 0 }
   0xb   : > { %p6951_p8 = por %p181_p5, %p180_p3  ;;  %p238_p9 = scmp.lt.s32.totalorder %s6873_s20, 3 }
   0xc   : > { %s6957_s28 = scalar_select %p162_p7, %s6861_s17, %s164_s24  }
   0xd   : > { %p239_p10 = pnand %p5306_p6, %p238_p9 }
   0xf   : > { %242 = sbr.rel (%p239_p10) target bundleno = 615 (0x267), region = 36 }
  0x16   : > { %v5309_v0 = vld [vmem:[%s8904_s1 + $0x2] sm:$0x3]  ;;  %vm849_vm0 = vcmask 1040384   ;;  %vm850_vm1 = vcmask 1041408   ;;  %p286_p11 = scmp.lt.s32.totalorder %s6865_s18, 1  ;;  %v6875_v1 = vmov 65535  }
  0x17   : > { %v851_v2 = vsel %vm849_vm0, 4294967295, %v6875_v1  ;;  %v5536_v3 = vld [vmem:[%s8904_s1 + $0x8] sm:$0x3]  ;;  %v346_v5 = vld [vmem:[%s8904_s1] sm:$0x3]  ;;  %vm800_vm4 = vcmask 23552  }
  0x18   : > { %v6966_v4 = vsel %vm850_vm1, %v851_v2, 0  ;;  %s287_s7 = scalar_select %p286_p11, %s6865_s18, 1  ;;  %v5601_v9 = vld [vmem:[%s8904_s1 + $0xa] sm:$0x3]  ;;  %vm363_vm2 = vsmask.f32 3328 }
  0x19   : > { %v854_v6 = vand.u32 %v5309_v0, %v6966_v4  ;;  %v6974_v7 = vand.u32 %v5536_v3, %v6966_v4  ;;  %v6977_v8 = vand.u32 %v6966_v4, %v346_v5  ;;  %v6983_v10 = vand.u32 %v5601_v9, %v6966_v4  ;;  %v5666_v26 = vld [vmem:[%s8904_s1 + $0xc] sm:$0x3]  ;;  %v5390_v31 = vld [vmem:[%s8904_s1 + $0x4] sm:$0x3]  ;;  %s5916_s24 = sshll.u32 %s6865_s18, 11 }
  0x1a   : > { %s6634_s12 = smul.u32 576, %s287_s7  ;;  %vm364_vm3 = vsmask.f32 7440  ;;  %v7022_v42 = vand.u32 %v5666_v26, %v6966_v4  ;;  %v7025_v46 = vand.u32 %v5390_v31, %v6966_v4  ;;  %vm1357_vm6 = vcmask 1042432   ;;  %s8845_s5 = scalar_lea.hbm %s8907_s4, %s5916_s24 }
  0x1b   : > { %8926 = vst [vmem:[#allocation5_spill] sm:$0xff] %v6974_v7  ;;  %6070 = vmatprep.subr.bf16.mxu1 %v854_v6  ;;  %6206 = vmatprep.subr.bf16.mxu0 %v6974_v7  ;;  %vm7016_vm5 = vmor %vm363_vm2, %vm364_vm3  ;;  %vm1358_vm7 = vcmask 1046532   ;;  %vm5114_vm9 = vcmask 519168   ;;  %s6876_s7 = smov [#allocation2]  }
  0x1c   : > { %6071 = vmatpush3.bf16.msra.mxu1 %v854_v6  ;;  %6207 = vmatpush3.bf16.msra.mxu0 %v6974_v7  ;;  %s6990_s21 = scalar_lea.vmem %s8903_s0, %s6634_s12  ;;  %vm7237_vm8 = vmor %vm1357_vm6, %vm1358_vm7  ;;  %s282_s12 = sand.u32 1, %s6857_s16  }
  0x1d   : > { %v314_v11 = vld [vmem:[%s6990_s21] sm:$0xf]  ;;  %v315_v12 = vld [vmem:[%s6990_s21 + $0x4] sm:$0xf]  ;;  %v347_v13 = vld [vmem:[%s6990_s21 + $0x8] sm:$0x1]  ;;  %6104 = vmatprep.subr.bf16.mxu1 %v6977_v8  ;;  %6240 = vmatprep.subr.bf16.mxu0 %v6983_v10 }
  0x1e   : > { %v367_v14 = vshrl.u32 %v314_v11, 16  ;;  %v370_v15 = vshll.u32 %v314_v11, 16  ;;  %v376_v16 = vshll.u32 %v315_v12, 16  ;;  %v380_v17 = vshrl.u32 %v315_v12, 16  ;;  %v5488_v18 = vld [vmem:[%s6990_s21 + $0xc0] sm:$0xf] }
  0x1f   : > { %v386_v19 = vshll.u32 %v347_v13, 16  ;;  %v6999_v20 = vld [vmem:[%s6990_s21 + $0xc4] sm:$0xf]  ;;  %v7002_v21 = vld [vmem:[%s6990_s21 + $0xc8] sm:$0x1]  ;;  %v2174_v28 = vshrl.u32 %v5488_v18, 16 }
  0x20   : > { %v369_v22 = vrot.slane %v367_v14, 4  ;;  %v372_v23 = vrot.slane %v370_v15, 5  ;;  %v378_v24 = vrot.slane %v376_v16, 5  ;;  %v382_v25 = vrot.slane %v380_v17, 4  ;;  %v316_v36 = vld [vmem:[%s6990_s21 + $0xc] sm:$0xf] }
  0x21   : > { %v388_v27 = vrot.slane %v386_v19, 5  ;;  %v2177_v29 = vshll.u32 %v5488_v18, 16  ;;  %v2183_v30 = vshll.u32 %v6999_v20, 16  ;;  %v2187_v34 = vshrl.u32 %v6999_v20, 16  ;;  %v317_v41 = vld [vmem:[%s6990_s21 + $0x10] sm:$0xf] }
  0x22   : > { %v373_v32 = vor.u32 %v372_v23, %v369_v22  ;;  %v383_v33 = vor.u32 %v382_v25, %v378_v24  ;;  %v2193_v35 = vshll.u32 %v7002_v21, 16  ;;  %v2176_v38 = vrot.slane %v2174_v28, 4  ;;  %v348_v49 = vld [vmem:[%s6990_s21 + $0x14] sm:$0x1]  ;;  %v5491_v60 = vld [vmem:[%s6990_s21 + $0xcc] sm:$0xf] }
  0x23   : > { %v2179_v39 = vrot.slane %v2177_v29, 5  ;;  %v2185_v40 = vrot.slane %v2183_v30, 5  ;;  %v2189_v45 = vrot.slane %v2187_v34, 4  ;;  %v391_v50 = vshrl.u32 %v316_v36, 16  ;;  %v7034_v1 = vld [vmem:[%s6990_s21 + $0xd0] sm:$0xf] }
  0x24   : > { %v374_v43 = vrot.slane %v373_v32, 4  ;;  %v384_v44 = vrot.slane %v383_v33, 4  ;;  %v2195_v48 = vrot.slane %v2193_v35, 5  ;;  %v394_v51 = vshll.u32 %v316_v36, 16  ;;  %v7042_v9 = vld [vmem:[%s6990_s21 + $0xd4] sm:$0x1] }
  0x25   : > { %v2180_v47 = vor.u32 %v2179_v39, %v2176_v38  ;;  %v2190_v54 = vor.u32 %v2189_v45, %v2185_v40  ;;  %v400_v55 = vshll.u32 %v317_v41, 16  ;;  %v393_v58 = vrot.slane %v391_v50, 4  ;;  %v318_v25 = vld [vmem:[%s6990_s21 + $0x18] sm:$0xf]  ;;  %v319_v30 = vld [vmem:[%s6990_s21 + $0x1c] sm:$0xf] }
  0x26   : > { %v379_v52 = vsel %vm7016_vm5, %v374_v43, %v378_v24  ;;  %v389_v53 = vsel %vm7016_vm5, %v384_v44, %v388_v27  ;;  %v396_v59 = vrot.slane %v394_v51, 5  ;;  %v404_v63 = vshrl.u32 %v317_v41, 16  ;;  %v349_v38 = vld [vmem:[%s6990_s21 + $0x20] sm:$0x1]  ;;  %s8857_s18 = scalar_lea.sflag [#allocation3], %s282_s12  ;;  %s6799_s8 = sshll.u32 %s6876_s7, 4  ;;  %s6800_s8 = int_to_ptr.vmem [resolvable:$false] %s6799_s8 }
  0x27   : > { %v5310_v56 = vcombine.low %v379_v52, %v389_v53  ;;  %v2181_v57 = vrot.slane %v2180_v47, 4  ;;  %v2191_v61 = vrot.slane %v2190_v54, 4  ;;  %v402_v62 = vrot.slane %v400_v55, 5  ;;  %v5494_v47 = vld [vmem:[%s6990_s21 + $0xd8] sm:$0xf]  ;;  %s6801_s9 = scalar_lea.vmem %s6800_s8, 4096 }
  0x28   : > { %v410_v0 = vshll.u32 %v348_v49, 16  ;;  %v2917_v3 = vrot.slane %v6999_v20, 5  ;;  %v2920_v5 = vrot.slane %v7002_v21, 5  ;;  %v397_v6 = vor.u32 %v396_v59, %v393_v58  ;;  %v7065_v52 = vld [vmem:[%s6990_s21 + $0xdc] sm:$0xf] }
  0x29   : > { %6072 = vmatprep.mubr.msk.bf16.mxu1 %vm800_vm4, %v5310_v56  ;;  %v2186_v2 = vsel %vm7016_vm5, %v2181_v57, %v2185_v40  ;;  %v2196_v11 = vsel %vm7016_vm5, %v2191_v61, %v2195_v48  ;;  %v406_v12 = vrot.slane %v404_v63, 4  ;;  %v2198_v14 = vshrl.u32 %v5491_v60, 16  ;;  %v7071_v59 = vld [vmem:[%s6990_s21 + $0xe0] sm:$0x1]  ;;  %v7270_v21 = vld [vmem:[%s6990_s21 + $0x7c] sm:$0xf] }
  0x2a   : > { %v412_v13 = vrot.slane %v410_v0, 5  ;;  %v5537_v15 = vcombine.low %v2186_v2, %v2196_v11  ;;  %v398_v16 = vrot.slane %v397_v6, 4  ;;  %v2201_v17 = vshll.u32 %v5491_v60, 16  ;;  %v320_v6 = vld [vmem:[%s6990_s21 + $0x24] sm:$0xf] }
  0x2b   : > { %v2207_v18 = vshll.u32 %v7034_v1, 16  ;;  %v407_v19 = vor.u32 %v406_v12, %v402_v62  ;;  %v2200_v22 = vrot.slane %v2198_v14, 4  ;;  %v2211_v23 = vshrl.u32 %v7034_v1, 16 }
  0x2c   : > { %v2217_v24 = vshll.u32 %v7042_v9, 16  ;;  %6208 = vmatprep.mubr.msk.bf16.mxu0 %vm800_vm4, %v5537_v15  ;;  %v403_v26 = vsel %vm7016_vm5, %v398_v16, %v402_v62  ;;  %v2203_v27 = vrot.slane %v2201_v17, 5  ;;  %v2924_v29 = vrot.slane %v7034_v1, 5  ;;  %v321_v15 = vld [vmem:[%s6990_s21 + $0x28] sm:$0xf] }
  0x2d   : > { %v2209_v28 = vrot.slane %v2207_v18, 5  ;;  %v408_v31 = vrot.slane %v407_v19, 4  ;;  %v2213_v32 = vrot.slane %v2211_v23, 4  ;;  %v2927_v34 = vrot.slane %v7042_v9, 5  ;;  %v350_v23 = vld [vmem:[%s6990_s21 + $0x2c] sm:$0x1] }
  0x2e   : > { %v2219_v33 = vrot.slane %v2217_v24, 5  ;;  %v2204_v35 = vor.u32 %v2203_v27, %v2200_v22  ;;  %v7058_v36 = vrot.slane %v2924_v29, 4  ;;  %v415_v39 = vshrl.u32 %v318_v25, 16 }
  0x2f   : > { %v418_v40 = vshll.u32 %v318_v25, 16  ;;  %v413_v41 = vsel %vm7016_vm5, %v408_v31, %v412_v13  ;;  %v2214_v43 = vor.u32 %v2213_v32, %v2209_v28  ;;  %v424_v44 = vshll.u32 %v319_v30, 16  ;;  %v5497_v31 = vld [vmem:[%s6990_s21 + $0xe4] sm:$0xf] }
  0x30   : > { %v428_v45 = vshrl.u32 %v319_v30, 16  ;;  %v5311_v48 = vcombine.low %v403_v26, %v413_v41  ;;  %v2205_v49 = vrot.slane %v2204_v35, 4  ;;  %v417_v50 = vrot.slane %v415_v39, 4  ;;  %v7091_v39 = vld [vmem:[%s6990_s21 + $0xe8] sm:$0xf] }
  0x31   : > { %v420_v51 = vrot.slane %v418_v40, 5  ;;  %v2215_v53 = vrot.slane %v2214_v43, 4  ;;  %v426_v54 = vrot.slane %v424_v44, 5  ;;  %v434_v56 = vshll.u32 %v349_v38, 16 }
  0x32   : > { %v430_v55 = vrot.slane %v428_v45, 4  ;;  %6073 = vmatmul.mubr.msk.bf16.vlgmr.msra.gmra.mrb[0].mxu1 %vm800_vm4, %v5311_v48  ;;  %v2210_v57 = vsel %vm7016_vm5, %v2205_v49, %v2209_v28  ;;  %v2222_v60 = vshrl.u32 %v5494_v47, 16  ;;  %v2225_v61 = vshll.u32 %v5494_v47, 16  ;;  %v7098_v47 = vld [vmem:[%s6990_s21 + $0xec] sm:$0x1] }
  0x33   : > { %v421_v58 = vor.u32 %v420_v51, %v417_v50  ;;  %6105 = vmatpush3.bf16.msra.mxu1 %v6977_v8  ;;  %v2220_v62 = vsel %vm7016_vm5, %v2215_v53, %v2219_v33  ;;  %v436_v0 = vrot.slane %v434_v56, 5  ;;  %v2231_v2 = vshll.u32 %v7065_v52, 16 }
  0x34   : > { %v431_v63 = vor.u32 %v430_v55, %v426_v54  ;;  %v5538_v11 = vcombine.low %v2210_v57, %v2220_v62  ;;  %v2224_v13 = vrot.slane %v2222_v60, 4  ;;  %v2227_v14 = vrot.slane %v2225_v61, 5  ;;  %6138 = vmatprep.subr.bf16.mxu1 %v7025_v46  ;;  %v322_v60 = vld [vmem:[%s6990_s21 + $0x30] sm:$0xf] }
  0x35   : > { %v422_v12 = vrot.slane %v421_v58, 4  ;;  %v2233_v17 = vrot.slane %v2231_v2, 5  ;;  %v2235_v8 = vshrl.u32 %v7065_v52, 16  ;;  %v2241_v18 = vshll.u32 %v7071_v59, 16  ;;  %v323_v2 = vld [vmem:[%s6990_s21 + $0x34] sm:$0xf] }
  0x36   : > { %v432_v16 = vrot.slane %v431_v63, 4  ;;  %6209 = vmatmul.mubr.msk.bf16.vlgmr.msra.gmra.mrb[0].mxu0 %vm800_vm4, %v5538_v11  ;;  %v2228_v22 = vor.u32 %v2227_v14, %v2224_v13  ;;  %v439_v24 = vshrl.u32 %v320_v6, 16  ;;  %v442_v25 = vshll.u32 %v320_v6, 16  ;;  %v351_v14 = vld [vmem:[%s6990_s21 + $0x38] sm:$0x1] }
  0x37   : > { %v427_v19 = vsel %vm7016_vm5, %v422_v12, %v426_v54  ;;  %6241 = vmatpush3.bf16.msra.mxu0 %v6983_v10  ;;  %v2237_v27 = vrot.slane %v2235_v8, 4  ;;  %v2243_v28 = vrot.slane %v2241_v18, 5  ;;  %v448_v30 = vshll.u32 %v321_v15, 16 }
  0x38   : > { %v437_v26 = vsel %vm7016_vm5, %v432_v16, %v436_v0  ;;  %v2229_v33 = vrot.slane %v2228_v22, 4  ;;  %v441_v35 = vrot.slane %v439_v24, 4  ;;  %v444_v38 = vrot.slane %v442_v25, 5  ;;  %6274 = vmatprep.subr.bf16.mxu0 %v7022_v42  ;;  %v5500_v24 = vld [vmem:[%s6990_s21 + $0xf0] sm:$0xf] }
  0x39   : > { %v5312_v32 = vcombine.low %v427_v19, %v437_v26  ;;  %v2238_v40 = vor.u32 %v2237_v27, %v2233_v17  ;;  %v450_v41 = vrot.slane %v448_v30, 5  ;;  %v452_v43 = vshrl.u32 %v321_v15, 16  ;;  %v7115_v30 = vld [vmem:[%s6990_s21 + $0xf4] sm:$0xf] }
  0x3a   : > { %v458_v10 = vshll.u32 %v350_v23, 16  ;;  %v2234_v44 = vsel %vm7016_vm5, %v2229_v33, %v2233_v17  ;;  %v445_v45 = vor.u32 %v444_v38, %v441_v35  ;;  %v2246_v48 = vshrl.u32 %v5497_v31, 16 }
  0x3b   : > { %6076 = vmatprep.mubr.msk.bf16.mxu1 %vm800_vm4, %v5312_v32  ;;  %v2249_v49 = vshll.u32 %v5497_v31, 16  ;;  %v2239_v50 = vrot.slane %v2238_v40, 4  ;;  %v454_v51 = vrot.slane %v452_v43, 4  ;;  %v2255_v54 = vshll.u32 %v7091_v39, 16  ;;  %v7120_v43 = vld [vmem:[%s6990_s21 + $0xf8] sm:$0x1] }
  0x3c   : > { %v460_v53 = vrot.slane %v458_v10, 5  ;;  %v446_v55 = vrot.slane %v445_v45, 4  ;;  %v2248_v56 = vrot.slane %v2246_v48, 4  ;;  %v2259_v58 = vshrl.u32 %v7091_v39, 16 }
  0x3d   : > { %v2251_v57 = vrot.slane %v2249_v49, 5  ;;  %v2244_v61 = vsel %vm7016_vm5, %v2239_v50, %v2243_v28  ;;  %v455_v62 = vor.u32 %v454_v51, %v450_v41  ;;  %v2257_v63 = vrot.slane %v2255_v54, 5  ;;  %v324_v50 = vld [vmem:[%s6990_s21 + $0x3c] sm:$0xf] }
  0x3e   : > { %v2265_v0 = vshll.u32 %v7098_v47, 16  ;;  %v5539_v6 = vcombine.low %v2234_v44, %v2244_v61  ;;  %v451_v11 = vsel %vm7016_vm5, %v446_v55, %v450_v41  ;;  %v2261_v13 = vrot.slane %v2259_v58, 4 }
  0x3f   : > { %v2252_v12 = vor.u32 %v2251_v57, %v2248_v56  ;;  %v456_v15 = vrot.slane %v455_v62, 4  ;;  %v463_v17 = vshrl.u32 %v322_v60, 16  ;;  %v466_v8 = vshll.u32 %v322_v60, 16  ;;  %v325_v56 = vld [vmem:[%s6990_s21 + $0x40] sm:$0xf] }
  0x40   : > { %v2267_v16 = vrot.slane %v2265_v0, 5  ;;  %6212 = vmatprep.mubr.msk.bf16.mxu0 %vm800_vm4, %v5539_v6  ;;  %v2262_v19 = vor.u32 %v2261_v13, %v2257_v63  ;;  %v472_v22 = vshll.u32 %v323_v2, 16  ;;  %v476_v23 = vshrl.u32 %v323_v2, 16  ;;  %v352_v13 = vld [vmem:[%s6990_s21 + $0x44] sm:$0x1] }
  0x41   : > { %v2253_v18 = vrot.slane %v2252_v12, 4  ;;  %v461_v25 = vsel %vm7016_vm5, %v456_v15, %v460_v53  ;;  %v465_v26 = vrot.slane %v463_v17, 4  ;;  %v468_v27 = vrot.slane %v466_v8, 5  ;;  %v5503_v15 = vld [vmem:[%s6990_s21 + $0xfc] sm:$0xf] }
  0x42   : > { %v482_v28 = vshll.u32 %v351_v14, 16  ;;  %v5313_v31 = vcombine.low %v451_v11, %v461_v25  ;;  %v2263_v33 = vrot.slane %v2262_v19, 4  ;;  %v474_v35 = vrot.slane %v472_v22, 5  ;;  %v7138_v19 = vld [vmem:[%s6990_s21 + $0x100] sm:$0xf] }
  0x43   : > { %v2258_v32 = vsel %vm7016_vm5, %v2253_v18, %v2257_v63  ;;  %v469_v38 = vor.u32 %v468_v27, %v465_v26  ;;  %v478_v40 = vrot.slane %v476_v23, 4  ;;  %v2270_v10 = vshrl.u32 %v5500_v24, 16 }
  0x44   : > { %v484_v41 = vrot.slane %v482_v28, 5  ;;  %6077 = vmatmul.mubr.msk.bf16.gmra.mrb[4].mxu1 %vm800_vm4, %v5313_v31  ;;  %v2268_v44 = vsel %vm7016_vm5, %v2263_v33, %v2267_v16  ;;  %v2273_v45 = vshll.u32 %v5500_v24, 16  ;;  %v2279_v48 = vshll.u32 %v7115_v30, 16 }
  0x45   : > { %v2283_v49 = vshrl.u32 %v7115_v30, 16  ;;  %v5540_v51 = vcombine.low %v2258_v32, %v2268_v44  ;;  %v470_v53 = vrot.slane %v469_v38, 4  ;;  %v479_v54 = vor.u32 %v478_v40, %v474_v35 }
  0x46   : > { %v2272_v55 = vrot.slane %v2270_v10, 4  ;;  %v2275_v57 = vrot.slane %v2273_v45, 5  ;;  %v2281_v58 = vrot.slane %v2279_v48, 5  ;;  %v2289_v61 = vshll.u32 %v7120_v43, 16 }
  0x47   : > { %v2285_v60 = vrot.slane %v2283_v49, 4  ;;  %6213 = vmatmul.mubr.msk.bf16.gmra.mrb[4].mxu0 %vm800_vm4, %v5540_v51  ;;  %v475_v62 = vsel %vm7016_vm5, %v470_v53, %v474_v35  ;;  %v480_v63 = vrot.slane %v479_v54, 4  ;;  %v487_v0 = vshrl.u32 %v324_v50, 16  ;;  %v7146_v35 = vld [vmem:[%s6990_s21 + $0x104] sm:$0x1] }
  0x48   : > { %v490_v2 = vshll.u32 %v324_v50, 16  ;;  %v2276_v6 = vor.u32 %v2275_v57, %v2272_v55  ;;  %v2291_v12 = vrot.slane %v2289_v61, 5  ;;  %v496_v14 = vshll.u32 %v325_v56, 16  ;;  %v7153_v49 = vld [vmem:[%s6990_s21 + $0x4c] sm:$0xf] }
  0x49   : > { %v2286_v11 = vor.u32 %v2285_v60, %v2281_v58  ;;  %v485_v16 = vsel %vm7016_vm5, %v480_v63, %v484_v41  ;;  %v489_v17 = vrot.slane %v487_v0, 4  ;;  %v500_v18 = vshrl.u32 %v325_v56, 16  ;;  %v7150_v41 = vld [vmem:[%s6990_s21 + $0x48] sm:$0xf] }
  0x4a   : > { %v492_v8 = vrot.slane %v490_v2, 5  ;;  %v5314_v22 = vcombine.low %v475_v62, %v485_v16  ;;  %v2277_v23 = vrot.slane %v2276_v6, 4  ;;  %v498_v25 = vrot.slane %v496_v14, 5  ;;  %v5506_v2 = vld [vmem:[%s6990_s21 + $0x108] sm:$0xf] }
  0x4b   : > { %v2287_v24 = vrot.slane %v2286_v11, 4  ;;  %v502_v27 = vrot.slane %v500_v18, 4  ;;  %v506_v28 = vshll.u32 %v352_v13, 16  ;;  %v2294_v31 = vshrl.u32 %v5503_v15, 16 }
  0x4c   : > { %v493_v26 = vor.u32 %v492_v8, %v489_v17  ;;  %6080 = vmatprep.mubr.msk.bf16.mxu1 %vm800_vm4, %v5314_v22  ;;  %v2282_v32 = vsel %vm7016_vm5, %v2277_v23, %v2281_v58  ;;  %v2297_v38 = vshll.u32 %v5503_v15, 16  ;;  %v2303_v40 = vshll.u32 %v7138_v19, 16  ;;  %v353_v58 = vld [vmem:[%s6990_s21 + $0x50] sm:$0x1]  ;;  %v7169_v8 = vld [vmem:[%s6990_s21 + $0x10c] sm:$0xf] }
  0x4d   : > { %v2292_v33 = vsel %vm7016_vm5, %v2287_v24, %v2291_v12  ;;  %v503_v45 = vor.u32 %v502_v27, %v498_v25  ;;  %v508_v48 = vrot.slane %v506_v28, 5  ;;  %v2296_v50 = vrot.slane %v2294_v31, 4  ;;  %v7175_v28 = vld [vmem:[%s6990_s21 + $0x110] sm:$0x1] }
  0x4e   : > { %v5541_v10 = vcombine.low %v2282_v32, %v2292_v33  ;;  %v494_v44 = vrot.slane %v493_v26, 4  ;;  %v2299_v51 = vrot.slane %v2297_v38, 5  ;;  %v2305_v53 = vrot.slane %v2303_v40, 5 }
  0x4f   : > { %v2307_v54 = vshrl.u32 %v7138_v19, 16  ;;  %v504_v56 = vrot.slane %v503_v45, 4  ;;  %v2313_v57 = vshll.u32 %v7146_v35, 16  ;;  %v511_v60 = vshrl.u32 %v7150_v41, 16 }
  0x50   : > { %6216 = vmatprep.mubr.msk.bf16.mxu0 %vm800_vm4, %v5541_v10  ;;  %v499_v55 = vsel %vm7016_vm5, %v494_v44, %v498_v25  ;;  %v2300_v61 = vor.u32 %v2299_v51, %v2296_v50  ;;  %v514_v63 = vshll.u32 %v7150_v41, 16  ;;  %v520_v0 = vshll.u32 %v7153_v49, 16  ;;  %v7179_v10 = vld [vmem:[%s6990_s21 + $0x54] sm:$0xf]  ;;  %v7185_v51 = vld [vmem:[%s6990_s21 + $0x58] sm:$0xf] }
  0x51   : > { %v2309_v62 = vrot.slane %v2307_v54, 4  ;;  %v509_v6 = vsel %vm7016_vm5, %v504_v56, %v508_v48  ;;  %v2315_v11 = vrot.slane %v2313_v57, 5  ;;  %v513_v12 = vrot.slane %v511_v60, 4 }
  0x52   : > { %v524_v13 = vshrl.u32 %v7153_v49, 16  ;;  %v5315_v14 = vcombine.low %v499_v55, %v509_v6  ;;  %v2301_v15 = vrot.slane %v2300_v61, 4  ;;  %v516_v17 = vrot.slane %v514_v63, 5  ;;  %v354_v61 = vld [vmem:[%s6990_s21 + $0x5c] sm:$0x1] }
  0x53   : > { %v2310_v16 = vor.u32 %v2309_v62, %v2305_v53  ;;  %v522_v18 = vrot.slane %v520_v0, 5  ;;  %v530_v23 = vshll.u32 %v353_v58, 16  ;;  %v2318_v24 = vshrl.u32 %v5506_v2, 16 }
  0x54   : > { %v526_v22 = vrot.slane %v524_v13, 4  ;;  %6081 = vmatmul.mubr.msk.bf16.gmra.mrb[8].mxu1 %vm800_vm4, %v5315_v14  ;;  %v2306_v25 = vsel %vm7016_vm5, %v2301_v15, %v2305_v53  ;;  %v517_v27 = vor.u32 %v516_v17, %v513_v12  ;;  %v2321_v31 = vshll.u32 %v5506_v2, 16 }
  0x55   : > { %v2311_v26 = vrot.slane %v2310_v16, 4  ;;  %v532_v33 = vrot.slane %v530_v23, 5  ;;  %v2320_v38 = vrot.slane %v2318_v24, 4  ;;  %v2327_v40 = vshll.u32 %v7169_v8, 16  ;;  %v7199_v16 = vld [vmem:[%s6990_s21 + $0x118] sm:$0xf] }
  0x56   : > { %v527_v32 = vor.u32 %v526_v22, %v522_v18  ;;  %v518_v45 = vrot.slane %v517_v27, 4  ;;  %v2323_v48 = vrot.slane %v2321_v31, 5  ;;  %v2331_v50 = vshrl.u32 %v7169_v8, 16 }
  0x57   : > { %v2316_v44 = vsel %vm7016_vm5, %v2311_v26, %v2315_v11  ;;  %v2329_v55 = vrot.slane %v2327_v40, 5  ;;  %v2337_v56 = vshll.u32 %v7175_v28, 16  ;;  %v535_v62 = vshrl.u32 %v7179_v10, 16  ;;  %v5509_v11 = vld [vmem:[%s6990_s21 + $0x114] sm:$0xf] }
  0x58   : > { %v5542_v53 = vcombine.low %v2306_v25, %v2316_v44  ;;  %v528_v54 = vrot.slane %v527_v32, 4  ;;  %v523_v57 = vsel %vm7016_vm5, %v518_v45, %v522_v18  ;;  %v2324_v58 = vor.u32 %v2323_v48, %v2320_v38  ;;  %v7206_v26 = vld [vmem:[%s6990_s21 + $0x11c] sm:$0x1]  ;;  %v7210_v44 = vld [vmem:[%s6990_s21 + $0x60] sm:$0xf] }
  0x59   : > { %v2333_v60 = vrot.slane %v2331_v50, 4  ;;  %v2339_v0 = vrot.slane %v2337_v56, 5  ;;  %v538_v2 = vshll.u32 %v7179_v10, 16  ;;  %v544_v6 = vshll.u32 %v7185_v51, 16 }
  0x5a   : > { %6217 = vmatmul.mubr.msk.bf16.gmra.mrb[8].mxu0 %vm800_vm4, %v5542_v53  ;;  %v533_v63 = vsel %vm7016_vm5, %v528_v54, %v532_v33  ;;  %v2325_v13 = vrot.slane %v2324_v58, 4  ;;  %v537_v15 = vrot.slane %v535_v62, 4  ;;  %v548_v22 = vshrl.u32 %v7185_v51, 16  ;;  %v7216_v54 = vld [vmem:[%s6990_s21 + $0x64] sm:$0xf] }
  0x5b   : > { %v5316_v12 = vcombine.low %v523_v57, %v533_v63  ;;  %v2334_v14 = vor.u32 %v2333_v60, %v2329_v55  ;;  %v540_v17 = vrot.slane %v538_v2, 5  ;;  %v546_v18 = vrot.slane %v544_v6, 5  ;;  %v355_v6 = vld [vmem:[%s6990_s21 + $0x68] sm:$0x1] }
  0x5c   : > { %v554_v23 = vshll.u32 %v354_v61, 16  ;;  %v2330_v24 = vsel %vm7016_vm5, %v2325_v13, %v2329_v55  ;;  %v2342_v27 = vshrl.u32 %v5509_v11, 16  ;;  %v2345_v31 = vshll.u32 %v5509_v11, 16 }
  0x5d   : > { %6084 = vmatprep.mubr.msk.bf16.mxu1 %vm800_vm4, %v5316_v12  ;;  %v2335_v25 = vrot.slane %v2334_v14, 4  ;;  %v541_v32 = vor.u32 %v540_v17, %v537_v15  ;;  %v550_v33 = vrot.slane %v548_v22, 4  ;;  %v2351_v40 = vshll.u32 %v7199_v16, 16  ;;  %v5569_v22 = vld [vmem:[%s6990_s21 + $0xc0] sm:$0xe] }
  0x5e   : > { %v556_v38 = vrot.slane %v554_v23, 5  ;;  %v2344_v48 = vrot.slane %v2342_v27, 4  ;;  %v2347_v50 = vrot.slane %v2345_v31, 5  ;;  %v2355_v53 = vshrl.u32 %v7199_v16, 16 }
  0x5f   : > { %v2340_v45 = vsel %vm7016_vm5, %v2335_v25, %v2339_v0  ;;  %v542_v56 = vrot.slane %v541_v32, 4  ;;  %v551_v57 = vor.u32 %v550_v33, %v546_v18  ;;  %v2353_v58 = vrot.slane %v2351_v40, 5 }
  0x60   : > { %v5543_v55 = vcombine.low %v2330_v24, %v2340_v45  ;;  %v2348_v60 = vor.u32 %v2347_v50, %v2344_v48  ;;  %v2357_v61 = vrot.slane %v2355_v53, 4  ;;  %v2361_v62 = vshll.u32 %v7206_v26, 16 }
  0x61   : > { %v559_v63 = vshrl.u32 %v7210_v44, 16  ;;  %v547_v0 = vsel %vm7016_vm5, %v542_v56, %v546_v18  ;;  %v552_v2 = vrot.slane %v551_v57, 4  ;;  %v562_v11 = vshll.u32 %v7210_v44, 16  ;;  %v7231_v18 = vld [vmem:[%s6990_s21 + $0x6c] sm:$0xf] }
  0x62   : > { %6220 = vmatprep.mubr.msk.bf16.mxu0 %vm800_vm4, %v5543_v55  ;;  %v568_v12 = vshll.u32 %v7216_v54, 16  ;;  %v2349_v13 = vrot.slane %v2348_v60, 4  ;;  %v2358_v14 = vor.u32 %v2357_v61, %v2353_v58  ;;  %v2363_v15 = vrot.slane %v2361_v62, 5  ;;  %v7244_v55 = vld [vmem:[%s6990_s21 + $0x70] sm:$0xf] }
  0x63   : > { %v561_v17 = vrot.slane %v559_v63, 4  ;;  %v557_v23 = vsel %vm7016_vm5, %v552_v2, %v556_v38  ;;  %v564_v24 = vrot.slane %v562_v11, 5  ;;  %v572_v27 = vshrl.u32 %v7216_v54, 16  ;;  %v356_v2 = vld [vmem:[%s6990_s21 + $0x74] sm:$0x1] }
  0x64   : > { %v570_v25 = vrot.slane %v568_v12, 5  ;;  %v5317_v31 = vcombine.low %v547_v0, %v557_v23  ;;  %v2354_v32 = vsel %vm7016_vm5, %v2349_v13, %v2353_v58  ;;  %v2359_v33 = vrot.slane %v2358_v14, 4  ;;  %v357_v23 = vld [vmem:[%s6990_s21 + $0x80] sm:$0x1] }
  0x65   : > { %v578_v40 = vshll.u32 %v355_v6, 16  ;;  %v565_v38 = vor.u32 %v564_v24, %v561_v17  ;;  %v574_v48 = vrot.slane %v572_v27, 4  ;;  %v5585_v50 = vrot.slane %v5569_v22, 9  ;;  %v5570_v6 = vld [vmem:[%s6990_s21 + $0xcc] sm:$0xe] }
  0x66   : > { %v2919_v53 = vrot.slane %v2917_v3, 4  ;;  %6085 = vmatmul.mubr.msk.bf16.gmra.mrb[12].mxu1 %vm800_vm4, %v5317_v31  ;;  %v2364_v56 = vsel %vm7016_vm5, %v2359_v33, %v2363_v15  ;;  %v583_v58 = vshrl.u32 %v7231_v18, 16  ;;  %v586_v60 = vshll.u32 %v7231_v18, 16  ;;  %v7263_v15 = vld [vmem:[%s6990_s21 + $0x78] sm:$0xf] }
  0x67   : > { %v580_v57 = vrot.slane %v578_v40, 5  ;;  %v5544_v61 = vcombine.low %v2354_v32, %v2364_v56  ;;  %v566_v62 = vrot.slane %v565_v38, 4  ;;  %v575_v63 = vor.u32 %v574_v48, %v570_v25  ;;  %v5571_v38 = vld [vmem:[%s6990_s21 + $0xd8] sm:$0xe] }
  0x68   : > { %v2918_v0 = vsel %vm7237_vm8, %v5585_v50, %v2917_v3  ;;  %v2921_v11 = vsel %vm7237_vm8, %v2919_v53, %v2920_v5  ;;  %v585_v12 = vrot.slane %v583_v58, 4  ;;  %v588_v13 = vrot.slane %v586_v60, 5 }
  0x69   : > { %v592_v14 = vshll.u32 %v7244_v55, 16  ;;  %6221 = vmatmul.mubr.msk.bf16.gmra.mrb[12].mxu0 %vm800_vm4, %v5544_v61  ;;  %v571_v20 = vsel %vm7016_vm5, %v566_v62, %v570_v25  ;;  %v576_v3 = vrot.slane %v575_v63, 4  ;;  %v5602_v17 = vcombine.low %v2918_v0, %v2921_v11  ;;  %v7289_v61 = vld [vmem:[%s6990_s21 + $0x84] sm:$0xf] }
  0x6a   : > { %v596_v22 = vshrl.u32 %v7244_v55, 16  ;;  %v589_v5 = vor.u32 %v588_v13, %v585_v12  ;;  %v602_v27 = vshll.u32 %v356_v2, 16  ;;  %v5586_v31 = vrot.slane %v5570_v6, 9 }
  0x6b   : > { %v594_v24 = vrot.slane %v592_v14, 5  ;;  %v581_v32 = vsel %vm7016_vm5, %v576_v3, %v580_v57  ;;  %6242 = vmatprep.mubr.msk.bf16.mxu0 %vm800_vm4, %v5602_v17  ;;  %v2928_v25 = vsel %vm7237_vm8, %v7058_v36, %v2927_v34  ;;  %v607_v40 = vshrl.u32 %v7263_v15, 16 }
  0x6c   : > { %v598_v33 = vrot.slane %v596_v22, 4  ;;  %v5318_v48 = vcombine.low %v571_v20, %v581_v32  ;;  %v590_v50 = vrot.slane %v589_v5, 4  ;;  %v604_v53 = vrot.slane %v602_v27, 5  ;;  %v358_v20 = vld [vmem:[%s6990_s21 + $0x8c] sm:$0x1] }
  0x6d   : > { %v2925_v56 = vsel %vm7237_vm8, %v5586_v31, %v2924_v29  ;;  %v609_v60 = vrot.slane %v607_v40, 4  ;;  %v610_v9 = vshll.u32 %v7263_v15, 16  ;;  %v616_v36 = vshll.u32 %v7270_v21, 16  ;;  %v7297_v29 = vld [vmem:[%s6990_s21 + $0x88] sm:$0xf] }
  0x6e   : > { %v599_v57 = vor.u32 %v598_v33, %v594_v24  ;;  %v5603_v58 = vcombine.low %v2925_v56, %v2928_v25  ;;  %6088 = vmatprep.mubr.msk.bf16.mxu1 %vm800_vm4, %v5318_v48  ;;  %v595_v34 = vsel %vm7016_vm5, %v590_v50, %v594_v24  ;;  %v620_v1 = vshrl.u32 %v7270_v21, 16  ;;  %v5572_v5 = vld [vmem:[%s6990_s21 + $0xe4] sm:$0xe]  ;;  %v7316_v40 = vld [vmem:[%s6990_s21 + $0x90] sm:$0xf] }
  0x6f   : > { %v626_v62 = vshll.u32 %v357_v23, 16  ;;  %v612_v0 = vrot.slane %v610_v9, 5  ;;  %v5587_v2 = vrot.slane %v5571_v38, 9  ;;  %v2931_v6 = vrot.slane %v7065_v52, 5 }
  0x70   : > { %v600_v63 = vrot.slane %v599_v57, 4  ;;  %v618_v11 = vrot.slane %v616_v36, 5  ;;  %v622_v12 = vrot.slane %v620_v1, 4  ;;  %v2934_v14 = vrot.slane %v7071_v59, 5  ;;  %v7326_v1 = vld [vmem:[%s6990_s21 + $0x94] sm:$0xf] }
  0x71   : > { %v628_v13 = vrot.slane %v626_v62, 5  ;;  %6243 = vmatmul.mubr.msk.bf16.vlgmr.msra.gmra.mrb[0].mxu0 %vm800_vm4, %v5603_v58  ;;  %v613_v17 = vor.u32 %v612_v0, %v609_v60  ;;  %v2932_v22 = vsel %vm7237_vm8, %v5587_v2, %v2931_v6  ;;  %v2933_v23 = vrot.slane %v2931_v6, 4  ;;  %v359_v62 = vld [vmem:[%s6990_s21 + $0x98] sm:$0x1] }
  0x72   : > { %v605_v3 = vsel %vm7016_vm5, %v600_v63, %v604_v53  ;;  %6275 = vmatpush3.bf16.msra.mxu0 %v7022_v42  ;;  %v623_v52 = vor.u32 %v622_v12, %v618_v11  ;;  %v631_v27 = vshrl.u32 %v7289_v61, 16  ;;  %v634_v59 = vshll.u32 %v7289_v61, 16 }
  0x73   : > { %v5319_v24 = vcombine.low %v595_v34, %v605_v3  ;;  %v614_v31 = vrot.slane %v613_v17, 4  ;;  %v2935_v32 = vsel %vm7237_vm8, %v2933_v23, %v2934_v14  ;;  %v640_v33 = vshll.u32 %v7297_v29, 16  ;;  %v7335_v3 = vld [vmem:[%s6990_s21 + $0x9c] sm:$0xf] }
  0x74   : > { %v644_v25 = vshrl.u32 %v7297_v29, 16  ;;  %v624_v42 = vrot.slane %v623_v52, 4  ;;  %v5604_v38 = vcombine.low %v2932_v22, %v2935_v32  ;;  %v633_v48 = vrot.slane %v631_v27, 4  ;;  %v7346_v27 = vld [vmem:[%s6990_s21 + $0xa0] sm:$0xf] }
  0x75   : > { %6089 = vmatmul.mubr.msk.bf16.gmra.mrb[16].mxu1 %vm800_vm4, %v5319_v24  ;;  %v636_v50 = vrot.slane %v634_v59, 5  ;;  %v619_v53 = vsel %vm7016_vm5, %v614_v31, %v618_v11  ;;  %v642_v56 = vrot.slane %v640_v33, 5  ;;  %v650_v58 = vshll.u32 %v358_v20, 16  ;;  %v5573_v11 = vld [vmem:[%s6990_s21 + $0xf0] sm:$0xe] }
  0x76   : > { %v646_v57 = vrot.slane %v644_v25, 4  ;;  %v629_v60 = vsel %vm7016_vm5, %v624_v42, %v628_v13  ;;  %6246 = vmatprep.mubr.msk.bf16.mxu0 %vm800_vm4, %v5604_v38  ;;  %v5588_v34 = vrot.slane %v5572_v5, 9  ;;  %v2938_v36 = vrot.slane %v7091_v39, 5 }
  0x77   : > { %v637_v9 = vor.u32 %v636_v50, %v633_v48  ;;  %v5320_v63 = vcombine.low %v619_v53, %v629_v60  ;;  %v652_v2 = vrot.slane %v650_v58, 5  ;;  %v2941_v6 = vrot.slane %v7098_v47, 5  ;;  %v360_v50 = vld [vmem:[%s6990_s21 + $0xa4] sm:$0x1]  ;;  %v5574_v53 = vld [vmem:[%s6990_s21 + $0xfc] sm:$0xe] }
  0x78   : > { %v647_v0 = vor.u32 %v646_v57, %v642_v56  ;;  %v2939_v13 = vsel %vm7237_vm8, %v5588_v34, %v2938_v36  ;;  %v2940_v14 = vrot.slane %v2938_v36, 4  ;;  %v655_v20 = vshrl.u32 %v7316_v40, 16 }
  0x79   : > { %v638_v12 = vrot.slane %v637_v9, 4  ;;  %6092 = vmatprep.mubr.msk.bf16.mxu1 %vm800_vm4, %v5320_v63  ;;  %v658_v17 = vshll.u32 %v7316_v40, 16  ;;  %v664_v22 = vshll.u32 %v7326_v1, 16  ;;  %v668_v47 = vshrl.u32 %v7326_v1, 16 }
  0x7a   : > { %v648_v39 = vrot.slane %v647_v0, 4  ;;  %v2942_v5 = vsel %vm7237_vm8, %v2940_v14, %v2941_v6  ;;  %v657_v24 = vrot.slane %v655_v20, 4  ;;  %v674_v52 = vshll.u32 %v359_v62, 16 }
  0x7b   : > { %v643_v23 = vsel %vm7016_vm5, %v638_v12, %v642_v56  ;;  %v5605_v31 = vcombine.low %v2939_v13, %v2942_v5  ;;  %v660_v32 = vrot.slane %v658_v17, 5  ;;  %v666_v33 = vrot.slane %v664_v22, 5  ;;  %v7367_v17 = vld [vmem:[%s6990_s21 + $0xa8] sm:$0xf] }
  0x7c   : > { %v653_v59 = vsel %vm7016_vm5, %v648_v39, %v652_v2  ;;  %v670_v42 = vrot.slane %v668_v47, 4  ;;  %v676_v38 = vrot.slane %v674_v52, 5  ;;  %v5589_v48 = vrot.slane %v5573_v11, 9 }
  0x7d   : > { %v5321_v25 = vcombine.low %v643_v23, %v653_v59  ;;  %6247 = vmatmul.mubr.msk.bf16.gmra.mrb[4].mxu0 %vm800_vm4, %v5605_v31  ;;  %v661_v56 = vor.u32 %v660_v32, %v657_v24  ;;  %v2945_v57 = vrot.slane %v7115_v30, 5  ;;  %v2948_v58 = vrot.slane %v7120_v43, 5  ;;  %v7372_v24 = vld [vmem:[%s6990_s21 + $0xac] sm:$0xf] }
  0x7e   : > { %v679_v60 = vshrl.u32 %v7335_v3, 16  ;;  %v671_v9 = vor.u32 %v670_v42, %v666_v33  ;;  %v682_v34 = vshll.u32 %v7335_v3, 16  ;;  %v688_v36 = vshll.u32 %v7346_v27, 16 }
  0x7f   : > { %6093 = vmatmul.mubr.msk.bf16.gmra.mrb[20].mxu1 %vm800_vm4, %v5321_v25  ;;  %v692_v62 = vshrl.u32 %v7346_v27, 16  ;;  %v662_v63 = vrot.slane %v661_v56, 4  ;;  %v2946_v0 = vsel %vm7237_vm8, %v5589_v48, %v2945_v57  ;;  %v2947_v30 = vrot.slane %v2945_v57, 4  ;;  %v5575_v25 = vld [vmem:[%s6990_s21 + $0x108] sm:$0xe] }
  0x80   : > { %v681_v2 = vrot.slane %v679_v60, 4  ;;  %v672_v43 = vrot.slane %v671_v9, 4  ;;  %v684_v6 = vrot.slane %v682_v34, 5  ;;  %v690_v11 = vrot.slane %v688_v36, 5  ;;  %v7387_v57 = vld [vmem:[%s6990_s21 + $0xb4] sm:$0xf] }
  0x81   : > { %v694_v12 = vrot.slane %v692_v62, 4  ;;  %v667_v13 = vsel %vm7016_vm5, %v662_v63, %v666_v33  ;;  %v2949_v14 = vsel %vm7237_vm8, %v2947_v30, %v2948_v58  ;;  %v698_v20 = vshll.u32 %v360_v50, 16  ;;  %v361_v33 = vld [vmem:[%s6990_s21 + $0xb0] sm:$0x1]  ;;  %v7396_v30 = vld [vmem:[%s6990_s21 + $0xb8] sm:$0xf] }
  0x82   : > { %v5590_v39 = vrot.slane %v5574_v53, 9  ;;  %v677_v22 = vsel %vm7016_vm5, %v672_v43, %v676_v38  ;;  %v5606_v47 = vcombine.low %v2946_v0, %v2949_v14  ;;  %v685_v23 = vor.u32 %v684_v6, %v681_v2 }
  0x83   : > { %v695_v5 = vor.u32 %v694_v12, %v690_v11  ;;  %v5322_v52 = vcombine.low %v667_v13, %v677_v22  ;;  %v700_v59 = vrot.slane %v698_v20, 5  ;;  %v2952_v31 = vrot.slane %v7138_v19, 5  ;;  %v7402_v20 = vld [vmem:[%s6990_s21 + $0xbc] sm:$0x1] }
  0x84   : > { %v2955_v32 = vrot.slane %v7146_v35, 5  ;;  %6250 = vmatprep.mubr.msk.bf16.mxu0 %vm800_vm4, %v5606_v47  ;;  %v686_v42 = vrot.slane %v685_v23, 4  ;;  %v703_v38 = vshrl.u32 %v7367_v17, 16  ;;  %v706_v50 = vshll.u32 %v7367_v17, 16 }
  0x85   : > { %v696_v48 = vrot.slane %v695_v5, 4  ;;  %6096 = vmatprep.mubr.msk.bf16.mxu1 %vm800_vm4, %v5322_v52  ;;  %v2953_v53 = vsel %vm7237_vm8, %v5590_v39, %v2952_v31  ;;  %v2954_v56 = vrot.slane %v2952_v31, 4  ;;  %v712_v19 = vshll.u32 %v7372_v24, 16  ;;  %v5576_v52 = vld [vmem:[%s6990_s21 + $0x114] sm:$0xe] }
  0x86   : > { %v716_v35 = vshrl.u32 %v7372_v24, 16  ;;  %v691_v58 = vsel %vm7016_vm5, %v686_v42, %v690_v11  ;;  %v705_v9 = vrot.slane %v703_v38, 4  ;;  %v708_v34 = vrot.slane %v706_v50, 5 }
  0x87   : > { %v701_v60 = vsel %vm7016_vm5, %v696_v48, %v700_v59  ;;  %v2956_v62 = vsel %vm7237_vm8, %v2954_v56, %v2955_v32  ;;  %v714_v63 = vrot.slane %v712_v19, 5  ;;  %v722_v6 = vshll.u32 %v361_v33, 16  ;;  %v5577_v48 = vld [vmem:[%s6990_s21 + $0x120] sm:$0xe]  ;;  %v5513_v19 = vld [vmem:[%s6990_s21 + $0x124] sm:$0xf] }
  0x88   : > { %v5323_v36 = vcombine.low %v691_v58, %v701_v60  ;;  %v718_v0 = vrot.slane %v716_v35, 4  ;;  %v5607_v2 = vcombine.low %v2953_v53, %v2956_v62  ;;  %v709_v43 = vor.u32 %v708_v34, %v705_v9  ;;  %v5514_v35 = vld [vmem:[%s6990_s21 + $0x128] sm:$0x1] }
  0x89   : > { %v5591_v12 = vrot.slane %v5575_v25, 9  ;;  %v2959_v13 = vrot.slane %v7169_v8, 5  ;;  %v2962_v14 = vrot.slane %v7175_v28, 5  ;;  %v727_v39 = vshrl.u32 %v7387_v57, 16 }
  0x8a   : > { %6097 = vmatmul.mubr.msk.bf16.gmra.mrb[24].mxu1 %vm800_vm4, %v5323_v36  ;;  %v719_v11 = vor.u32 %v718_v0, %v714_v63  ;;  %6251 = vmatmul.mubr.msk.bf16.gmra.mrb[8].mxu0 %vm800_vm4, %v5607_v2  ;;  %v710_v22 = vrot.slane %v709_v43, 4  ;;  %v724_v47 = vrot.slane %v722_v6, 5  ;;  %v730_v23 = vshll.u32 %v7387_v57, 16 }
  0x8b   : > { %v736_v5 = vshll.u32 %v7396_v30, 16  ;;  %v2960_v8 = vsel %vm7237_vm8, %v5591_v12, %v2959_v13  ;;  %v2961_v28 = vrot.slane %v2959_v13, 4  ;;  %v729_v31 = vrot.slane %v727_v39, 4  ;;  %v5578_v13 = vld [vmem:[%s6990_s21 + $0x12c] sm:$0xe] }
  0x8c   : > { %v720_v59 = vrot.slane %v719_v11, 4  ;;  %v715_v32 = vsel %vm7016_vm5, %v710_v22, %v714_v63  ;;  %v732_v33 = vrot.slane %v730_v23, 5  ;;  %v740_v42 = vshrl.u32 %v7396_v30, 16  ;;  %v6741_v23 = vld [vmem:[%s6990_s21] sm:$0xf] }
  0x8d   : > { %v738_v25 = vrot.slane %v736_v5, 5  ;;  %v2963_v50 = vsel %vm7237_vm8, %v2961_v28, %v2962_v14  ;;  %v746_v53 = vshll.u32 %v7402_v20, 16  ;;  %v5592_v56 = vrot.slane %v5576_v52, 9  ;;  %v7437_v5 = vld [vmem:[%s6990_s21 + $0x4] sm:$0xf] }
  0x8e   : > { %v725_v38 = vsel %vm7016_vm5, %v720_v59, %v724_v47  ;;  %v5608_v60 = vcombine.low %v2960_v8, %v2963_v50  ;;  %v733_v9 = vor.u32 %v732_v33, %v729_v31  ;;  %v742_v34 = vrot.slane %v740_v42, 4  ;;  %v7441_v59 = vld [vmem:[%s6990_s21 + $0x130] sm:$0xf]  ;;  %v7444_v8 = vld [vmem:[%s6990_s21 + $0x134] sm:$0x1] }
  0x8f   : > { %v5324_v58 = vcombine.low %v715_v32, %v725_v38  ;;  %v748_v36 = vrot.slane %v746_v53, 5  ;;  %v2966_v62 = vrot.slane %v7199_v16, 5  ;;  %v2969_v63 = vrot.slane %v7206_v26, 5  ;;  %v5579_v28 = vld [vmem:[%s6990_s21 + $0x138] sm:$0xe] }
  0x90   : > { %v5593_v0 = vrot.slane %v5577_v48, 9  ;;  %6254 = vmatprep.mubr.msk.bf16.mxu0 %vm800_vm4, %v5608_v60  ;;  %v734_v2 = vrot.slane %v733_v9, 4  ;;  %v743_v43 = vor.u32 %v742_v34, %v738_v25  ;;  %v2973_v6 = vrot.slane %v5513_v19, 5  ;;  %v5519_v42 = vld [vmem:[%s6990_s21 + $0x13c] sm:$0xf] }
  0x91   : > { %6100 = vmatprep.mubr.msk.bf16.mxu1 %vm800_vm4, %v5324_v58  ;;  %v2976_v12 = vrot.slane %v5514_v35, 5  ;;  %v2967_v11 = vsel %vm7237_vm8, %v5592_v56, %v2966_v62  ;;  %v2968_v16 = vrot.slane %v2966_v62, 4  ;;  %v5342_v52 = vcombine.low %v6741_v23, %v7437_v5  ;;  %v5520_v48 = vld [vmem:[%s6990_s21 + $0x140] sm:$0x1]  ;;  %v5522_v53 = vld [vmem:[%s6990_s21 + $0x148] sm:$0xf] }
  0x92   : > { %v739_v26 = vsel %vm7016_vm5, %v734_v2, %v738_v25  ;;  %v744_v14 = vrot.slane %v743_v43, 4  ;;  %v2974_v39 = vsel %vm7237_vm8, %v5593_v0, %v2973_v6  ;;  %v2975_v22 = vrot.slane %v2973_v6, 4  ;;  %v5523_v9 = vld [vmem:[%s6990_s21 + $0x14c] sm:$0x1]  ;;  %v5580_v34 = vld [vmem:[%s6990_s21 + $0x144] sm:$0xe] }
  0x93   : > { %v2970_v47 = vsel %vm7237_vm8, %v2968_v16, %v2969_v63  ;;  %v5594_v25 = vrot.slane %v5578_v13, 9  ;;  %v2980_v56 = vrot.slane %v7441_v59, 5  ;;  %v2983_v19 = vrot.slane %v7444_v8, 5  ;;  %v5525_v0 = vld [vmem:[%s6990_s21 + $0x154] sm:$0xf] }
  0x94   : > { %v749_v31 = vsel %vm7016_vm5, %v744_v14, %v748_v36  ;;  %v5609_v32 = vcombine.low %v2967_v11, %v2970_v47  ;;  %v2977_v33 = vsel %vm7237_vm8, %v2975_v22, %v2976_v12  ;;  %v5595_v35 = vrot.slane %v5579_v28, 9  ;;  %v5526_v6 = vld [vmem:[%s6990_s21 + $0x158] sm:$0x1]  ;;  %v5581_v12 = vld [vmem:[%s6990_s21 + $0x150] sm:$0xe] }
  0x95   : > { %v5325_v38 = vcombine.low %v739_v26, %v749_v31  ;;  %v5610_v50 = vcombine.low %v2974_v39, %v2977_v33  ;;  %v2987_v58 = vrot.slane %v5519_v42, 5  ;;  %v2990_v60 = vrot.slane %v5520_v48, 5  ;;  %v6743_v11 = vld [vmem:[%s6990_s21 + $0xc] sm:$0xf]  ;;  %v7471_v16 = vld [vmem:[%s6990_s21 + $0x10] sm:$0xf] }
  0x96   : > { %6255 = vmatmul.mubr.msk.bf16.gmra.mrb[12].mxu0 %vm800_vm4, %v5609_v32  ;;  %v2981_v36 = vsel %vm7237_vm8, %v5594_v25, %v2980_v56  ;;  %v2982_v62 = vrot.slane %v2980_v56, 4  ;;  %v2994_v63 = vrot.slane %v5522_v53, 5  ;;  %v5343_v13 = vcombine.low %v6743_v11, %v7471_v16  ;;  %v6745_v28 = vld [vmem:[%s6990_s21 + $0x18] sm:$0xf]  ;;  %v7480_v31 = vld [vmem:[%s6990_s21 + $0x1c] sm:$0xf] }
  0x97   : > { %6101 = vmatmul.mubr.msk.bf16.gmra.mrb[28].mxu1 %vm800_vm4, %v5325_v38  ;;  %6258 = vmatprep.mubr.msk.bf16.mxu0 %vm800_vm4, %v5610_v50  ;;  %v2988_v2 = vsel %vm7237_vm8, %v5595_v35, %v2987_v58  ;;  %v2989_v43 = vrot.slane %v2987_v58, 4  ;;  %v5596_v14 = vrot.slane %v5580_v34, 9  ;;  %v2997_v39 = vrot.slane %v5523_v9, 5  ;;  %v5528_v48 = vld [vmem:[%s6990_s21 + $0x160] sm:$0xf] }
  0x98   : > { %6106 = vmatprep.mubr.msk.bf16.mxu1 %vm800_vm4, %v5342_v52  ;;  %v2984_v26 = vsel %vm7237_vm8, %v2982_v62, %v2983_v19  ;;  %v2996_v23 = vrot.slane %v2994_v63, 4  ;;  %v3001_v52 = vrot.slane %v5525_v0, 5  ;;  %v5344_v32 = vcombine.low %v6745_v28, %v7480_v31  ;;  %v5531_v50 = vld [vmem:[%s6990_s21 + $0x16c] sm:$0xf]  ;;  %v5529_v53 = vld [vmem:[%s6990_s21 + $0x164] sm:$0x1] }
  0x99   : > { %v5611_v22 = vcombine.low %v2981_v36, %v2984_v26  ;;  %v2991_v47 = vsel %vm7237_vm8, %v2989_v43, %v2990_v60  ;;  %v5597_v25 = vrot.slane %v5581_v12, 9  ;;  %v3004_v42 = vrot.slane %v5526_v6, 5  ;;  %v5582_v56 = vld [vmem:[%s6990_s21 + $0x15c] sm:$0xe]  ;;  %v5747_v60 = vld [vmem:[%s8904_s1 + $0xe] sm:$0x3] }
  0x9a   : > { %v5612_v33 = vcombine.low %v2988_v2, %v2991_v47  ;;  %v3003_v38 = vrot.slane %v3001_v52, 4  ;;  %v2995_v19 = vsel %vm7237_vm8, %v5596_v14, %v2994_v63  ;;  %v2998_v35 = vsel %vm7237_vm8, %v2996_v23, %v2997_v39  ;;  %v5583_v36 = vld [vmem:[%s6990_s21 + $0x168] sm:$0xe]  ;;  %v5532_v63 = vld [vmem:[%s6990_s21 + $0x170] sm:$0x1] }
  0x9b   : > { %v3008_v58 = vrot.slane %v5528_v48, 5  ;;  %v3002_v9 = vsel %vm7237_vm8, %v5597_v25, %v3001_v52  ;;  %v3015_v62 = vrot.slane %v5531_v50, 5  ;;  %v6747_v0 = vld [vmem:[%s6990_s21 + $0x24] sm:$0xf]  ;;  %v7507_v2 = vld [vmem:[%s6990_s21 + $0x28] sm:$0xf]  ;;  %v5613_v6 = vcombine.low %v2995_v19, %v2998_v35 }
  0x9c   : > { %v3005_v34 = vsel %vm7237_vm8, %v3003_v38, %v3004_v42  ;;  %v5345_v43 = vcombine.low %v6747_v0, %v7507_v2  ;;  %v5534_v12 = vld [vmem:[%s6990_s21 + $0x178] sm:$0xf]  ;;  %v7512_v11 = vand.u32 %v5747_v60, %v6966_v4  ;;  %v3011_v14 = vrot.slane %v5529_v53, 5  ;;  %v6749_v47 = vld [vmem:[%s6990_s21 + $0x30] sm:$0xf] }
  0x9d   : > { %v3010_v26 = vrot.slane %v3008_v58, 4  ;;  %v5599_v39 = vrot.slane %v5583_v36, 9  ;;  %v7519_v23 = vld [vmem:[%s6990_s21 + $0x34] sm:$0xf]  ;;  %v3017_v28 = vrot.slane %v3015_v62, 4  ;;  %v3022_v48 = vrot.slane %v5534_v12, 5 }
  0x9e   : > { %6259 = vmatmul.mubr.msk.bf16.gmra.mrb[16].mxu0 %vm800_vm4, %v5611_v22  ;;  %v5455_v22 = vld [vmem:[%s8904_s1 + $0x6] sm:$0x3]  ;;  %v5346_v52 = vcombine.low %v6749_v47, %v7519_v23  ;;  %6308 = vmatprep.subr.bf16.mxu0 %v7512_v11  ;;  %v5535_v53 = vld [vmem:[%s6990_s21 + $0x17c] sm:$0x1]  ;;  %v7543_v35 = vld [vmem:[%s6990_s21 + $0x40] sm:$0xf] }
  0x9f   : > { %6107 = vmatmul.mubr.msk.bf16.vlgmr.msra.gmra.mrb[0].mxu1 %vm800_vm4, %v5343_v13  ;;  %6262 = vmatprep.mubr.msk.bf16.mxu0 %vm800_vm4, %v5612_v33  ;;  %v5614_v13 = vcombine.low %v3002_v9, %v3005_v34  ;;  %v7525_v33 = vand.u32 %v5455_v22, %v6966_v4  ;;  %v3012_v42 = vsel %vm7237_vm8, %v3010_v26, %v3011_v14  ;;  %v6751_v19 = vld [vmem:[%s6990_s21 + $0x3c] sm:$0xf]  ;;  %v3024_v36 = vrot.slane %v3022_v48, 4  ;;  %v6702_v12 = vld [vmem:[%s6990_s21 + $0x180] sm:$0xff]   ;;  %v6753_v47 = vld [vmem:[%s6990_s21 + $0x8] sm:$0x1] }
  0xa0   : > { %6139 = vmatpush3.bf16.msra.mxu1 %v7025_v46  ;;  %6110 = vmatprep.mubr.msk.bf16.mxu1 %vm800_vm4, %v5344_v32  ;;  %v5598_v46 = vrot.slane %v5582_v56, 9  ;;  %v3018_v32 = vrot.slane %v5532_v63, 5  ;;  %v3016_v38 = vsel %vm7237_vm8, %v5599_v39, %v3015_v62  ;;  %v5584_v56 = vld [vmem:[%s6990_s21 + $0x174] sm:$0xe]  ;;  %v3025_v63 = vrot.slane %v5535_v53, 5 }
  0xa1   : > { %6172 = vmatprep.subr.bf16.mxu1 %v7525_v33  ;;  %v5600_v34 = vrot.slane %v5584_v56, 9  ;;  %v5348_v62 = vcombine.low %v7150_v41, %v7153_v49  ;;  %v2403_v41 = vshrl.u32 %v7441_v59, 16  ;;  %v5350_v26 = vcombine.low %v7210_v44, %v7216_v54  ;;  %v1309_v22 = vld [vmem:[%s6990_s21] sm:$0xe]  ;;  %v6754_v44 = vld [vmem:[%s6990_s21 + $0x14] sm:$0x1] }
  0xa2   : > { %v3009_v25 = vsel %vm7237_vm8, %v5598_v46, %v3008_v58  ;;  %v3019_v50 = vsel %vm7237_vm8, %v3017_v28, %v3018_v32  ;;  %v5347_v58 = vcombine.low %v6751_v19, %v7543_v35  ;;  %v5349_v46 = vcombine.low %v7179_v10, %v7185_v51  ;;  %v1311_v51 = vld [vmem:[%s6990_s21 + $0x18] sm:$0xe]  ;;  %v1313_v53 = vld [vmem:[%s6990_s21 + $0x30] sm:$0xe] }
  0xa3   : > { %v5615_v60 = vcombine.low %v3009_v25, %v3012_v42  ;;  %v5616_v9 = vcombine.low %v3016_v38, %v3019_v50  ;;  %v3023_v0 = vsel %vm7237_vm8, %v5600_v34, %v3022_v48  ;;  %v2405_v39 = vrot.slane %v2403_v41, 4  ;;  %v1312_v25 = vld [vmem:[%s6990_s21 + $0x24] sm:$0xe]  ;;  %v6704_v38 = vld [vmem:[%s6990_s21 + $0x18c] sm:$0xff]   ;;  %v6706_v56 = vld [vmem:[%s6990_s21 + $0x198] sm:$0xff]  }
  0xa4   : > { %v1362_v10 = vrot.slane %v7437_v5, 5  ;;  %v1372_v54 = vrot.slane %v6754_v44, 5  ;;  %v5374_v28 = vrot.slane %v1309_v22, 9  ;;  %v1376_v32 = vrot.slane %v7480_v31, 5  ;;  %v6758_v22 = vld [vmem:[%s6990_s21 + $0x4c] sm:$0xf] }
  0xa5   : > { %v5351_v48 = vcombine.low %v7231_v18, %v7244_v55  ;;  %v1383_v50 = vrot.slane %v7507_v2, 5  ;;  %v5353_v31 = vcombine.low %v7289_v61, %v7297_v29  ;;  %v5812_v18 = vld [vmem:[%s8904_s1 + $0x10] sm:$0x3]  ;;  %v5376_v2 = vrot.slane %v1311_v51, 9  ;;  %v6764_v61 = vld [vmem:[%s6990_s21 + $0x68] sm:$0x1] }
  0xa6   : > { %6263 = vmatmul.mubr.msk.bf16.gmra.mrb[20].mxu0 %vm800_vm4, %v5613_v6  ;;  %v2399_v6 = vshll.u32 %v7441_v59, 16  ;;  %v1310_v59 = vld [vmem:[%s6990_s21 + $0xc] sm:$0xe]  ;;  %v1364_v55 = vrot.slane %v1362_v10, 4  ;;  %v5377_v34 = vrot.slane %v1312_v25, 9  ;;  %v6708_v25 = vld [vmem:[%s6990_s21 + $0x1a4] sm:$0xff]  }
  0xa7   : > { %6111 = vmatmul.mubr.msk.bf16.gmra.mrb[4].mxu1 %vm800_vm4, %v5345_v43  ;;  %6266 = vmatprep.mubr.msk.bf16.mxu0 %vm800_vm4, %v5614_v13  ;;  %v3026_v43 = vsel %vm7237_vm8, %v3024_v36, %v3025_v63  ;;  %v1369_v13 = vrot.slane %v7471_v16, 5  ;;  %v2409_v16 = vshll.u32 %v7444_v8, 16  ;;  %v5375_v5 = vrot.slane %v1310_v59, 9  ;;  %v1314_v63 = vld [vmem:[%s6990_s21 + $0x3c] sm:$0xe] }
  0xa8   : > { %6114 = vmatprep.mubr.msk.bf16.mxu1 %vm800_vm4, %v5346_v52  ;;  %v5617_v49 = vcombine.low %v3023_v0, %v3026_v43  ;;  %v7564_v14 = vrot.slane %v2399_v6, 5  ;;  %v1365_v52 = vrot.slane %v6753_v47, 5  ;;  %v5352_v8 = vcombine.low %v7263_v15, %v7270_v21  ;;  %v6756_v6 = vld [vmem:[%s6990_s21 + $0x2c] sm:$0x1] }
  0xa9   : > { %v1371_v19 = vrot.slane %v1369_v13, 4  ;;  %v5354_v15 = vcombine.low %v7316_v40, %v7326_v1  ;;  %v7599_v21 = vsel %vm7237_vm8, %v5374_v28, %v1362_v10  ;;  %v1378_v36 = vrot.slane %v1376_v32, 4 }
  0xaa   : > { %8931 = vst [vmem:[#allocation6_spill] sm:$0xff] %v7564_v14  ;;  %v2406_v42 = vor.u32 %v2405_v39, %v7564_v14  ;;  %v7605_v0 = vsel %vm7237_vm8, %v5375_v5, %v1369_v13  ;;  %v1385_v43 = vrot.slane %v1383_v50, 4  ;;  %v1386_v41 = vrot.slane %v6756_v6, 5  ;;  %v6760_v5 = vld [vmem:[%s6990_s21 + $0x50] sm:$0x1] }
  0xab   : > { %v1397_v39 = vrot.slane %v7543_v35, 5  ;;  %v1404_v59 = vrot.slane %v6758_v22, 5  ;;  %v7615_v47 = vrot.slane %v2409_v16, 5  ;;  %v7625_v13 = vsel %vm7237_vm8, %v1371_v19, %v1372_v54  ;;  %v6759_v16 = vld [vmem:[%s6990_s21 + $0x44] sm:$0x1] }
  0xac   : > { %v7629_v35 = vsel %vm7237_vm8, %v5376_v2, %v1376_v32  ;;  %v7631_v10 = vrot.slane %v2406_v42, 4  ;;  %v7649_v44 = vsel %vm7237_vm8, %v1385_v43, %v1386_v41  ;;  %v5379_v54 = vrot.slane %v1314_v63, 9 }
  0xad   : > { %8932 = vst [vmem:[#allocation7_spill] sm:$0xff] %v7615_v47  ;;  %v1400_v28 = vrot.slane %v6759_v16, 5  ;;  %v1421_v29 = vrot.slane %v6764_v61, 5  ;;  %v6714_v61 = vld [vmem:[%s6990_s21 + $0x1c8] sm:$0xff]  }
  0xae   : > { %6267 = vmatmul.mubr.msk.bf16.gmra.mrb[24].mxu0 %vm800_vm4, %v5615_v60  ;;  %v6755_v60 = vld [vmem:[%s6990_s21 + $0x20] sm:$0x1]  ;;  %8933 = vst [vmem:[#allocation8_spill] sm:$0xff] %v7631_v10  ;;  %v7683_v6 = vsel %vm7237_vm8, %v5379_v54, %v1397_v39  ;;  %v5702_v54 = vld [vmem:[%s6990_s21 + $0x18c] sm:$0xf] }
  0xaf   : > { %6115 = vmatmul.mubr.msk.bf16.gmra.mrb[8].mxu1 %vm800_vm4, %v5347_v58  ;;  %6270 = vmatprep.mubr.msk.bf16.mxu0 %vm800_vm4, %v5616_v9  ;;  %v1390_v58 = vrot.slane %v7519_v23, 5  ;;  %v1379_v9 = vrot.slane %v6755_v60, 5  ;;  %v5378_v23 = vrot.slane %v1313_v53, 9  ;;  %v6710_v53 = vld [vmem:[%s6990_s21 + $0x1b0] sm:$0xff]   ;;  %v3756_v40 = vshll.u32 %v5702_v54, 16 }
  0xb0   : > { %6118 = vmatprep.mubr.msk.bf16.mxu1 %vm800_vm4, %v5348_v62  ;;  %v1315_v62 = vld [vmem:[%s6990_s21 + $0x48] sm:$0xe]  ;;  %v1320_v10 = vld [vmem:[%s6990_s21 + $0x84] sm:$0xe] }
  0xb1   : > { %v7645_v51 = vsel %vm7237_vm8, %v5378_v23, %v1390_v58  ;;  %v5380_v32 = vrot.slane %v1315_v62, 9  ;;  %v6762_v23 = vld [vmem:[%s6990_s21 + $0x64] sm:$0xf]  ;;  %v6765_v62 = vld [vmem:[%s6990_s21 + $0x70] sm:$0xf] }
  0xb2   : > { %v1418_v63 = vrot.slane %v6762_v23, 5 }
  0xb3   : > { %v7687_v41 = vsel %vm7237_vm8, %v5380_v32, %v1404_v59 }
  0xb6   : > { %6271 = vmatmul.mubr.msk.bf16.gmra.mrb[28].mxu0 %vm800_vm4, %v5617_v49  ;;  %v7609_v49 = vand.u32 %v5812_v18, %v6966_v4  ;;  %v7621_v4 = vsel %vm7237_vm8, %v1364_v55, %v1365_v52  ;;  %v7641_v52 = vsel %vm7237_vm8, %v5377_v34, %v1383_v50  ;;  %v1407_v50 = vrot.slane %v6760_v5, 5  ;;  %v5699_v55 = vld [vmem:[%s6990_s21 + $0x180] sm:$0xf]  ;;  %v1316_v34 = vld [vmem:[%s6990_s21 + $0x54] sm:$0xe] }
  0xb7   : > { %6119 = vmatmul.mubr.msk.bf16.gmra.mrb[12].mxu1 %vm800_vm4, %v5349_v46  ;;  %6276 = vmatprep.mubr.msk.bf16.mxu0 %vm800_vm4, %v6702_v12  ;;  %v1392_v46 = vrot.slane %v1390_v58, 4  ;;  %v6757_v12 = vld [vmem:[%s6990_s21 + $0x38] sm:$0x1]  ;;  %v3732_v22 = vshll.u32 %v5699_v55, 16  ;;  %v5701_v5 = vld [vmem:[%s6990_s21 + $0x188] sm:$0x1] }
  0xb8   : > { %6122 = vmatprep.mubr.msk.bf16.mxu1 %vm800_vm4, %v5350_v26  ;;  %v1393_v26 = vrot.slane %v6757_v12, 5  ;;  %v6761_v58 = vld [vmem:[%s6990_s21 + $0x58] sm:$0xf] }
  0xb9   : > { %v1411_v18 = vrot.slane %v6761_v58, 5 }
  0xba   : > { %v7656_v42 = vsel %vm7237_vm8, %v1392_v46, %v1393_v26  ;;  %v5700_v46 = vld [vmem:[%s6990_s21 + $0x184] sm:$0xf] }
  0xbb   : > { %v1413_v16 = vrot.slane %v1411_v18, 4 }
  0xbe   : > { %6277 = vmatmul.mubr.msk.bf16.vlgmr.msra.gmra.mrb[0].mxu0 %vm800_vm4, %v6704_v38  ;;  %v1406_v38 = vrot.slane %v1404_v59, 4  ;;  %v5381_v59 = vrot.slane %v1316_v34, 9  ;;  %v3753_v34 = vshrl.u32 %v5702_v54, 16  ;;  %v1318_v54 = vld [vmem:[%s6990_s21 + $0x6c] sm:$0xe] }
  0xbf   : > { %6123 = vmatmul.mubr.msk.bf16.gmra.mrb[16].mxu1 %vm800_vm4, %v5351_v48  ;;  %6309 = vmatpush3.bf16.msra.mxu0 %v7512_v11  ;;  %v7637_v11 = vsel %vm7237_vm8, %v1378_v36, %v1379_v9  ;;  %v1399_v48 = vrot.slane %v1397_v39, 4  ;;  %v1317_v36 = vld [vmem:[%s6990_s21 + $0x60] sm:$0xe]  ;;  %v3729_v39 = vshrl.u32 %v5699_v55, 16  ;;  %v5704_v9 = vld [vmem:[%s6990_s21 + $0x194] sm:$0x1] }
  0xc0   : > { %6126 = vmatprep.mubr.msk.bf16.mxu1 %vm800_vm4, %v5352_v8  ;;  %6280 = vmatprep.mubr.msk.bf16.mxu0 %vm800_vm4, %v6706_v56  ;;  %v5355_v8 = vcombine.low %v7335_v3, %v7346_v27  ;;  %v5356_v56 = vcombine.low %v7367_v17, %v7372_v24  ;;  %v7697_v26 = vsel %vm7237_vm8, %v1406_v38, %v1407_v50  ;;  %v1420_v38 = vrot.slane %v1418_v63, 4 }
  0xc1   : > { %6342 = vmatprep.subr.bf16.mxu0 %v7609_v49  ;;  %v7693_v12 = vsel %vm7237_vm8, %v1399_v48, %v1400_v28  ;;  %v6763_v28 = vld [vmem:[%s6990_s21 + $0x5c] sm:$0x1]  ;;  %v5703_v48 = vld [vmem:[%s6990_s21 + $0x190] sm:$0xf]  ;;  %v3742_v50 = vshrl.u32 %v5700_v46, 16  ;;  %v3731_v1 = vrot.slane %v3729_v39, 4 }
  0xc2   : > { %v1414_v32 = vrot.slane %v6763_v28, 5  ;;  %v3766_v23 = vshrl.u32 %v5703_v48, 16  ;;  %v5705_v28 = vld [vmem:[%s6990_s21 + $0x198] sm:$0xf]  ;;  %v3748_v39 = vshll.u32 %v5701_v5, 16  ;;  %v3755_v60 = vrot.slane %v3753_v34, 4 }
  0xc3   : > { %v3744_v43 = vrot.slane %v3742_v50, 4  ;;  %v3780_v2 = vshll.u32 %v5705_v28, 16  ;;  %v3772_v34 = vshll.u32 %v5704_v9, 16  ;;  %v7771_v9 = vld [vmem:[%s6990_s21 + $0x1a0] sm:$0x1] }
  0xc4   : > { %v7726_v58 = vsel %vm7237_vm8, %v1413_v16, %v1414_v32  ;;  %v3758_v16 = vrot.slane %v3756_v40, 5  ;;  %v3777_v32 = vshrl.u32 %v5705_v28, 16  ;;  %v5708_v40 = vld [vmem:[%s6990_s21 + $0x1a4] sm:$0xf]  ;;  %8934 = vst [vmem:[#allocation9_spill] sm:$0xff] %v7771_v9  ;;  %v3796_v14 = vshll.u32 %v7771_v9, 16 }
  0xc5   : > { %v6723_v9 = vld [vmem:[%s6990_s21 + $0x228] sm:$0xff]  }
  0xc6   : > { %6281 = vmatmul.mubr.msk.bf16.gmra.mrb[4].mxu0 %vm800_vm4, %v6708_v25  ;;  %v5382_v25 = vrot.slane %v1317_v36, 9  ;;  %v3762_v36 = vshll.u32 %v5703_v48, 16  ;;  %v3779_v28 = vrot.slane %v3777_v32, 4  ;;  %v3804_v32 = vshll.u32 %v5708_v40, 16 }
  0xc7   : > { %6127 = vmatmul.mubr.msk.bf16.gmra.mrb[20].mxu1 %vm800_vm4, %v5353_v31  ;;  %6284 = vmatprep.mubr.msk.bf16.mxu0 %vm800_vm4, %v6710_v53  ;;  %v3738_v31 = vshll.u32 %v5700_v46, 16  ;;  %v6712_v53 = vld [vmem:[%s6990_s21 + $0x1bc] sm:$0xff]   ;;  %v7722_v46 = vsel %vm7237_vm8, %v5381_v59, %v1411_v18  ;;  %v1425_v18 = vrot.slane %v6765_v62, 5 }
  0xc8   : > { %6130 = vmatprep.mubr.msk.bf16.mxu1 %vm800_vm4, %v5354_v15  ;;  %v3734_v15 = vrot.slane %v3732_v22, 5  ;;  %v7730_v55 = vsel %vm7237_vm8, %v5382_v25, %v1418_v63  ;;  %v7735_v22 = vsel %vm7237_vm8, %v1420_v38, %v1421_v29  ;;  %v5706_v59 = vld [vmem:[%s6990_s21 + $0x19c] sm:$0xf]  ;;  %v5383_v25 = vrot.slane %v1318_v54, 9  ;;  %v6716_v54 = vld [vmem:[%s6990_s21 + $0x1d4] sm:$0xff]  }
  0xc9   : > { %v7737_v48 = vrot.slane %v3738_v31, 5  ;;  %v7743_v5 = vrot.slane %v3762_v36, 5  ;;  %v3768_v38 = vrot.slane %v3766_v23, 4  ;;  %v3786_v31 = vshll.u32 %v5706_v59, 16  ;;  %v6767_v36 = vld [vmem:[%s6990_s21 + $0x7c] sm:$0xf] }
  0xca   : > { %v3735_v63 = vor.u32 %v3734_v15, %v3731_v1  ;;  %v3790_v50 = vshrl.u32 %v5706_v59, 16  ;;  %v1427_v27 = vrot.slane %v1425_v18, 4  ;;  %v3759_v1 = vor.u32 %v3758_v16, %v3755_v60  ;;  %v1319_v15 = vld [vmem:[%s6990_s21 + $0x78] sm:$0xe]  ;;  %v6717_v59 = vld [vmem:[%s6990_s21 + $0x1e0] sm:$0xff]  }
  0xcb   : > { %v3745_v3 = vor.u32 %v3744_v43, %v7737_v48  ;;  %v1432_v23 = vrot.slane %v6767_v36, 5  ;;  %v7767_v43 = vsel %vm7237_vm8, %v5383_v25, %v1425_v18  ;;  %v7773_v29 = vrot.slane %v3786_v31, 5  ;;  %v7776_v16 = vld [vmem:[%s6990_s21 + $0x1a8] sm:$0xf]  ;;  %v6768_v62 = vld [vmem:[%s6990_s21 + $0x80] sm:$0x1] }
  0xcc   : > { %v3736_v17 = vrot.slane %v3735_v63, 4  ;;  %v3792_v60 = vrot.slane %v3790_v50, 4  ;;  %8935 = vst [vmem:[#allocation10_spill] sm:$0xff] %v7776_v16  ;;  %v3774_v63 = vrot.slane %v3772_v34, 5  ;;  %v5384_v18 = vrot.slane %v1319_v15, 9 }
  0xcd   : > { %v3746_v36 = vrot.slane %v3745_v3, 4  ;;  %v3760_v25 = vrot.slane %v3759_v1, 4  ;;  %v1435_v19 = vrot.slane %v6768_v62, 5  ;;  %v3810_v3 = vshll.u32 %v7776_v16, 16 }
  0xce   : > { %6285 = vmatmul.mubr.msk.bf16.gmra.mrb[8].mxu0 %vm800_vm4, %v6712_v53  ;;  %v3793_v62 = vor.u32 %v3792_v60, %v7773_v29  ;;  %v3806_v15 = vrot.slane %v3804_v32, 5  ;;  %v6718_v60 = vld [vmem:[%s6990_s21 + $0x1ec] sm:$0xff]  }
  0xcf   : > { %6131 = vmatmul.mubr.msk.bf16.gmra.mrb[24].mxu1 %vm800_vm4, %v5355_v8  ;;  %6288 = vmatprep.mubr.msk.bf16.mxu0 %vm800_vm4, %v6714_v61  ;;  %v6766_v8 = vld [vmem:[%s6990_s21 + $0x74] sm:$0x1]  ;;  %v3782_v61 = vrot.slane %v3780_v2, 5  ;;  %v3801_v2 = vshrl.u32 %v5708_v40, 16  ;;  %v3814_v40 = vshrl.u32 %v7776_v16, 16  ;;  %v7824_v32 = vrot.slane %v3810_v3, 5 }
  0xd0   : > { %6134 = vmatprep.mubr.msk.bf16.mxu1 %vm800_vm4, %v5356_v56  ;;  %v1428_v53 = vrot.slane %v6766_v8, 5  ;;  %v3750_v56 = vrot.slane %v3748_v39, 5  ;;  %v3769_v8 = vor.u32 %v3768_v38, %v7743_v5  ;;  %v1434_v38 = vrot.slane %v1432_v23, 4 }
  0xd1   : > { %v3783_v31 = vor.u32 %v3782_v61, %v3779_v28  ;;  %v3803_v1 = vrot.slane %v3801_v2, 4  ;;  %v8937_v28 = vcombine.low %v7599_v21, %v7621_v4  ;;  %v3765_v21 = vsel %vm7016_vm5, %v3760_v25, %v7743_v5  ;;  %v6719_v5 = vld [vmem:[%s6990_s21 + $0x1f8] sm:$0xff]   ;;  %v6770_v25 = vld [vmem:[%s6990_s21 + $0x8c] sm:$0x1] }
  0xd2   : > { %v7780_v39 = vsel %vm7237_vm8, %v1427_v27, %v1428_v53  ;;  %v3770_v50 = vrot.slane %v3769_v8, 4  ;;  %v8936_v27 = vcombine.low %v7387_v57, %v7396_v30  ;;  %v6769_v53 = vld [vmem:[%s6990_s21 + $0x88] sm:$0xf]  ;;  %v3741_v57 = vsel %vm7016_vm5, %v3736_v17, %v7737_v48  ;;  %v5711_v8 = vld [vmem:[%s6990_s21 + $0x1b0] sm:$0xf] }
  0xd3   : > { %v1439_v34 = vrot.slane %v6769_v53, 5  ;;  %v3751_v61 = vsel %vm7016_vm5, %v3746_v36, %v3750_v56  ;;  %v7815_v4 = vsel %vm7237_vm8, %v1434_v38, %v1435_v19  ;;  %v3784_v48 = vrot.slane %v3783_v31, 4  ;;  %v7818_v56 = vld [vmem:[%s6990_s21 + $0x1ac] sm:$0x1]  ;;  %v7829_v31 = vld [vmem:[%s6990_s21 + $0x1b4] sm:$0xf] }
  0xd4   : > { %v5385_v17 = vrot.slane %v1320_v10, 9  ;;  %8938 = vst [vmem:[#allocation11_spill] sm:$0xff] %v7818_v56  ;;  %v3798_v2 = vrot.slane %v3796_v14, 5  ;;  %v3816_v36 = vrot.slane %v3814_v40, 4  ;;  %v1442_v38 = vrot.slane %v6770_v25, 5 }
  0xd5   : > { %v1441_v19 = vrot.slane %v1439_v34, 4  ;;  %v3807_v10 = vor.u32 %v3806_v15, %v3803_v1  ;;  %v3820_v53 = vshll.u32 %v7818_v56, 16  ;;  %v3825_v14 = vshrl.u32 %v5711_v8, 16  ;;  %v5714_v15 = vld [vmem:[%s6990_s21 + $0x1bc] sm:$0xf] }
  0xd6   : > { %6289 = vmatmul.mubr.msk.bf16.gmra.mrb[12].mxu0 %vm800_vm4, %v6716_v54  ;;  %v7844_v1 = vsel %vm7237_vm8, %v5385_v17, %v1439_v34  ;;  %v3852_v25 = vshll.u32 %v5714_v15, 16 }
  0xd7   : > { %6135 = vmatmul.mubr.msk.bf16.gmra.mrb[28].mxu1 %vm800_vm4, %v8936_v27  ;;  %6292 = vmatprep.mubr.msk.bf16.mxu0 %vm800_vm4, %v6717_v59  ;;  %v7808_v59 = vsel %vm7237_vm8, %v5384_v18, %v1432_v23  ;;  %v3775_v23 = vsel %vm7016_vm5, %v3770_v50, %v3774_v63  ;;  %v3794_v18 = vrot.slane %v3793_v62, 4  ;;  %v7831_v27 = vcombine.low %v3741_v57, %v3751_v61  ;;  %v1321_v63 = vld [vmem:[%s6990_s21 + $0x90] sm:$0xe]  ;;  %v6771_v57 = vld [vmem:[%s6990_s21 + $0x94] sm:$0xf] }
  0xd8   : > { %6140 = vmatprep.mubr.msk.bf16.mxu1 %vm800_vm4, %v8937_v28  ;;  %v3828_v50 = vshll.u32 %v5711_v8, 16  ;;  %v7835_v3 = vcombine.low %v3765_v21, %v3775_v23  ;;  %v3789_v62 = vsel %vm7016_vm5, %v3784_v48, %v7773_v29  ;;  %v3817_v28 = vor.u32 %v3816_v36, %v7824_v32  ;;  %v7853_v23 = vld [vmem:[%s6990_s21 + $0x1c0] sm:$0xf]  ;;  %v6772_v36 = vld [vmem:[%s6990_s21 + $0x98] sm:$0x1] }
  0xd9   : > { %v1446_v61 = vrot.slane %v6771_v57, 5  ;;  %v3834_v21 = vshll.u32 %v7829_v31, 16  ;;  %v3838_v8 = vshrl.u32 %v7829_v31, 16  ;;  %v8939_v29 = vcombine.low %v7605_v0, %v7625_v13 }
  0xda   : > { %v3799_v34 = vsel %vm7016_vm5, %v3794_v18, %v3798_v2  ;;  %v7864_v48 = vsel %vm7237_vm8, %v1441_v19, %v1442_v38  ;;  %v7866_v17 = vrot.slane %v3807_v10, 4  ;;  %v8940_v0 = vcombine.low %v7629_v35, %v7637_v11  ;;  %v5717_v10 = vld [vmem:[%s6990_s21 + $0x1c8] sm:$0xf] }
  0xdb   : > { %v7873_v13 = vrot.slane %v3820_v53, 5  ;;  %v1449_v2 = vrot.slane %v6772_v36, 5  ;;  %v3830_v18 = vrot.slane %v3828_v50, 5  ;;  %v3849_v19 = vshrl.u32 %v5714_v15, 16  ;;  %v6720_v35 = vld [vmem:[%s6990_s21 + $0x204] sm:$0xff]   ;;  %v6721_v50 = vld [vmem:[%s6990_s21 + $0x210] sm:$0xff]  }
  0xdc   : > { %v3858_v38 = vshll.u32 %v7853_v23, 16  ;;  %v7881_v11 = vrot.slane %v3817_v28, 4  ;;  %v1448_v53 = vrot.slane %v1446_v61, 4  ;;  %v7886_v57 = vcombine.low %v3789_v62, %v3799_v34  ;;  %v7899_v28 = vld [vmem:[%s6990_s21 + $0x1b8] sm:$0x1] }
  0xdd   : > { %v6773_v36 = vld [vmem:[%s6990_s21 + $0xa0] sm:$0xf]  ;;  %v7904_v34 = vld [vmem:[%s6990_s21 + $0x1cc] sm:$0xf]  ;;  %v3873_v15 = vshrl.u32 %v5717_v10, 16  ;;  %v3876_v40 = vshll.u32 %v5717_v10, 16 }
  0xde   : > { %6293 = vmatmul.mubr.msk.bf16.gmra.mrb[16].mxu0 %vm800_vm4, %v6718_v60  ;;  %v5386_v60 = vrot.slane %v1321_v63, 9  ;;  %v7883_v63 = vrot.slane %v3834_v21, 5  ;;  %v1322_v21 = vld [vmem:[%s6990_s21 + $0x9c] sm:$0xe]  ;;  %v1453_v62 = vrot.slane %v6773_v36, 5  ;;  %8941 = vst [vmem:[#allocation12_spill] sm:$0xff] %v7904_v34 }
  0xdf   : > { %6141 = vmatmul.mubr.msk.bf16.vlgmr.msra.gmra.mrb[0].mxu1 %vm800_vm4, %v8939_v29  ;;  %6296 = vmatprep.mubr.msk.bf16.mxu0 %vm800_vm4, %v6719_v5  ;;  %v3827_v5 = vrot.slane %v3825_v14, 4  ;;  %v3840_v14 = vrot.slane %v3838_v8, 4  ;;  %v3851_v54 = vrot.slane %v3849_v19, 4  ;;  %v3854_v56 = vrot.slane %v3852_v25, 5  ;;  %v7920_v19 = vld [vmem:[%s6990_s21 + $0x1c4] sm:$0x1] }
  0xe0   : > { %6173 = vmatpush3.bf16.msra.mxu1 %v7525_v33  ;;  %6144 = vmatprep.mubr.msk.bf16.mxu1 %vm800_vm4, %v8940_v0  ;;  %v3862_v33 = vshrl.u32 %v7853_v23, 16  ;;  %v7896_v0 = vsel %vm7237_vm8, %v5386_v60, %v1446_v61  ;;  %v7906_v16 = vrot.slane %v3858_v38, 5  ;;  %v3823_v61 = vsel %vm7016_vm5, %v7881_v11, %v7873_v13  ;;  %v1323_v13 = vld [vmem:[%s6990_s21 + $0xa8] sm:$0xe] }
  0xe1   : > { %6376 = vmatprep.subr.bf16.mxu1 %v6974_v7  ;;  %v3831_v8 = vor.u32 %v3830_v18, %v3827_v5  ;;  %v7915_v60 = vsel %vm7237_vm8, %v1448_v53, %v1449_v2  ;;  %v3841_v5 = vor.u32 %v3840_v14, %v7883_v63  ;;  %v3844_v18 = vshll.u32 %v7899_v28, 16  ;;  %v7943_v7 = vld [vmem:[%s6990_s21 + $0x1d0] sm:$0x1] }
  0xe2   : > { %v3864_v29 = vrot.slane %v3862_v33, 4  ;;  %v8942_v25 = vcombine.low %v7641_v52, %v7649_v44  ;;  %v5387_v38 = vrot.slane %v1322_v21, 9  ;;  %v1460_v2 = vrot.slane %v7372_v24, 5  ;;  %v6774_v44 = vld [vmem:[%s6990_s21 + $0xa4] sm:$0x1]  ;;  %8944 = vst [vmem:[#allocation13_spill] sm:$0xff] %v7943_v7 }
  0xe3   : > { %v3882_v33 = vshll.u32 %v7904_v34, 16  ;;  %v3886_v10 = vshrl.u32 %v7904_v34, 16  ;;  %v3832_v52 = vrot.slane %v3831_v8, 4  ;;  %v1456_v11 = vrot.slane %v6774_v44, 5 }
  0xe4   : > { %v3875_v53 = vrot.slane %v3873_v15, 4  ;;  %v3878_v14 = vrot.slane %v3876_v40, 5  ;;  %v1455_v21 = vrot.slane %v1453_v62, 4  ;;  %v3855_v24 = vor.u32 %v3854_v56, %v3851_v54  ;;  %v6775_v40 = vld [vmem:[%s6990_s21 + $0xb0] sm:$0x1] }
  0xe5   : > { %v3865_v36 = vor.u32 %v3864_v29, %v7906_v16  ;;  %v3846_v8 = vrot.slane %v3844_v18, 5  ;;  %v1462_v15 = vrot.slane %v1460_v2, 4  ;;  %v1463_v44 = vrot.slane %v6775_v40, 5  ;;  %v1324_v56 = vld [vmem:[%s6990_s21 + $0xb4] sm:$0xe] }
  0xe6   : > { %6297 = vmatmul.mubr.msk.bf16.gmra.mrb[20].mxu0 %vm800_vm4, %v6720_v35  ;;  %v8943_v35 = vcombine.low %v7645_v51, %v7656_v42  ;;  %v3842_v42 = vrot.slane %v3841_v5, 4  ;;  %v7946_v47 = vrot.slane %v3882_v33, 5  ;;  %v3888_v54 = vrot.slane %v3886_v10, 4 }
  0xe7   : > { %6145 = vmatmul.mubr.msk.bf16.gmra.mrb[4].mxu1 %vm800_vm4, %v8942_v25  ;;  %6300 = vmatprep.mubr.msk.bf16.mxu0 %vm800_vm4, %v6721_v50  ;;  %v6722_v50 = vld [vmem:[%s6990_s21 + $0x21c] sm:$0xff]   ;;  %v3868_v25 = vshll.u32 %v7920_v19, 16  ;;  %v3837_v29 = vsel %vm7016_vm5, %v3832_v52, %v7883_v63  ;;  %v7954_v34 = vsel %vm7237_vm8, %v5387_v38, %v1453_v62  ;;  %v3879_v5 = vor.u32 %v3878_v14, %v3875_v53 }
  0xe8   : > { %6148 = vmatprep.mubr.msk.bf16.mxu1 %vm800_vm4, %v8943_v35  ;;  %v5388_v35 = vrot.slane %v1323_v13, 9  ;;  %v1467_v18 = vrot.slane %v7396_v30, 5  ;;  %v5720_v13 = vld [vmem:[%s6990_s21 + $0x1d4] sm:$0xf]  ;;  %v7960_v40 = vsel %vm7237_vm8, %v1455_v21, %v1456_v11  ;;  %v7962_v33 = vrot.slane %v3855_v24, 4 }
  0xe9   : > { %8945 = vst [vmem:[#allocation14_spill] sm:$0xff] %v7960_v40  ;;  %v7964_v10 = vrot.slane %v3865_v36, 4  ;;  %v7966_v51 = vrot.slane %v3868_v25, 5  ;;  %v3847_v63 = vsel %vm7016_vm5, %v3842_v42, %v3846_v8  ;;  %v3892_v62 = vshll.u32 %v7943_v7, 16  ;;  %v6724_v25 = vld [vmem:[%s6990_s21 + $0x234] sm:$0xff]  }
  0xea   : > { %v7973_v30 = vsel %vm7237_vm8, %v5388_v35, %v1460_v2  ;;  %v5389_v38 = vrot.slane %v1324_v56, 9  ;;  %v8947_v52 = vcombine.low %v7683_v6, %v7693_v12  ;;  %v7983_v11 = vsel %vm7237_vm8, %v1462_v15, %v1463_v44  ;;  %v7987_v2 = vld [vmem:[%s6990_s21 + $0x1d8] sm:$0xf]  ;;  %v8030_v44 = vld [vmem:[%s6990_s21 + $0x1e4] sm:$0xf] }
  0xeb   : > { %8946 = vst [vmem:[#allocation15_spill] sm:$0xff] %v7973_v30  ;;  %8948 = vst [vmem:[#allocation16_spill] sm:$0xff] %v7983_v11  ;;  %v3889_v53 = vor.u32 %v3888_v54, %v7946_v47  ;;  %v3897_v14 = vshrl.u32 %v5720_v13, 16  ;;  %v8950_v21 = vcombine.low %v7687_v41, %v7697_v26  ;;  %v8951_v6 = vsel %vm7016_vm5, %v7866_v17, %v7824_v32  ;;  %v8017_v17 = vld [vmem:[%s6990_s21 + $0x1dc] sm:$0x1] }
  0xec   : > { %8949 = vst [vmem:[#allocation17_spill] sm:$0xff] %v7987_v2  ;;  %v7998_v12 = vcombine.low %v8951_v6, %v3823_v61  ;;  %v1469_v24 = vrot.slane %v1467_v18, 4  ;;  %v1470_v36 = vrot.slane %v7402_v20, 5  ;;  %v8004_v42 = vcombine.low %v3837_v29, %v3847_v63  ;;  %8952 = vst [vmem:[#allocation18_spill] sm:$0xff] %v8017_v17  ;;  %v5723_v20 = vld [vmem:[%s6990_s21 + $0x1e0] sm:$0xf] }
  0xed   : > { %v8022_v8 = vrot.slane %v3892_v62, 5  ;;  %v8026_v35 = vsel %vm7237_vm8, %v5389_v38, %v1467_v18  ;;  %v3906_v15 = vshll.u32 %v7987_v2, 16  ;;  %8953 = vst [vmem:[#allocation19_spill] sm:$0xff] %v8030_v44  ;;  %v5726_v54 = vld [vmem:[%s6990_s21 + $0x1ec] sm:$0xf]  ;;  %v8033_v56 = vrot.slane %v3889_v53, 4 }
  0xee   : > { %6301 = vmatmul.mubr.msk.bf16.gmra.mrb[24].mxu0 %vm800_vm4, %v6722_v50  ;;  %v3900_v50 = vshll.u32 %v5720_v13, 16  ;;  %v8035_v29 = vrot.slane %v3897_v14, 4  ;;  %v3910_v13 = vshrl.u32 %v7987_v2, 16  ;;  %v8041_v63 = vld [vmem:[%s6990_s21 + $0x1f0] sm:$0xf]  ;;  %v8049_v62 = vsel %vm7237_vm8, %v1469_v24, %v1470_v36 }
  0xef   : > { %6149 = vmatmul.mubr.msk.bf16.gmra.mrb[8].mxu1 %vm800_vm4, %v8947_v52  ;;  %6304 = vmatprep.mubr.msk.bf16.mxu0 %vm800_vm4, %v6723_v9  ;;  %v8000_v9 = vrot.slane %v3879_v5, 4  ;;  %8954 = vst [vmem:[#allocation20_spill] sm:$0xff] %v8041_v63  ;;  %v3921_v38 = vshrl.u32 %v5723_v20, 16  ;;  %v3924_v52 = vshll.u32 %v5723_v20, 16  ;;  %v5729_v53 = vld [vmem:[%s6990_s21 + $0x1f8] sm:$0xf]  ;;  %v8956_v18 = vcombine.low %v7722_v46, %v7726_v58 }
  0xf0   : > { %6152 = vmatprep.mubr.msk.bf16.mxu1 %vm800_vm4, %v8950_v21  ;;  %v8037_v5 = vrot.slane %v3900_v50, 5  ;;  %v8053_v14 = vld [vmem:[%s6990_s21 + $0x1fc] sm:$0xf]  ;;  %v3930_v50 = vshll.u32 %v8030_v44, 16  ;;  %v3934_v21 = vshrl.u32 %v8030_v44, 16  ;;  %v3945_v6 = vshrl.u32 %v5726_v54, 16 }
  0xf1   : > { %8955 = vst [vmem:[#allocation21_spill] sm:$0xff] %v8053_v14  ;;  %v3948_v61 = vshll.u32 %v5726_v54, 16  ;;  %v8058_v41 = vrot.slane %v3906_v15, 5  ;;  %v3916_v24 = vshll.u32 %v8017_v17, 16  ;;  %v3954_v36 = vshll.u32 %v8041_v63, 16 }
  0xf2   : > { %v3958_v20 = vshrl.u32 %v8041_v63, 16  ;;  %v3969_v54 = vshrl.u32 %v5729_v53, 16  ;;  %v3978_v15 = vshll.u32 %v8053_v14, 16  ;;  %v3982_v26 = vshrl.u32 %v8053_v14, 16  ;;  %v5732_v32 = vld [vmem:[%s6990_s21 + $0x204] sm:$0xf] }
  0xf3   : > { %v8957_v44 = vcombine.low %v7730_v55, %v7735_v22  ;;  %v3912_v46 = vrot.slane %v3910_v13, 4  ;;  %v8083_v63 = vrot.slane %v3930_v50, 5  ;;  %v3936_v14 = vrot.slane %v3934_v21, 4  ;;  %v8086_v55 = vld [vmem:[%s6990_s21 + $0x1f4] sm:$0x1] }
  0xf4   : > { %v3947_v17 = vrot.slane %v3945_v6, 4  ;;  %v3950_v2 = vrot.slane %v3948_v61, 5  ;;  %v8088_v22 = vrot.slane %v3954_v36, 5  ;;  %v3993_v7 = vshrl.u32 %v5732_v32, 16  ;;  %v8091_v58 = vld [vmem:[%s6990_s21 + $0x200] sm:$0x1] }
  0xf5   : > { %v3996_v11 = vshll.u32 %v5732_v32, 16  ;;  %v3971_v13 = vrot.slane %v3969_v54, 4  ;;  %v3984_v50 = vrot.slane %v3982_v26, 4  ;;  %v3903_v21 = vor.u32 %v8037_v5, %v8035_v29 }
  0xf6   : > { %6305 = vmatmul.mubr.msk.bf16.gmra.mrb[28].mxu0 %vm800_vm4, %v6724_v25  ;;  %v3972_v25 = vshll.u32 %v5729_v53, 16  ;;  %v8081_v53 = vld [vmem:[%s6990_s21 + $0x1e8] sm:$0x1]  ;;  %v3913_v61 = vor.u32 %v3912_v46, %v8058_v41  ;;  %v8098_v6 = vrot.slane %v3916_v24, 5  ;;  %v3937_v32 = vor.u32 %v3936_v14, %v8083_v63 }
  0xf7   : > { %6153 = vmatmul.mubr.msk.bf16.gmra.mrb[12].mxu1 %vm800_vm4, %v8956_v18  ;;  %6310 = vmatprep.mubr.msk.bf16.mxu0 %vm800_vm4, %v7831_v27  ;;  %v3923_v27 = vrot.slane %v3921_v38, 4  ;;  %v3926_v18 = vrot.slane %v3924_v52, 5  ;;  %v8093_v52 = vrot.slane %v3978_v15, 5  ;;  %v3940_v36 = vshll.u32 %v8081_v53, 16 }
  0xf8   : > { %6156 = vmatprep.mubr.msk.bf16.mxu1 %vm800_vm4, %v8957_v44  ;;  %v3960_v44 = vrot.slane %v3958_v20, 4  ;;  %v3974_v38 = vrot.slane %v3972_v25, 5  ;;  %v8102_v20 = vld [vmem:[%s6990_s21 + $0x208] sm:$0xf]  ;;  %v3951_v40 = vor.u32 %v3950_v2, %v3947_v17  ;;  %v3964_v54 = vshll.u32 %v8086_v55, 16 }
  0xf9   : > { %8958 = vst [vmem:[#allocation22_spill] sm:$0xff] %v8102_v20  ;;  %v3927_v30 = vor.u32 %v3926_v18, %v3923_v27  ;;  %v5735_v25 = vld [vmem:[%s6990_s21 + $0x210] sm:$0xf]  ;;  %v3988_v29 = vshll.u32 %v8091_v58, 16  ;;  %v3995_v5 = vrot.slane %v3993_v7, 4  ;;  %v3998_v24 = vrot.slane %v3996_v11, 5 }
  0xfa   : > { %v3961_v26 = vor.u32 %v3960_v44, %v8088_v22  ;;  %v8959_v15 = vcombine.low %v7767_v43, %v7780_v39  ;;  %v3975_v2 = vor.u32 %v3974_v38, %v3971_v13  ;;  %v3985_v17 = vor.u32 %v3984_v50, %v8093_v52 }
  0xfb   : > { %v4002_v14 = vshll.u32 %v8102_v20, 16  ;;  %v8960_v46 = vcombine.low %v7808_v59, %v7815_v4  ;;  %v3904_v7 = vrot.slane %v3903_v21, 4  ;;  %v3914_v43 = vrot.slane %v3913_v61, 4  ;;  %v8131_v21 = vld [vmem:[%s6990_s21 + $0x214] sm:$0xf] }
  0xfc   : > { %v4020_v39 = vshll.u32 %v5735_v25, 16  ;;  %v3928_v11 = vrot.slane %v3927_v30, 4  ;;  %v3938_v27 = vrot.slane %v3937_v32, 4  ;;  %v3942_v18 = vrot.slane %v3940_v36, 5  ;;  %v8140_v61 = vld [vmem:[%s6990_s21 + $0x218] sm:$0x1] }
  0xfd   : > { %v3952_v44 = vrot.slane %v3951_v40, 4  ;;  %v3962_v13 = vrot.slane %v3961_v26, 4  ;;  %v3966_v38 = vrot.slane %v3964_v54, 5  ;;  %v3990_v50 = vrot.slane %v3988_v29, 5 }
  0xfe   : > { %6311 = vmatmul.mubr.msk.bf16.vlgmr.msra.gmra.mrb[0].mxu0 %vm800_vm4, %v7835_v3  ;;  %v4006_v3 = vshrl.u32 %v8102_v20, 16  ;;  %v3999_v59 = vor.u32 %v3998_v24, %v3995_v5  ;;  %v3976_v4 = vrot.slane %v3975_v2, 4  ;;  %v8128_v20 = vrot.slane %v4002_v14, 5 }
  0xff   : > { %6157 = vmatmul.mubr.msk.bf16.gmra.mrb[16].mxu1 %vm800_vm4, %v8959_v15  ;;  %6343 = vmatpush3.bf16.msra.mxu0 %v7609_v49  ;;  %v4017_v49 = vshrl.u32 %v5735_v25, 16  ;;  %v8126_v15 = vld [vmem:[%s6990_s21 + $0x20c] sm:$0x1]  ;;  %v3909_v30 = vsel %vm7016_vm5, %v3904_v7, %v8058_v41  ;;  %v3919_v40 = vsel %vm7016_vm5, %v3914_v43, %v8098_v6  ;;  %v4022_v32 = vrot.slane %v4020_v39, 5 }
 0x100   : > { %6160 = vmatprep.mubr.msk.bf16.mxu1 %vm800_vm4, %v8960_v46  ;;  %6314 = vmatprep.mubr.msk.bf16.mxu0 %vm800_vm4, %v7886_v57  ;;  %v3986_v46 = vrot.slane %v3985_v17, 4  ;;  %v4008_v57 = vrot.slane %v4006_v3, 4  ;;  %v3933_v54 = vsel %vm7016_vm5, %v3928_v11, %v8083_v63  ;;  %v3943_v25 = vsel %vm7016_vm5, %v3938_v27, %v3942_v18  ;;  %v5738_v3 = vld [vmem:[%s6990_s21 + $0x21c] sm:$0xf] }
 0x101   : > { %v4019_v36 = vrot.slane %v4017_v49, 4  ;;  %v3957_v26 = vsel %vm7016_vm5, %v3952_v44, %v8088_v22  ;;  %v4012_v41 = vshll.u32 %v8126_v15, 16  ;;  %v3967_v6 = vsel %vm7016_vm5, %v3962_v13, %v3966_v38  ;;  %v5785_v11 = vld [vmem:[%s6990_s21 + $0x1bc] sm:$0xe]  ;;  %v5786_v38 = vld [vmem:[%s6990_s21 + $0x1c8] sm:$0xe] }
 0x102   : > { %v8155_v29 = vrot.slane %v3999_v59, 4  ;;  %v4026_v63 = vshll.u32 %v8131_v21, 16  ;;  %v4030_v5 = vshrl.u32 %v8131_v21, 16  ;;  %v8961_v24 = vcombine.low %v7844_v1, %v7864_v48 }
 0x103   : > { %v3991_v22 = vsel %vm7016_vm5, %v3986_v46, %v3990_v50  ;;  %v4009_v2 = vor.u32 %v4008_v57, %v8128_v20  ;;  %v4036_v17 = vshll.u32 %v8140_v61, 16  ;;  %v8962_v1 = vcombine.low %v7896_v0, %v7915_v60 }
 0x104   : > { %v8963_v48 = vsel %vm7016_vm5, %v7964_v10, %v7966_v51  ;;  %v8965_v14 = vsel %vm7016_vm5, %v8033_v56, %v8022_v8  ;;  %v8966_v0 = vsel %vm7016_vm5, %v8000_v9, %v7946_v47  ;;  %v5406_v51 = vcombine.low %v8026_v35, %v8049_v62  ;;  %v8209_v56 = vld [vmem:[%s6990_s21 + $0x220] sm:$0xf] }
 0x105   : > { %v5754_v60 = vcombine.low %v8966_v0, %v8965_v14  ;;  %v4023_v10 = vor.u32 %v4022_v32, %v4019_v36  ;;  %v8202_v7 = vcombine.low %v3933_v54, %v3943_v25  ;;  %v8204_v43 = vcombine.low %v3957_v26, %v3967_v6  ;;  %v5787_v32 = vld [vmem:[%s6990_s21 + $0x1d4] sm:$0xe] }
 0x106   : > { %6315 = vmatmul.mubr.msk.bf16.gmra.mrb[4].mxu0 %vm800_vm4, %v7998_v12  ;;  %v3981_v12 = vsel %vm7016_vm5, %v3976_v4, %v8093_v52  ;;  %v8206_v8 = vrot.slane %v4012_v41, 5  ;;  %v4005_v47 = vsel %vm7016_vm5, %v8155_v29, %v8128_v20  ;;  %v8217_v9 = vrot.slane %v4026_v63, 5  ;;  %v8969_v63 = vld [vmem:[#allocation12_spill] sm:$0xff]  ;;  %v5744_v29 = vld [vmem:[%s6990_s21 + $0x234] sm:$0xf] }
 0x107   : > { %6161 = vmatmul.mubr.msk.bf16.gmra.mrb[20].mxu1 %vm800_vm4, %v8961_v24  ;;  %6318 = vmatprep.mubr.msk.bf16.mxu0 %vm800_vm4, %v8004_v42  ;;  %v8964_v42 = vsel %vm7016_vm5, %v7962_v33, %v7906_v16  ;;  %v5784_v16 = vld [vmem:[%s6990_s21 + $0x1b0] sm:$0xe]  ;;  %v8200_v33 = vcombine.low %v3909_v30, %v3919_v40  ;;  %v8211_v49 = vcombine.low %v3981_v12, %v3991_v22  ;;  %v4032_v39 = vrot.slane %v4030_v5, 4  ;;  %v8971_v12 = vld [vmem:[#allocation16_spill] sm:$0xff] }
 0x108   : > { %6164 = vmatprep.mubr.msk.bf16.mxu1 %vm800_vm4, %v8962_v1  ;;  %v5753_v52 = vcombine.low %v8964_v42, %v8963_v48  ;;  %v8220_v27 = vrot.slane %v4009_v2, 4  ;;  %v8222_v18 = vrot.slane %v4036_v17, 5  ;;  %v4041_v44 = vshrl.u32 %v5738_v3, 16  ;;  %v8970_v24 = vld [vmem:[#allocation15_spill] sm:$0xff]  ;;  %v8973_v2 = vld [vmem:[#allocation13_spill] sm:$0xff] }
 0x109   : > { %v5800_v13 = vrot.slane %v5784_v16, 9  ;;  %v8225_v50 = vrot.slane %v4023_v10, 4  ;;  %v4044_v59 = vshll.u32 %v5738_v3, 16  ;;  %v4050_v4 = vshll.u32 %v8209_v56, 16  ;;  %v8974_v48 = vld [vmem:[#allocation17_spill] sm:$0xff] }
 0x10a   : > { %v4500_v46 = vrot.slane %v7829_v31, 5  ;;  %v4503_v57 = vrot.slane %v7899_v28, 5  ;;  %v5801_v30 = vrot.slane %v5785_v11, 9  ;;  %v4507_v40 = vrot.slane %v7853_v23, 5  ;;  %v8967_v31 = vld [vmem:[#allocation14_spill] sm:$0xff] }
 0x10b   : > { %v4510_v36 = vrot.slane %v7920_v19, 5  ;;  %v4033_v54 = vor.u32 %v4032_v39, %v8217_v9  ;;  %v5802_v41 = vrot.slane %v5786_v38, 9  ;;  %v8968_v28 = vcombine.low %v7954_v34, %v8967_v31  ;;  %v8272_v3 = vld [vmem:[%s6990_s21 + $0x224] sm:$0x1] }
 0x10c   : > { %v8237_v25 = vsel %vm7237_vm8, %v5800_v13, %v4500_v46  ;;  %v4502_v26 = vrot.slane %v4500_v46, 4  ;;  %v4054_v23 = vshrl.u32 %v8209_v56, 16  ;;  %v8247_v19 = vsel %vm7237_vm8, %v5801_v30, %v4507_v40  ;;  %v8975_v13 = vld [vmem:[#allocation18_spill] sm:$0xff] }
 0x10d   : > { %v4509_v6 = vrot.slane %v4507_v40, 4  ;;  %v4514_v5 = vrot.slane %v8969_v63, 5  ;;  %v8972_v22 = vcombine.low %v8970_v24, %v8971_v12  ;;  %v4517_v17 = vrot.slane %v8973_v2, 5  ;;  %v8290_v40 = vld [vmem:[%s6990_s21 + $0x22c] sm:$0xf]  ;;  %v8976_v12 = vld [vmem:[#allocation19_spill] sm:$0xff] }
 0x10e   : > { %6319 = vmatmul.mubr.msk.bf16.gmra.mrb[8].mxu0 %vm800_vm4, %v5753_v52  ;;  %v8256_v34 = vsel %vm7237_vm8, %v4502_v26, %v4503_v57  ;;  %v5803_v1 = vrot.slane %v5787_v32, 9  ;;  %v4521_v42 = vrot.slane %v8974_v48, 5  ;;  %v5741_v52 = vld [vmem:[%s6990_s21 + $0x228] sm:$0xf]  ;;  %v4524_v38 = vrot.slane %v8975_v13, 5  ;;  %v6725_v26 = vld [vmem:[%s6990_s21 + $0xc0] sm:$0xff]  }
 0x10f   : > { %6165 = vmatmul.mubr.msk.bf16.gmra.mrb[24].mxu1 %vm800_vm4, %v8968_v28  ;;  %6322 = vmatprep.mubr.msk.bf16.mxu0 %vm800_vm4, %v5754_v60  ;;  %v5817_v14 = vcombine.low %v8237_v25, %v8256_v34  ;;  %v8265_v0 = vsel %vm7237_vm8, %v4509_v6, %v4510_v36  ;;  %v8269_v60 = vsel %vm7237_vm8, %v5802_v41, %v4514_v5  ;;  %v4516_v10 = vrot.slane %v4514_v5, 4  ;;  %v5788_v32 = vld [vmem:[%s6990_s21 + $0x1e0] sm:$0xe]  ;;  %v5789_v2 = vld [vmem:[%s6990_s21 + $0x1ec] sm:$0xe]  ;;  %v8978_v48 = vld [vmem:[#allocation8_spill] sm:$0xff] }
 0x110   : > { %6168 = vmatprep.mubr.msk.bf16.mxu1 %vm800_vm4, %v8972_v22  ;;  %v5818_v16 = vcombine.low %v8247_v19, %v8265_v0  ;;  %v8278_v39 = vsel %vm7237_vm8, %v5803_v1, %v4521_v42  ;;  %v4523_v11 = vrot.slane %v4521_v42, 4  ;;  %v4015_v46 = vsel %vm7016_vm5, %v8220_v27, %v8206_v8  ;;  %v5515_v27 = vld [vmem:[%s6990_s21 + $0x12c] sm:$0xf]  ;;  %v6786_v0 = vld [vmem:[%s6990_s21 + $0x154] sm:$0xf] }
 0x111   : > { %v8285_v57 = vrot.slane %v4041_v44, 4  ;;  %v8287_v30 = vrot.slane %v4044_v59, 5  ;;  %v8294_v36 = vsel %vm7237_vm8, %v4516_v10, %v4517_v17  ;;  %v8298_v41 = vrot.slane %v4050_v4, 5 }
 0x112   : > { %v4065_v31 = vshrl.u32 %v5741_v52, 16  ;;  %v5819_v28 = vcombine.low %v8269_v60, %v8294_v36  ;;  %v8304_v8 = vsel %vm7237_vm8, %v4523_v11, %v4524_v38  ;;  %v8307_v44 = vrot.slane %v4033_v54, 4  ;;  %v8979_v38 = vld [vmem:[#allocation20_spill] sm:$0xff] }
 0x113   : > { %v4060_v59 = vshll.u32 %v8272_v3, 16  ;;  %v4068_v6 = vshll.u32 %v5741_v52, 16  ;;  %v5820_v63 = vcombine.low %v8278_v39, %v8304_v8  ;;  %v8314_v4 = vrot.slane %v4054_v23, 4  ;;  %v6789_v8 = vld [vmem:[%s6990_s21 + $0x160] sm:$0xf] }
 0x114   : > { %v4074_v5 = vshll.u32 %v8290_v40, 16  ;;  %v5804_v24 = vrot.slane %v5788_v32, 9  ;;  %v4528_v22 = vrot.slane %v8976_v12, 5  ;;  %v4078_v54 = vshrl.u32 %v8290_v40, 16 }
 0x115   : > { %v2390_v23 = vshrl.u32 %v5515_v27, 16  ;;  %v2393_v17 = vshll.u32 %v5515_v27, 16  ;;  %v4067_v1 = vrot.slane %v4065_v31, 4  ;;  %v5805_v10 = vrot.slane %v5789_v2, 9  ;;  %v6726_v31 = vld [vmem:[%s6990_s21 + $0xcc] sm:$0xff]  }
 0x116   : > { %6323 = vmatmul.mubr.msk.bf16.gmra.mrb[12].mxu0 %vm800_vm4, %v8200_v33  ;;  %v4531_v33 = vrot.slane %v8081_v53, 5  ;;  %v8330_v35 = vsel %vm7237_vm8, %v5804_v24, %v4528_v22  ;;  %v4530_v62 = vrot.slane %v4528_v22, 4  ;;  %v4070_v53 = vrot.slane %v4068_v6, 5  ;;  %v6727_v24 = vld [vmem:[%s6990_s21 + $0xd8] sm:$0xff]  }
 0x117   : > { %6169 = vmatmul.mubr.msk.bf16.gmra.mrb[28].mxu1 %vm800_vm4, %v5406_v51  ;;  %6326 = vmatprep.mubr.msk.bf16.mxu0 %vm800_vm4, %v8202_v7  ;;  %v8977_v51 = vld [vmem:[#allocation7_spill] sm:$0xff]  ;;  %v2392_v42 = vrot.slane %v2390_v23, 4  ;;  %v2395_v52 = vrot.slane %v2393_v17, 5  ;;  %v5759_v11 = vcombine.low %v4005_v47, %v4015_v46  ;;  %v4535_v32 = vrot.slane %v8979_v38, 5  ;;  %v8356_v47 = vld [vmem:[%s6990_s21 + $0x238] sm:$0xf] }
 0x118   : > { %6174 = vmatprep.mubr.msk.bf16.mxu1 %vm800_vm4, %v6725_v26  ;;  %v2412_v7 = vsel %vm7016_vm5, %v8978_v48, %v8977_v51  ;;  %v8343_v13 = vsel %vm7237_vm8, %v4530_v62, %v4531_v33  ;;  %v4538_v26 = vrot.slane %v8086_v55, 5  ;;  %v4029_v27 = vsel %vm7016_vm5, %v8225_v50, %v8217_v9  ;;  %v5790_v9 = vld [vmem:[%s6990_s21 + $0x1f8] sm:$0xe]  ;;  %v8981_v51 = vld [vmem:[#allocation5_spill] sm:$0xff] }
 0x119   : > { %v4047_v20 = vor.u32 %v8287_v30, %v8285_v57  ;;  %v5821_v46 = vcombine.low %v8330_v35, %v8343_v13  ;;  %v2396_v6 = vor.u32 %v2395_v52, %v2392_v42  ;;  %v8361_v12 = vrot.slane %v4074_v5, 5  ;;  %v8375_v30 = vld [vmem:[%s6990_s21 + $0x230] sm:$0x1]  ;;  %v8982_v38 = vld [vmem:[#allocation21_spill] sm:$0xff] }
 0x11a   : > { %v4080_v55 = vrot.slane %v4078_v54, 4  ;;  %v8365_v22 = vsel %vm7237_vm8, %v5805_v10, %v4535_v32  ;;  %v4537_v2 = vrot.slane %v4535_v32, 4  ;;  %v4039_v50 = vsel %vm7016_vm5, %v8307_v44, %v8222_v18  ;;  %v8980_v44 = vld [vmem:[#allocation6_spill] sm:$0xff] }
 0x11b   : > { %v4057_v57 = vor.u32 %v8314_v4, %v8298_v41  ;;  %v4071_v33 = vor.u32 %v4070_v53, %v4067_v1  ;;  %v2397_v5 = vrot.slane %v2396_v6, 4  ;;  %v4089_v54 = vshrl.u32 %v5744_v29, 16 }
 0x11c   : > { %v4092_v23 = vshll.u32 %v5744_v29, 16  ;;  %v4098_v17 = vshll.u32 %v8356_v47, 16  ;;  %v8382_v62 = vsel %vm7237_vm8, %v4537_v2, %v4538_v26  ;;  %v4102_v18 = vshrl.u32 %v8356_v47, 16 }
 0x11d   : > { %v2402_v4 = vsel %vm7016_vm5, %v2397_v5, %v8980_v44  ;;  %v5806_v1 = vrot.slane %v5790_v9, 9  ;;  %v4062_v48 = vrot.slane %v4060_v59, 5  ;;  %v4084_v53 = vshll.u32 %v8375_v30, 16  ;;  %v5791_v9 = vld [vmem:[%s6990_s21 + $0x204] sm:$0xe]  ;;  %v8983_v44 = vld [vmem:[#allocation22_spill] sm:$0xff] }
 0x11e   : > { %6327 = vmatmul.mubr.msk.bf16.gmra.mrb[16].mxu0 %vm800_vm4, %v8204_v43  ;;  %v5822_v43 = vcombine.low %v8365_v22, %v8382_v62  ;;  %v8397_v42 = vcombine.low %v2402_v4, %v2412_v7  ;;  %v5760_v52 = vcombine.low %v4029_v27, %v4039_v50  ;;  %v4048_v10 = vrot.slane %v4047_v20, 4  ;;  %v8404_v59 = vld [vmem:[%s6990_s21 + $0x23c] sm:$0x1]  ;;  %v6729_v20 = vld [vmem:[%s6990_s21 + $0xf0] sm:$0xff]  }
 0x11f   : > { %6175 = vmatmul.mubr.msk.bf16.vlgmr.msra.gmra.mrb[0].mxu1 %vm800_vm4, %v6726_v31  ;;  %6330 = vmatprep.mubr.msk.bf16.mxu0 %vm800_vm4, %v8211_v49  ;;  %v4081_v49 = vor.u32 %v4080_v55, %v8361_v12  ;;  %v4542_v32 = vrot.slane %v8982_v38, 5  ;;  %v4545_v26 = vrot.slane %v8091_v58, 5  ;;  %v4058_v31 = vrot.slane %v4057_v57, 4  ;;  %v5792_v38 = vld [vmem:[%s6990_s21 + $0x210] sm:$0xe] }
 0x120   : > { %6377 = vmatpush3.bf16.msra.mxu1 %v8981_v51  ;;  %6178 = vmatprep.mubr.msk.bf16.mxu1 %vm800_vm4, %v6727_v24  ;;  %v4072_v29 = vrot.slane %v4071_v33, 4  ;;  %v4091_v6 = vrot.slane %v4089_v54, 4  ;;  %v4094_v2 = vrot.slane %v4092_v23, 5  ;;  %v6728_v24 = vld [vmem:[%s6990_s21 + $0xe4] sm:$0xff]   ;;  %v8406_v55 = vrot.slane %v4098_v17, 5 }
 0x121   : > { %v4104_v5 = vrot.slane %v4102_v18, 4  ;;  %v8410_v7 = vsel %vm7237_vm8, %v5806_v1, %v4542_v32  ;;  %v4544_v27 = vrot.slane %v4542_v32, 4  ;;  %v4082_v50 = vrot.slane %v4081_v49, 4  ;;  %v5780_v51 = vld [vmem:[%s6990_s21 + $0x180] sm:$0xe] }
 0x122   : > { %v4086_v58 = vrot.slane %v4084_v53, 5  ;;  %v4053_v57 = vsel %vm7016_vm5, %v4048_v10, %v8298_v41  ;;  %v5807_v54 = vrot.slane %v5791_v9, 9  ;;  %v4063_v23 = vsel %vm7016_vm5, %v4058_v31, %v4062_v48  ;;  %v6776_v53 = vld [vmem:[%s6990_s21 + $0x184] sm:$0xf] }
 0x123   : > { %v8418_v33 = vsel %vm7237_vm8, %v4544_v27, %v4545_v26  ;;  %v4108_v17 = vshll.u32 %v8404_v59, 16  ;;  %v4549_v4 = vrot.slane %v8983_v44, 5  ;;  %v4077_v41 = vsel %vm7016_vm5, %v4072_v29, %v8361_v12  ;;  %v6730_v29 = vld [vmem:[%s6990_s21 + $0xfc] sm:$0xff]  }
 0x124   : > { %v5823_v18 = vcombine.low %v8410_v7, %v8418_v33  ;;  %v4105_v1 = vor.u32 %v4104_v5, %v8406_v55  ;;  %v4552_v48 = vrot.slane %v8126_v15, 5  ;;  %v4087_v49 = vsel %vm7016_vm5, %v4082_v50, %v4086_v58  ;;  %v6731_v5 = vld [vmem:[%s6990_s21 + $0x108] sm:$0xff]  }
 0x125   : > { %v8441_v10 = vsel %vm7237_vm8, %v5807_v54, %v4549_v4  ;;  %v4551_v12 = vrot.slane %v4549_v4, 4  ;;  %v5761_v32 = vcombine.low %v4053_v57, %v4063_v23  ;;  %v4110_v26 = vrot.slane %v4108_v17, 5  ;;  %v5781_v23 = vld [vmem:[%s6990_s21 + $0x18c] sm:$0xe]  ;;  %v6778_v4 = vld [vmem:[%s6990_s21 + $0x190] sm:$0xf] }
 0x126   : > { %6331 = vmatmul.mubr.msk.bf16.gmra.mrb[20].mxu0 %vm800_vm4, %v5759_v11  ;;  %v4095_v11 = vor.u32 %v4094_v2, %v4091_v6  ;;  %v5796_v31 = vrot.slane %v5780_v51, 9  ;;  %v5762_v6 = vcombine.low %v4077_v41, %v4087_v49  ;;  %v4106_v9 = vrot.slane %v4105_v1, 4  ;;  %v6779_v49 = vld [vmem:[%s6990_s21 + $0x19c] sm:$0xf] }
 0x127   : > { %6179 = vmatmul.mubr.msk.bf16.gmra.mrb[4].mxu1 %vm800_vm4, %v6728_v24  ;;  %6334 = vmatprep.mubr.msk.bf16.mxu0 %vm800_vm4, %v5760_v52  ;;  %v4472_v52 = vrot.slane %v6776_v53, 5  ;;  %v8446_v15 = vsel %vm7237_vm8, %v4551_v12, %v4552_v48  ;;  %v5808_v58 = vrot.slane %v5792_v38, 9  ;;  %v4556_v57 = vrot.slane %v8131_v21, 5  ;;  %v5782_v48 = vld [vmem:[%s6990_s21 + $0x198] sm:$0xe] }
 0x128   : > { %6182 = vmatprep.mubr.msk.bf16.mxu1 %vm800_vm4, %v6729_v20  ;;  %v4096_v2 = vrot.slane %v4095_v11, 4  ;;  %v5824_v24 = vcombine.low %v8441_v10, %v8446_v15  ;;  %v6777_v20 = vld [vmem:[%s6990_s21 + $0x188] sm:$0x1]  ;;  %v4559_v54 = vrot.slane %v8140_v61, 5  ;;  %v4111_v61 = vsel %vm7016_vm5, %v4106_v9, %v4110_v26  ;;  %v5793_v11 = vld [vmem:[%s6990_s21 + $0x21c] sm:$0xe] }
 0x129   : > { %v4474_v27 = vrot.slane %v4472_v52, 4  ;;  %v4475_v50 = vrot.slane %v6777_v20, 5  ;;  %v8459_v17 = vsel %vm7237_vm8, %v5808_v58, %v4556_v57  ;;  %v4558_v44 = vrot.slane %v4556_v57, 4  ;;  %v6780_v26 = vld [vmem:[%s6990_s21 + $0x194] sm:$0x1]  ;;  %v6733_v20 = vld [vmem:[%s6990_s21 + $0x120] sm:$0xff]  }
 0x12a   : > { %v4101_v21 = vsel %vm7016_vm5, %v4096_v2, %v8406_v55  ;;  %v4479_v41 = vrot.slane %v6778_v4, 5  ;;  %v4473_v1 = vsel %vm7237_vm8, %v5796_v31, %v4472_v52  ;;  %v4486_v53 = vrot.slane %v6779_v49, 5  ;;  %v8984_v58 = vld [vmem:[#allocation9_spill] sm:$0xff]  ;;  %v6794_v10 = vld [vmem:[%s6990_s21 + $0x17c] sm:$0x1] }
 0x12b   : > { %v4476_v51 = vsel %vm7237_vm8, %v4474_v27, %v4475_v50  ;;  %v8479_v55 = vsel %vm7237_vm8, %v4558_v44, %v4559_v54  ;;  %v5797_v12 = vrot.slane %v5781_v23, 9  ;;  %v5809_v52 = vrot.slane %v5793_v11, 9  ;;  %v5794_v44 = vld [vmem:[%s6990_s21 + $0x228] sm:$0xe]  ;;  %v5783_v11 = vld [vmem:[%s6990_s21 + $0x1a4] sm:$0xe] }
 0x12c   : > { %v5825_v38 = vcombine.low %v8459_v17, %v8479_v55  ;;  %v4563_v31 = vrot.slane %v8209_v56, 5  ;;  %v5813_v2 = vcombine.low %v4473_v1, %v4476_v51  ;;  %v4481_v9 = vrot.slane %v4479_v41, 4  ;;  %v8985_v56 = vld [vmem:[#allocation10_spill] sm:$0xff] }
 0x12d   : > { %v4566_v27 = vrot.slane %v8272_v3, 5  ;;  %v4488_v50 = vrot.slane %v4486_v53, 4  ;;  %v4489_v57 = vrot.slane %v8984_v58, 5  ;;  %v4480_v3 = vsel %vm7237_vm8, %v5797_v12, %v4479_v41 }
 0x12e   : > { %6335 = vmatmul.mubr.msk.bf16.gmra.mrb[24].mxu0 %vm800_vm4, %v5761_v32  ;;  %v5763_v32 = vcombine.low %v4101_v21, %v4111_v61  ;;  %v8491_v54 = vsel %vm7237_vm8, %v5809_v52, %v4563_v31  ;;  %v4565_v23 = vrot.slane %v4563_v31, 4  ;;  %v4493_v21 = vrot.slane %v8985_v56, 5  ;;  %v8986_v31 = vld [vmem:[#allocation11_spill] sm:$0xff]  ;;  %v6781_v56 = vld [vmem:[%s6990_s21 + $0x124] sm:$0xf] }
 0x12f   : > { %6183 = vmatmul.mubr.msk.bf16.gmra.mrb[8].mxu1 %vm800_vm4, %v6730_v29  ;;  %6338 = vmatprep.mubr.msk.bf16.mxu0 %vm800_vm4, %v5762_v6  ;;  %v4482_v29 = vrot.slane %v6780_v26, 5  ;;  %v6732_v6 = vld [vmem:[%s6990_s21 + $0x114] sm:$0xff]   ;;  %v5810_v49 = vrot.slane %v5794_v44, 9  ;;  %v4570_v41 = vrot.slane %v8290_v40, 5  ;;  %v4573_v12 = vrot.slane %v8375_v30, 5 }
 0x130   : > { %6186 = vmatprep.mubr.msk.bf16.mxu1 %vm800_vm4, %v6731_v5  ;;  %v5798_v5 = vrot.slane %v5782_v48, 9  ;;  %v8498_v61 = vsel %vm7237_vm8, %v4565_v23, %v4566_v27  ;;  %v4490_v48 = vsel %vm7237_vm8, %v4488_v50, %v4489_v57  ;;  %v4495_v52 = vrot.slane %v4493_v21, 4 }
 0x131   : > { %v4483_v4 = vsel %vm7237_vm8, %v4481_v9, %v4482_v29  ;;  %v5826_v1 = vcombine.low %v8491_v54, %v8498_v61  ;;  %v5799_v29 = vrot.slane %v5783_v11, 9  ;;  %v6734_v9 = vld [vmem:[%s6990_s21 + $0x12c] sm:$0xff]   ;;  %v4577_v11 = vrot.slane %v8356_v47, 5 }
 0x132   : > { %v4487_v51 = vsel %vm7237_vm8, %v5798_v5, %v4486_v53  ;;  %v5814_v26 = vcombine.low %v4480_v3, %v4483_v4  ;;  %v8522_v53 = vsel %vm7237_vm8, %v5810_v49, %v4570_v41  ;;  %v4572_v5 = vrot.slane %v4570_v41, 4 }
 0x133   : > { %v5815_v27 = vcombine.low %v4487_v51, %v4490_v48  ;;  %v4494_v57 = vsel %vm7237_vm8, %v5799_v29, %v4493_v21  ;;  %v2375_v3 = vshll.u32 %v6781_v56, 16  ;;  %v2379_v4 = vshrl.u32 %v6781_v56, 16 }
 0x134   : > { %v8527_v40 = vsel %vm7237_vm8, %v4572_v5, %v4573_v12  ;;  %v4580_v21 = vrot.slane %v8404_v59, 5  ;;  %v6736_v12 = vld [vmem:[%s6990_s21 + $0x144] sm:$0xff]   ;;  %v6737_v59 = vld [vmem:[%s6990_s21 + $0x150] sm:$0xff]   ;;  %v2553_v15 = vshll.u32 %v6794_v10, 16 }
 0x135   : > { %v5827_v44 = vcombine.low %v8522_v53, %v8527_v40  ;;  %v2381_v29 = vrot.slane %v2379_v4, 4  ;;  %v6739_v4 = vld [vmem:[%s6990_s21 + $0x168] sm:$0xff]  }
 0x136   : > { %6339 = vmatmul.mubr.msk.bf16.gmra.mrb[28].mxu0 %vm800_vm4, %v5763_v32  ;;  %v5512_v32 = vld [vmem:[%s6990_s21 + $0x120] sm:$0xf] }
 0x137   : > { %6187 = vmatmul.mubr.msk.bf16.gmra.mrb[12].mxu1 %vm800_vm4, %v6732_v6  ;;  %6344 = vmatprep.mubr.msk.bf16.mxu0 %vm800_vm4, %v5813_v2  ;;  %v4496_v6 = vrot.slane %v8986_v31, 5  ;;  %v5795_v2 = vld [vmem:[%s6990_s21 + $0x234] sm:$0xe]  ;;  %v2366_v50 = vshrl.u32 %v5512_v32, 16  ;;  %v2369_v58 = vshll.u32 %v5512_v32, 16  ;;  %v4579_v32 = vrot.slane %v4577_v11, 4 }
 0x138   : > { %6190 = vmatprep.mubr.msk.bf16.mxu1 %vm800_vm4, %v6733_v20  ;;  %v6735_v20 = vld [vmem:[%s6990_s21 + $0x138] sm:$0xff]   ;;  %v5811_v30 = vrot.slane %v5795_v2, 9  ;;  %v6782_v2 = vld [vmem:[%s6990_s21 + $0x128] sm:$0x1] }
 0x139   : > { %v4497_v23 = vsel %vm7237_vm8, %v4495_v52, %v4496_v6  ;;  %v2368_v51 = vrot.slane %v2366_v50, 4  ;;  %v2371_v48 = vrot.slane %v2369_v58, 5  ;;  %v8549_v47 = vsel %vm7237_vm8, %v4579_v32, %v4580_v21  ;;  %v5518_v52 = vld [vmem:[%s6990_s21 + $0x138] sm:$0xf] }
 0x13a   : > { %v8544_v49 = vsel %vm7237_vm8, %v5811_v30, %v4577_v11  ;;  %v5816_v41 = vcombine.low %v4494_v57, %v4497_v23  ;;  %v2417_v5 = vshll.u32 %v5518_v52, 16  ;;  %v5521_v57 = vld [vmem:[%s6990_s21 + $0x144] sm:$0xf]  ;;  %v6738_v23 = vld [vmem:[%s6990_s21 + $0x15c] sm:$0xff]  }
 0x13b   : > { %v5828_v31 = vcombine.low %v8544_v49, %v8549_v47  ;;  %v2372_v6 = vor.u32 %v2371_v48, %v2368_v51  ;;  %v2438_v51 = vshrl.u32 %v5521_v57, 16  ;;  %v2441_v48 = vshll.u32 %v5521_v57, 16 }
 0x13d   : > { %v2373_v30 = vrot.slane %v2372_v6, 4  ;;  %v6785_v6 = vld [vmem:[%s6990_s21 + $0x140] sm:$0x1]  ;;  %v2443_v60 = vrot.slane %v2441_v48, 5  ;;  %v6788_v48 = vld [vmem:[%s6990_s21 + $0x158] sm:$0x1] }
 0x13e   : > { %6345 = vmatmul.mubr.msk.bf16.vlgmr.msra.gmra.mrb[0].mxu0 %vm800_vm4, %v5814_v26  ;;  %v2377_v26 = vrot.slane %v2375_v3, 5  ;;  %v5524_v3 = vld [vmem:[%s6990_s21 + $0x150] sm:$0xf]  ;;  %v2433_v19 = vshll.u32 %v6785_v6, 16 }
 0x13f   : > { %6191 = vmatmul.mubr.msk.bf16.gmra.mrb[16].mxu1 %vm800_vm4, %v6734_v9  ;;  %6348 = vmatprep.mubr.msk.bf16.mxu0 %vm800_vm4, %v5815_v27  ;;  %v2385_v9 = vshll.u32 %v6782_v2, 16  ;;  %v2414_v27 = vshrl.u32 %v5518_v52, 16  ;;  %v2465_v52 = vshll.u32 %v5524_v3, 16 }
 0x140   : > { %6194 = vmatprep.mubr.msk.bf16.mxu1 %vm800_vm4, %v6735_v20  ;;  %v2382_v45 = vor.u32 %v2381_v29, %v2377_v26  ;;  %v6783_v20 = vld [vmem:[%s6990_s21 + $0x13c] sm:$0xf]  ;;  %v2378_v32 = vsel %vm7016_vm5, %v2373_v30, %v2377_v26  ;;  %v2435_v30 = vrot.slane %v2433_v19, 5 }
 0x141   : > { %v2423_v50 = vshll.u32 %v6783_v20, 16  ;;  %v2427_v58 = vshrl.u32 %v6783_v20, 16  ;;  %v2387_v25 = vrot.slane %v2385_v9, 5  ;;  %v2416_v34 = vrot.slane %v2414_v27, 4 }
 0x142   : > { %v2383_v56 = vrot.slane %v2382_v45, 4  ;;  %v2475_v45 = vshrl.u32 %v6786_v0, 16  ;;  %v2440_v27 = vrot.slane %v2438_v51, 4  ;;  %v2467_v20 = vrot.slane %v2465_v52, 5 }
 0x143   : > { %v8568_v11 = vrot.slane %v2423_v50, 5  ;;  %v2429_v21 = vrot.slane %v2427_v58, 4  ;;  %v6740_v50 = vld [vmem:[%s6990_s21 + $0x174] sm:$0xff]  }
 0x144   : > { %v2388_v26 = vsel %vm7016_vm5, %v2383_v56, %v2387_v25  ;;  %v5527_v56 = vld [vmem:[%s6990_s21 + $0x15c] sm:$0xf] }
 0x145   : > { %v2430_v9 = vor.u32 %v2429_v21, %v8568_v11  ;;  %v5545_v58 = vcombine.low %v2378_v32, %v2388_v26  ;;  %v2481_v32 = vshll.u32 %v6788_v48, 16  ;;  %v2489_v39 = vshll.u32 %v5527_v56, 16 }
 0x146   : > { %6349 = vmatmul.mubr.msk.bf16.gmra.mrb[4].mxu0 %vm800_vm4, %v5816_v41  ;;  %v6784_v41 = vld [vmem:[%s6990_s21 + $0x148] sm:$0xf] }
 0x147   : > { %6195 = vmatmul.mubr.msk.bf16.gmra.mrb[20].mxu1 %vm800_vm4, %v6736_v12  ;;  %6352 = vmatprep.mubr.msk.bf16.mxu0 %vm800_vm4, %v5817_v14  ;;  %v2419_v14 = vrot.slane %v2417_v5, 5  ;;  %v2447_v12 = vshll.u32 %v6784_v41, 16  ;;  %v2451_v29 = vshrl.u32 %v6784_v41, 16  ;;  %v2486_v41 = vshrl.u32 %v5527_v56, 16  ;;  %v5533_v56 = vld [vmem:[%s6990_s21 + $0x174] sm:$0xf] }
 0x148   : > { %6198 = vmatprep.mubr.msk.bf16.mxu1 %vm800_vm4, %v6737_v59  ;;  %v2462_v59 = vshrl.u32 %v5524_v3, 16  ;;  %v6787_v3 = vld [vmem:[%s6990_s21 + $0x14c] sm:$0x1] }
 0x149   : > { %v2420_v2 = vor.u32 %v2419_v14, %v2416_v34  ;;  %v8588_v36 = vrot.slane %v2447_v12, 5  ;;  %v2431_v34 = vrot.slane %v2430_v9, 4  ;;  %v2444_v14 = vor.u32 %v2443_v60, %v2440_v27  ;;  %v5530_v12 = vld [vmem:[%s6990_s21 + $0x168] sm:$0xf] }
 0x14a   : > { %v2464_v5 = vrot.slane %v2462_v59, 4  ;;  %v2499_v59 = vshrl.u32 %v6789_v8, 16  ;;  %v2510_v35 = vshrl.u32 %v5530_v12, 16  ;;  %v2513_v13 = vshll.u32 %v5530_v12, 16 }
 0x14b   : > { %v2421_v25 = vrot.slane %v2420_v2, 4  ;;  %v2436_v26 = vsel %vm7016_vm5, %v2431_v34, %v2435_v30  ;;  %v2445_v6 = vrot.slane %v2444_v14, 4  ;;  %v2483_v9 = vrot.slane %v2481_v32, 5 }
 0x14c   : > { %v2468_v51 = vor.u32 %v2467_v20, %v2464_v5  ;;  %v2488_v27 = vrot.slane %v2486_v41, 4  ;;  %v2501_v20 = vrot.slane %v2499_v59, 4  ;;  %v6793_v41 = vld [vmem:[%s6990_s21 + $0x170] sm:$0x1] }
 0x14d   : > { %v2426_v52 = vsel %vm7016_vm5, %v2421_v25, %v8568_v11  ;;  %v2450_v25 = vsel %vm7016_vm5, %v2445_v6, %v8588_v36  ;;  %v2529_v7 = vshll.u32 %v6793_v41, 16 }
 0x14e   : > { %6353 = vmatmul.mubr.msk.bf16.gmra.mrb[8].mxu0 %vm800_vm4, %v5818_v16  ;;  %v2471_v16 = vshll.u32 %v6786_v0, 16  ;;  %v2469_v2 = vrot.slane %v2468_v51, 4  ;;  %v5547_v11 = vcombine.low %v2426_v52, %v2436_v26 }
 0x14f   : > { %6199 = vmatmul.mubr.msk.bf16.gmra.mrb[24].mxu1 %vm800_vm4, %v6738_v23  ;;  %6356 = vmatprep.mubr.msk.bf16.mxu0 %vm800_vm4, %v5819_v28  ;;  %v2453_v28 = vrot.slane %v2451_v29, 4  ;;  %v2477_v23 = vrot.slane %v2475_v45, 4 }
 0x150   : > { %6202 = vmatprep.mubr.msk.bf16.mxu1 %vm800_vm4, %v6739_v4  ;;  %v8591_v57 = vrot.slane %v2471_v16, 5  ;;  %v2457_v4 = vshll.u32 %v6787_v3, 16 }
 0x151   : > { %v2454_v21 = vor.u32 %v2453_v28, %v8588_v36  ;;  %v2491_v28 = vrot.slane %v2489_v39, 5  ;;  %v6791_v36 = vld [vmem:[%s6990_s21 + $0x164] sm:$0x1] }
 0x152   : > { %v2478_v29 = vor.u32 %v2477_v23, %v8591_v57  ;;  %v2459_v19 = vrot.slane %v2457_v4, 5  ;;  %v2474_v14 = vsel %vm7016_vm5, %v2469_v2, %v8591_v57  ;;  %v2505_v3 = vshll.u32 %v6791_v36, 16 }
 0x153   : > { %v2455_v45 = vrot.slane %v2454_v21, 4  ;;  %v2492_v62 = vor.u32 %v2491_v28, %v2488_v27  ;;  %v2534_v4 = vshrl.u32 %v5533_v56, 16  ;;  %v2537_v57 = vshll.u32 %v5533_v56, 16  ;;  %v6792_v21 = vld [vmem:[%s6990_s21 + $0x178] sm:$0xf] }
 0x154   : > { %v2479_v60 = vrot.slane %v2478_v29, 4  ;;  %v2543_v51 = vshll.u32 %v6792_v21, 16  ;;  %v2547_v48 = vshrl.u32 %v6792_v21, 16  ;;  %v2507_v39 = vrot.slane %v2505_v3, 5 }
 0x155   : > { %v2460_v34 = vsel %vm7016_vm5, %v2455_v45, %v2459_v19  ;;  %v2493_v12 = vrot.slane %v2492_v62, 4  ;;  %v2531_v19 = vrot.slane %v2529_v7, 5  ;;  %v2555_v2 = vrot.slane %v2553_v15, 5 }
 0x156   : > { %6357 = vmatmul.mubr.msk.bf16.gmra.mrb[12].mxu0 %vm800_vm4, %v5820_v63  ;;  %v2495_v63 = vshll.u32 %v6789_v8, 16  ;;  %v2484_v22 = vsel %vm7016_vm5, %v2479_v60, %v2483_v9  ;;  %v5548_v33 = vcombine.low %v2450_v25, %v2460_v34  ;;  %v2536_v8 = vrot.slane %v2534_v4, 4  ;;  %v8704_v34 = vld [vmem:[%s8906_s3] ss:$0 sm:$0xff] }
 0x157   : > { %6203 = vmatmul.mubr.msk.bf16.gmra.mrb[28].mxu1 %vm800_vm4, %v6740_v50  ;;  %6360 = vmatprep.mubr.msk.bf16.mxu0 %vm800_vm4, %v5821_v46  ;;  %v6790_v46 = vld [vmem:[%s6990_s21 + $0x16c] sm:$0xf]  ;;  %v2512_v50 = vrot.slane %v2510_v35, 4  ;;  %v2545_v59 = vrot.slane %v2543_v51, 5  ;;  %v2549_v52 = vrot.slane %v2547_v48, 4  ;;  %s5307_s21 = sshll.u32 %s282_s12, 7 }
 0x158   : > { %6224 = vmatprep.mubr.msk.bf16.mxu1 %vm800_vm4, %v5545_v58  ;;  %v2519_v0 = vshll.u32 %v6790_v46, 16  ;;  %v2523_v16 = vshrl.u32 %v6790_v46, 16  ;;  %v2497_v5 = vrot.slane %v2495_v63, 5  ;;  %v2515_v58 = vrot.slane %v2513_v13, 5  ;;  %s8716_s22 = scalar_lea.vmem [#allocation2], %s5307_s21 }
 0x159   : > { %v2539_v63 = vrot.slane %v2537_v57, 5  ;;  %s5165_s26 = sshll.u32 %s8716_s22, 4  ;;  %s8847_s26 = int_to_ptr.vmem [resolvable:$true] %s5165_s26 }
 0x15a   : > { %v2521_v30 = vrot.slane %v2519_v0, 5  ;;  %v2525_v23 = vrot.slane %v2523_v16, 4  ;;  %v2498_v35 = vsel %vm7016_vm5, %v2493_v12, %v2497_v5  ;;  %v2550_v0 = vor.u32 %v2549_v52, %v2545_v59  ;;  %s6795_s6 = scalar_lea.vmem %s8847_s26, 2048  ;;  %p6802_p1 = scmp.lt.s32.totalorder %s8847_s26, %s6800_s8 }
 0x15b   : > { %v2540_v46 = vor.u32 %v2539_v63, %v2536_v8  ;;  %p6796_p12 = scmp.ne.s32.totalorder %s8847_s26, %s6795_s6  ;;  %p6803_p2 = scmp.lt.s32.totalorder %s6801_s9, %s6795_s6 }
 0x15c   : > { %v2526_v32 = vor.u32 %v2525_v23, %v2521_v30  ;;  %v2551_v45 = vrot.slane %v2550_v0, 4  ;;  %v8698_v23 = vld [vmem:[%s8905_s2] ss:$0 sm:$0xff] }
 0x15d   : > { %v2541_v16 = vrot.slane %v2540_v46, 4  ;;  %p6797_p13 = pnand %p6796_p12, %p6944_p4  ;;  %p6804_p3 = por %p6803_p2, %p6802_p1 }
 0x15e   : > { %6361 = vmatmul.mubr.msk.bf16.gmra.mrb[16].mxu0 %vm800_vm4, %v5822_v43  ;;  %v2502_v43 = vor.u32 %v2501_v20, %v2497_v5  ;;  %v2527_v6 = vrot.slane %v2526_v32, 4  ;;  %v2556_v27 = vsel %vm7016_vm5, %v2551_v45, %v2555_v2 }
 0x15f   : > { %6225 = vmatmul.mubr.msk.bf16.vlgmr.msra.gmra.mrb[16].mxu1 %vm800_vm4, %v8397_v42  ;;  %6364 = vmatprep.mubr.msk.bf16.mxu0 %vm800_vm4, %v5823_v18  ;;  %v2516_v42 = vor.u32 %v2515_v58, %v2512_v50  ;;  %v5549_v18 = vcombine.low %v2474_v14, %v2484_v22  ;;  %v2546_v9 = vsel %vm7016_vm5, %v2541_v16, %v2545_v59  ;;  %p6798_p0 = pneg %p6797_p13 }
 0x160   : > { %6228 = vmatprep.mubr.msk.bf16.mxu1 %vm800_vm4, %v5547_v11  ;;  %v2503_v29 = vrot.slane %v2502_v43, 4  ;;  %v2532_v17 = vsel %vm7016_vm5, %v2527_v6, %v2531_v19  ;;  %v5552_v60 = vcombine.low %v2546_v9, %v2556_v27 }
 0x161   : > { %v2517_v26 = vrot.slane %v2516_v42, 4  ;;  %p6805_p5 = pnand %p6804_p3, %p6798_p0 }
 0x162   : > { %v2508_v13 = vsel %vm7016_vm5, %v2503_v29, %v2507_v39 }
 0x163   : > { %v5550_v55 = vcombine.low %v2498_v35, %v2508_v13 }
 0x166   : > { %6365 = vmatmul.mubr.msk.bf16.gmra.mrb[20].mxu0 %vm800_vm4, %v5824_v24  ;;  %v2522_v24 = vsel %vm7016_vm5, %v2517_v26, %v2521_v30 }
 0x167   : > { %6229 = vmatmul.mubr.msk.bf16.gmra.mrb[20].mxu1 %vm800_vm4, %v5548_v33  ;;  %6368 = vmatprep.mubr.msk.bf16.mxu0 %vm800_vm4, %v5825_v38  ;;  %v5551_v38 = vcombine.low %v2522_v24, %v2532_v17 }
 0x168   : > { %6232 = vmatprep.mubr.msk.bf16.mxu1 %vm800_vm4, %v5549_v18 }
 0x16e   : > { %6369 = vmatmul.mubr.msk.bf16.gmra.mrb[24].mxu0 %vm800_vm4, %v5826_v1 }
 0x16f   : > { %6233 = vmatmul.mubr.msk.bf16.gmra.mrb[24].mxu1 %vm800_vm4, %v5550_v55  ;;  %6372 = vmatprep.mubr.msk.bf16.mxu0 %vm800_vm4, %v5827_v44 }
 0x170   : > { %6236 = vmatprep.mubr.msk.bf16.mxu1 %vm800_vm4, %v5551_v38 }
 0x176   : > { %6373 = vmatmul.mubr.msk.bf16.gmra.mrb[28].mxu0 %vm800_vm4, %v5828_v31 }
 0x177   : > { %6237 = vmatmul.mubr.msk.bf16.gmra.mrb[28].mxu1 %vm800_vm4, %v5552_v60 }
 0x1f2   : > { %v6176_v54 = vpop.f32.mrb[0].mxu1 }
 0x1f3   : > { %v1966_v61 = vpop.f32.mrb[1].mxu1 }
 0x1f4   : > { %v6177_v1 = vpop.f32.mrb[2].mxu1 }
 0x1f5   : > { %v1969_v53 = vpop.f32.mrb[3].mxu1 }
 0x1fa   : > { %v6180_v40 = vpop.f32.mrb[4].mxu1 }
 0x1fb   : > { %v1982_v44 = vpop.f32.mrb[5].mxu1 }
 0x1fc   : > { %v6181_v28 = vpop.f32.mrb[6].mxu1 }
 0x1fd   : > { %v1985_v5 = vpop.f32.mrb[7].mxu1 }
 0x202   : > { %v8679_v20 = vpop.f32.mrb[8].mxu1 }
 0x203   : > { %v8681_v37 = vpop.f32.mrb[9].mxu1 }
 0x204   : > { %v8683_v11 = vpop.f32.mrb[10].mxu1 }
 0x205   : > { %v8685_v49 = vpop.f32.mrb[11].mxu1 }
 0x20a   : > { %v8687_v47 = vpop.f32.mrb[12].mxu1 }
 0x20b   : > { %v8689_v31 = vpop.f32.mrb[13].mxu1 }
 0x20c   : > { %v8691_v50 = vpop.f32.mrb[14].mxu1 }
 0x20d   : > { %v8693_v58 = vpop.f32.mrb[15].mxu1 }
 0x211   : > { %v6346_v30 = vpop.f32.mrb[0].mxu0 }
 0x212   : > { %v6378_v56 = vadd.f32 %v6346_v30, %v6176_v54  ;;  %v4717_v25 = vpop.f32.mrb[1].mxu0 }
 0x213   : > { %v6379_v14 = vadd.f32 %v4717_v25, %v1966_v61  ;;  %v6347_v22 = vpop.f32.mrb[2].mxu0 }
 0x214   : > { %v4885_v62 = vmul.f32 %v6378_v56, %v8698_v23  ;;  %v6380_v43 = vadd.f32 %v6347_v22, %v6177_v1  ;;  %v4720_v36 = vpop.f32.mrb[3].mxu0 }
 0x215   : > { %v4883_v3 = vmul.f32 %v6379_v14, %v8698_v23  ;;  %v6381_v4 = vadd.f32 %v4720_v36, %v1969_v53 }
 0x216   : > { %v4924_v57 = vadd.f32 %v8704_v34, %v4885_v62  ;;  %v4886_v21 = vmul.f32 %v6380_v43, %v8698_v23 }
 0x217   : > { %v4922_v51 = vadd.f32 %v8704_v34, %v4883_v3  ;;  %v4884_v48 = vmul.f32 %v6381_v4, %v8698_v23 }
 0x218   : > { %v4956_v42 = vmax.f32 %v4924_v57, 0.0  ;;  %v4925_v32 = vadd.f32 %v8704_v34, %v4886_v21 }
 0x219   : > { %v4954_v41 = vmax.f32 %v4922_v51, 0.0  ;;  %v4923_v7 = vadd.f32 %v8704_v34, %v4884_v48  ;;  %v6350_v33 = vpop.f32.mrb[4].mxu0 }
 0x21a   : > { %v5886_v18 = vpack.c.bf16 %v4956_v42, %v4956_v42  ;;  %v4957_v12 = vmax.f32 %v4925_v32, 0.0  ;;  %v6382_v29 = vadd.f32 %v6350_v33, %v6180_v40  ;;  %v4733_v39 = vpop.f32.mrb[5].mxu0 }
 0x21b   : > { %v5884_v8 = vpack.c.bf16 %v4954_v41, %v4954_v41  ;;  %v4955_v63 = vmax.f32 %v4923_v7, 0.0  ;;  %v6383_v59 = vadd.f32 %v4733_v39, %v1982_v44  ;;  %v6351_v52 = vpop.f32.mrb[6].mxu0 }
 0x21c   : > { %5117 = vst.msk [vmem:[%s8716_s22 + $0x8] sm:$0xf] %vm5114_vm9, %v5886_v18  ;;  %v5887_v26 = vpack.c.bf16 %v4957_v12, %v4957_v12  ;;  %v4889_v6 = vmul.f32 %v6382_v29, %v8698_v23  ;;  %v6384_v19 = vadd.f32 %v6351_v52, %v6181_v28  ;;  %v4736_v35 = vpop.f32.mrb[7].mxu0 }
 0x21d   : > { %5115 = vst.msk [vmem:[%s8716_s22] sm:$0xf] %vm5114_vm9, %v5884_v8  ;;  %v5885_v13 = vpack.c.bf16 %v4955_v63, %v4955_v63  ;;  %v4887_v46 = vmul.f32 %v6383_v59, %v8698_v23  ;;  %v6385_v0 = vadd.f32 %v4736_v35, %v1985_v5 }
 0x21e   : > { %5118 = vst.msk [vmem:[%s8716_s22 + $0xc] sm:$0xf] %vm5114_vm9, %v5887_v26  ;;  %v4928_v10 = vadd.f32 %v8704_v34, %v4889_v6  ;;  %v4890_v15 = vmul.f32 %v6384_v19, %v8698_v23 }
 0x21f   : > { %5116 = vst.msk [vmem:[%s8716_s22 + $0x4] sm:$0xf] %vm5114_vm9, %v5885_v13  ;;  %v4926_v24 = vadd.f32 %v8704_v34, %v4887_v46  ;;  %v4888_v17 = vmul.f32 %v6385_v0, %v8698_v23 }
 0x220   : > { %v4960_v55 = vmax.f32 %v4928_v10, 0.0  ;;  %v4929_v38 = vadd.f32 %v8704_v34, %v4890_v15 }
 0x221   : > { %v4958_v16 = vmax.f32 %v4926_v24, 0.0  ;;  %v4927_v45 = vadd.f32 %v8704_v34, %v4888_v17  ;;  %v6354_v2 = vpop.f32.mrb[8].mxu0 }
 0x222   : > { %v5890_v9 = vpack.c.bf16 %v4960_v55, %v4960_v55  ;;  %v4961_v27 = vmax.f32 %v4929_v38, 0.0  ;;  %v6386_v60 = vadd.f32 %v6354_v2, %v8679_v20  ;;  %v4749_v54 = vpop.f32.mrb[9].mxu0 }
 0x223   : > { %v5888_v61 = vpack.c.bf16 %v4958_v16, %v4958_v16  ;;  %v4959_v1 = vmax.f32 %v4927_v45, 0.0  ;;  %v6387_v53 = vadd.f32 %v4749_v54, %v8681_v37  ;;  %v6355_v40 = vpop.f32.mrb[10].mxu0 }
 0x224   : > { %5121 = vst.msk [vmem:[%s8716_s22 + $0x18] sm:$0xf] %vm5114_vm9, %v5890_v9  ;;  %v5891_v44 = vpack.c.bf16 %v4961_v27, %v4961_v27  ;;  %v4893_v28 = vmul.f32 %v6386_v60, %v8698_v23  ;;  %v6388_v5 = vadd.f32 %v6355_v40, %v8683_v11  ;;  %v4752_v30 = vpop.f32.mrb[11].mxu0 }
 0x225   : > { %5119 = vst.msk [vmem:[%s8716_s22 + $0x10] sm:$0xf] %vm5114_vm9, %v5888_v61  ;;  %v5889_v56 = vpack.c.bf16 %v4959_v1, %v4959_v1  ;;  %v4891_v20 = vmul.f32 %v6387_v53, %v8698_v23  ;;  %v6389_v25 = vadd.f32 %v4752_v30, %v8685_v49 }
 0x226   : > { %5122 = vst.msk [vmem:[%s8716_s22 + $0x1c] sm:$0xf] %vm5114_vm9, %v5891_v44  ;;  %v4932_v37 = vadd.f32 %v8704_v34, %v4893_v28  ;;  %v4894_v14 = vmul.f32 %v6388_v5, %v8698_v23 }
 0x227   : > { %5120 = vst.msk [vmem:[%s8716_s22 + $0x14] sm:$0xf] %vm5114_vm9, %v5889_v56  ;;  %v4930_v22 = vadd.f32 %v8704_v34, %v4891_v20  ;;  %v4892_v11 = vmul.f32 %v6389_v25, %v8698_v23 }
 0x228   : > { %v4964_v62 = vmax.f32 %v4932_v37, 0.0  ;;  %v4933_v43 = vadd.f32 %v8704_v34, %v4894_v14 }
 0x229   : > { %v4962_v36 = vmax.f32 %v4930_v22, 0.0  ;;  %v4931_v49 = vadd.f32 %v8704_v34, %v4892_v11  ;;  %v6358_v3 = vpop.f32.mrb[12].mxu0 }
 0x22a   : > { %v5894_v4 = vpack.c.bf16 %v4964_v62, %v4964_v62  ;;  %v4965_v57 = vmax.f32 %v4933_v43, 0.0  ;;  %v6390_v21 = vadd.f32 %v6358_v3, %v8687_v47  ;;  %v4765_v51 = vpop.f32.mrb[13].mxu0 }
 0x22b   : > { %v5892_v48 = vpack.c.bf16 %v4962_v36, %v4962_v36  ;;  %v4963_v42 = vmax.f32 %v4931_v49, 0.0  ;;  %v6391_v32 = vadd.f32 %v4765_v51, %v8689_v31  ;;  %v6359_v41 = vpop.f32.mrb[14].mxu0 }
 0x22c   : > { %5125 = vst.msk [vmem:[%s8716_s22 + $0x28] sm:$0xf] %vm5114_vm9, %v5894_v4  ;;  %v5895_v7 = vpack.c.bf16 %v4965_v57, %v4965_v57  ;;  %v4897_v33 = vmul.f32 %v6390_v21, %v8698_v23  ;;  %v6392_v18 = vadd.f32 %v6359_v41, %v8691_v50  ;;  %v4768_v12 = vpop.f32.mrb[15].mxu0 }
 0x22d   : > { %5123 = vst.msk [vmem:[%s8716_s22 + $0x20] sm:$0xf] %vm5114_vm9, %v5892_v48  ;;  %v5893_v29 = vpack.c.bf16 %v4963_v42, %v4963_v42  ;;  %v4895_v47 = vmul.f32 %v6391_v32, %v8698_v23  ;;  %v6393_v39 = vadd.f32 %v4768_v12, %v8693_v58 }
 0x22e   : > { %5126 = vst.msk [vmem:[%s8716_s22 + $0x2c] sm:$0xf] %vm5114_vm9, %v5895_v7  ;;  %v4936_v31 = vadd.f32 %v8704_v34, %v4897_v33  ;;  %v4898_v8 = vmul.f32 %v6392_v18, %v8698_v23 }
 0x22f   : > { %5124 = vst.msk [vmem:[%s8716_s22 + $0x24] sm:$0xf] %vm5114_vm9, %v5893_v29  ;;  %v4934_v63 = vadd.f32 %v8704_v34, %v4895_v47  ;;  %v4896_v50 = vmul.f32 %v6393_v39, %v8698_v23 }
 0x230   : > { %v4968_v59 = vmax.f32 %v4936_v31, 0.0  ;;  %v4937_v52 = vadd.f32 %v8704_v34, %v4898_v8 }
 0x231   : > { %v4966_v26 = vmax.f32 %v4934_v63, 0.0  ;;  %v4935_v6 = vadd.f32 %v8704_v34, %v4896_v50  ;;  %v6362_v58 = vpop.f32.mrb[16].mxu0 }
 0x232   : > { %v5898_v19 = vpack.c.bf16 %v4968_v59, %v4968_v59  ;;  %v4969_v35 = vmax.f32 %v4937_v52, 0.0  ;;  %v6226_v13 = vpop.f32.mrb[16].mxu1  ;;  %v4781_v46 = vpop.f32.mrb[17].mxu0 }
 0x233   : > { %v5896_v0 = vpack.c.bf16 %v4966_v26, %v4966_v26  ;;  %v4967_v10 = vmax.f32 %v4935_v6, 0.0  ;;  %v6394_v15 = vadd.f32 %v6362_v58, %v6226_v13  ;;  %v2756_v24 = vpop.f32.mrb[17].mxu1  ;;  %v6363_v17 = vpop.f32.mrb[18].mxu0 }
 0x234   : > { %5129 = vst.msk [vmem:[%s8716_s22 + $0x38] sm:$0xf] %vm5114_vm9, %v5898_v19  ;;  %v5899_v55 = vpack.c.bf16 %v4969_v35, %v4969_v35  ;;  %v6395_v38 = vadd.f32 %v4781_v46, %v2756_v24  ;;  %v6227_v16 = vpop.f32.mrb[18].mxu1  ;;  %v4784_v45 = vpop.f32.mrb[19].mxu0 }
 0x235   : > { %5127 = vst.msk [vmem:[%s8716_s22 + $0x30] sm:$0xf] %vm5114_vm9, %v5896_v0  ;;  %v5897_v2 = vpack.c.bf16 %v4967_v10, %v4967_v10  ;;  %v4901_v9 = vmul.f32 %v6394_v15, %v8698_v23  ;;  %v6396_v27 = vadd.f32 %v6363_v17, %v6227_v16  ;;  %v2759_v60 = vpop.f32.mrb[19].mxu1 }
 0x236   : > { %5130 = vst.msk [vmem:[%s8716_s22 + $0x3c] sm:$0xf] %vm5114_vm9, %v5899_v55  ;;  %v4899_v54 = vmul.f32 %v6395_v38, %v8698_v23  ;;  %v6397_v61 = vadd.f32 %v4784_v45, %v2759_v60 }
 0x237   : > { %5128 = vst.msk [vmem:[%s8716_s22 + $0x34] sm:$0xf] %vm5114_vm9, %v5897_v2  ;;  %v4940_v1 = vadd.f32 %v8704_v34, %v4901_v9  ;;  %v4902_v53 = vmul.f32 %v6396_v27, %v8698_v23 }
 0x238   : > { %v4938_v40 = vadd.f32 %v8704_v34, %v4899_v54  ;;  %v4900_v44 = vmul.f32 %v6397_v61, %v8698_v23 }
 0x239   : > { %v4972_v28 = vmax.f32 %v4940_v1, 0.0  ;;  %v4941_v5 = vadd.f32 %v8704_v34, %v4902_v53  ;;  %v6366_v30 = vpop.f32.mrb[20].mxu0 }
 0x23a   : > { %v4970_v56 = vmax.f32 %v4938_v40, 0.0  ;;  %v4939_v20 = vadd.f32 %v8704_v34, %v4900_v44  ;;  %v6230_v25 = vpop.f32.mrb[20].mxu1  ;;  %v4797_v37 = vpop.f32.mrb[21].mxu0 }
 0x23b   : > { %v5902_v14 = vpack.c.bf16 %v4972_v28, %v4972_v28  ;;  %v4973_v22 = vmax.f32 %v4941_v5, 0.0  ;;  %v6398_v11 = vadd.f32 %v6366_v30, %v6230_v25  ;;  %v2772_v62 = vpop.f32.mrb[21].mxu1  ;;  %v6367_v43 = vpop.f32.mrb[22].mxu0 }
 0x23c   : > { %v5900_v36 = vpack.c.bf16 %v4970_v56, %v4970_v56  ;;  %v4971_v49 = vmax.f32 %v4939_v20, 0.0  ;;  %v6399_v3 = vadd.f32 %v4797_v37, %v2772_v62  ;;  %v6231_v4 = vpop.f32.mrb[22].mxu1  ;;  %v4800_v57 = vpop.f32.mrb[23].mxu0 }
 0x23d   : > { %5133 = vst.msk [vmem:[%s8716_s22 + $0x48] sm:$0xf] %vm5114_vm9, %v5902_v14  ;;  %v5903_v21 = vpack.c.bf16 %v4973_v22, %v4973_v22  ;;  %v4905_v51 = vmul.f32 %v6398_v11, %v8698_v23  ;;  %v6400_v48 = vadd.f32 %v6367_v43, %v6231_v4  ;;  %v2775_v42 = vpop.f32.mrb[23].mxu1 }
 0x23e   : > { %5131 = vst.msk [vmem:[%s8716_s22 + $0x40] sm:$0xf] %vm5114_vm9, %v5900_v36  ;;  %v5901_v32 = vpack.c.bf16 %v4971_v49, %v4971_v49  ;;  %v4903_v41 = vmul.f32 %v6399_v3, %v8698_v23  ;;  %v6401_v7 = vadd.f32 %v4800_v57, %v2775_v42 }
 0x23f   : > { %5134 = vst.msk [vmem:[%s8716_s22 + $0x4c] sm:$0xf] %vm5114_vm9, %v5903_v21  ;;  %v4944_v33 = vadd.f32 %v8704_v34, %v4905_v51  ;;  %v4906_v18 = vmul.f32 %v6400_v48, %v8698_v23 }
 0x240   : > { %5132 = vst.msk [vmem:[%s8716_s22 + $0x44] sm:$0xf] %vm5114_vm9, %v5901_v32  ;;  %v4942_v12 = vadd.f32 %v8704_v34, %v4903_v41  ;;  %v4904_v29 = vmul.f32 %v6401_v7, %v8698_v23 }
 0x241   : > { %v4976_v47 = vmax.f32 %v4944_v33, 0.0  ;;  %v4945_v39 = vadd.f32 %v8704_v34, %v4906_v18  ;;  %v6370_v31 = vpop.f32.mrb[24].mxu0 }
 0x242   : > { %v4974_v8 = vmax.f32 %v4942_v12, 0.0  ;;  %v4943_v63 = vadd.f32 %v8704_v34, %v4904_v29  ;;  %v6234_v50 = vpop.f32.mrb[24].mxu1  ;;  %v4813_v59 = vpop.f32.mrb[25].mxu0 }
 0x243   : > { %v5906_v52 = vpack.c.bf16 %v4976_v47, %v4976_v47  ;;  %v4977_v26 = vmax.f32 %v4945_v39, 0.0  ;;  %v6402_v6 = vadd.f32 %v6370_v31, %v6234_v50  ;;  %v2788_v58 = vpop.f32.mrb[25].mxu1  ;;  %v6371_v19 = vpop.f32.mrb[26].mxu0 }
 0x244   : > { %v5904_v35 = vpack.c.bf16 %v4974_v8, %v4974_v8  ;;  %v4975_v13 = vmax.f32 %v4943_v63, 0.0  ;;  %v6403_v46 = vadd.f32 %v4813_v59, %v2788_v58  ;;  %v6235_v0 = vpop.f32.mrb[26].mxu1  ;;  %v4816_v10 = vpop.f32.mrb[27].mxu0 }
 0x245   : > { %5137 = vst.msk [vmem:[%s8716_s22 + $0x58] sm:$0xf] %vm5114_vm9, %v5906_v52  ;;  %v5907_v15 = vpack.c.bf16 %v4977_v26, %v4977_v26  ;;  %v4909_v24 = vmul.f32 %v6402_v6, %v8698_v23  ;;  %v6404_v17 = vadd.f32 %v6371_v19, %v6235_v0  ;;  %v2791_v55 = vpop.f32.mrb[27].mxu1 }
 0x246   : > { %5135 = vst.msk [vmem:[%s8716_s22 + $0x50] sm:$0xf] %vm5114_vm9, %v5904_v35  ;;  %v5905_v38 = vpack.c.bf16 %v4975_v13, %v4975_v13  ;;  %v4907_v16 = vmul.f32 %v6403_v46, %v8698_v23  ;;  %v6405_v45 = vadd.f32 %v4816_v10, %v2791_v55 }
 0x247   : > { %5138 = vst.msk [vmem:[%s8716_s22 + $0x5c] sm:$0xf] %vm5114_vm9, %v5907_v15  ;;  %v4948_v2 = vadd.f32 %v8704_v34, %v4909_v24  ;;  %v4910_v9 = vmul.f32 %v6404_v17, %v8698_v23 }
 0x248   : > { %5136 = vst.msk [vmem:[%s8716_s22 + $0x54] sm:$0xf] %vm5114_vm9, %v5905_v38  ;;  %v4946_v27 = vadd.f32 %v8704_v34, %v4907_v16  ;;  %v4908_v60 = vmul.f32 %v6405_v45, %v8698_v23 }
 0x249   : > { %v4980_v54 = vmax.f32 %v4948_v2, 0.0  ;;  %v4949_v61 = vadd.f32 %v8704_v34, %v4910_v9  ;;  %v6374_v1 = vpop.f32.mrb[28].mxu0 }
 0x24a   : > { %v4978_v53 = vmax.f32 %v4946_v27, 0.0  ;;  %v4947_v40 = vadd.f32 %v8704_v34, %v4908_v60  ;;  %v6238_v44 = vpop.f32.mrb[28].mxu1  ;;  %v4829_v28 = vpop.f32.mrb[29].mxu0 }
 0x24b   : > { %v5910_v5 = vpack.c.bf16 %v4980_v54, %v4980_v54  ;;  %v4981_v30 = vmax.f32 %v4949_v61, 0.0  ;;  %v6406_v56 = vadd.f32 %v6374_v1, %v6238_v44  ;;  %v2804_v20 = vpop.f32.mrb[29].mxu1  ;;  %v6375_v25 = vpop.f32.mrb[30].mxu0 }
 0x24c   : > { %v5908_v37 = vpack.c.bf16 %v4978_v53, %v4978_v53  ;;  %v4979_v14 = vmax.f32 %v4947_v40, 0.0  ;;  %v6407_v22 = vadd.f32 %v4829_v28, %v2804_v20  ;;  %v6239_v11 = vpop.f32.mrb[30].mxu1  ;;  %v4832_v62 = vpop.f32.mrb[31].mxu0 }
 0x24d   : > { %5141 = vst.msk [vmem:[%s8716_s22 + $0x68] sm:$0xf] %vm5114_vm9, %v5910_v5  ;;  %v5911_v43 = vpack.c.bf16 %v4981_v30, %v4981_v30  ;;  %v4913_v36 = vmul.f32 %v6406_v56, %v8698_v23  ;;  %v6408_v49 = vadd.f32 %v6375_v25, %v6239_v11  ;;  %v2807_v3 = vpop.f32.mrb[31].mxu1 }
 0x24e   : > { %5139 = vst.msk [vmem:[%s8716_s22 + $0x60] sm:$0xf] %vm5114_vm9, %v5908_v37  ;;  %v5909_v4 = vpack.c.bf16 %v4979_v14, %v4979_v14  ;;  %v4911_v57 = vmul.f32 %v6407_v22, %v8698_v23  ;;  %v6409_v21 = vadd.f32 %v4832_v62, %v2807_v3 }
 0x24f   : > { %5142 = vst.msk [vmem:[%s8716_s22 + $0x6c] sm:$0xf] %vm5114_vm9, %v5911_v43  ;;  %v4952_v51 = vadd.f32 %v8704_v34, %v4913_v36  ;;  %v4914_v48 = vmul.f32 %v6408_v49, %v8698_v23 }
 0x250   : > { %5140 = vst.msk [vmem:[%s8716_s22 + $0x64] sm:$0xf] %vm5114_vm9, %v5909_v4  ;;  %v4950_v42 = vadd.f32 %v8704_v34, %v4911_v57  ;;  %v4912_v32 = vmul.f32 %v6409_v21, %v8698_v23 }
 0x251   : > { %v4984_v41 = vmax.f32 %v4952_v51, 0.0  ;;  %v4953_v7 = vadd.f32 %v8704_v34, %v4914_v48 }
 0x252   : > { %v4982_v33 = vmax.f32 %v4950_v42, 0.0  ;;  %v4951_v18 = vadd.f32 %v8704_v34, %v4912_v32 }
 0x253   : > { %v5914_v12 = vpack.c.bf16 %v4984_v41, %v4984_v41  ;;  %v4985_v29 = vmax.f32 %v4953_v7, 0.0 }
 0x254   : > { %v5912_v47 = vpack.c.bf16 %v4982_v33, %v4982_v33  ;;  %v4983_v39 = vmax.f32 %v4951_v18, 0.0 }
 0x255   : > { %5145 = vst.msk [vmem:[%s8716_s22 + $0x78] sm:$0xf] %vm5114_vm9, %v5914_v12  ;;  %v5915_v31 = vpack.c.bf16 %v4985_v29, %v4985_v29 }
 0x256   : > { %5143 = vst.msk [vmem:[%s8716_s22 + $0x70] sm:$0xf] %vm5114_vm9, %v5912_v47  ;;  %v5913_v23 = vpack.c.bf16 %v4983_v39, %v4983_v39 }
 0x257   : > { %5146 = vst.msk [vmem:[%s8716_s22 + $0x7c] sm:$0xf] %vm5114_vm9, %v5915_v31 }
 0x258   : > { %5144 = vst.msk [vmem:[%s8716_s22 + $0x74] sm:$0xf] %vm5114_vm9, %v5913_v23 }
 0x259   : > { %6808 = shalt.err (!%p6805_p5)
}
 0x25a   : > { %s6809_s10 = scalar_lea.hbm %s8845_s5, 2048  ;;  %s6813_s13 = scalar_lea.hbm %s8907_s4, 4096 }
 0x25b   : > { %p6810_p6 = scmp.ne.s32.totalorder %s8845_s5, %s6809_s10  ;;  %p6814_p10 = scmp.lt.u32.totalorder %s8845_s5, %s8907_s4 }
 0x25c   : > { %p6815_p11 = scmp.lt.u32.totalorder %s6813_s13, %s6809_s10  ;;  %p6817_p13 = scmp.lt.u32.totalorder %s6809_s10, %s8845_s5 }
 0x25d   : > { %p6811_p7 = pnand %p6810_p6, %p6944_p4 }
 0x25e   : > { %p6816_p12 = por %p6815_p11, %p6814_p10 }
 0x25f   : > { %p6812_p9 = pneg %p6811_p7 }
 0x260   : > { %p6818_p0 = por %p6817_p13, %p6816_p12 }
 0x262   : > { %p6819_p1 = pnand %p6818_p0, %p6812_p9 }
 0x264   : > { %6822 = shalt.err (!%p6819_p1)
}
 0x265   : > { %s6877_s22 = smov 64   ;;  %s6878_s24 = smov 4  }
 0x266   : > { %6635 = dma.vmem_to_hbm [thread:$0]  (%p6944_p4), %s8847_s26, 2048, %s8845_s5, %s8857_s18, %s6877_s22, %s6877_s22, %s6878_s24  }
 0x267 PF: > { %p6641_p2 = scmp.ge.s32.totalorder %s6873_s20, 2  ;;  %s5180_s29 = sand.u32 1, %s6853_s15  }
 0x268   : > { %s5181_s30 = scalar_lea.sflag [#allocation3], %s5180_s29 }
 0x269   : > { %p6638_p3 = pnand %p6641_p2, %p6951_p8 }
 0x26b   : > { %6848 = dma.done.wait (!%p6638_p3), %s5181_s30, 2048  }
 0x26c   : > { %6850 = vsyncadd (!%p6638_p3), %s5181_s30, 4294965248  ;;  %s17_s20 = sadd.s32 1, %s6873_s20   ;;  %s8987_s15 = smov %s6857_s16 }
 0x26d   : > { %p14_p5 = scmp.ge.s32.totalorder %s17_s20, 4   ;;  %s8988_s16 = smov %s6861_s17 }
 0x26e   : > { %s8989_s17 = smov %s6957_s28  ;;  %s8990_s18 = smov %s6869_s19 }
 0x26f   : > { %s8991_s19 = smov %s8993_s23  ;;  %16 = sbr.rel (!%p14_p5) target bundleno = 4 (0x4), region = 90 }
 0x276   :  { %5186 = vsyncpa [#allocation3], 1 }
 0x277   :  { %5188 = vsyncpa [#allocation3 + $0x1], 1 }

</bundles_post_ra>
